<compile_context>
chip_gen: v6e
topology: v6e:2x2x1
jax: 0.10.0
libtpu: 0.0.40
codegen_flags: <defaults>
</compile_context>

<pallas_src>
import functools

import jax
import jax.numpy as jnp
from jax.experimental import pallas as pl
from jax.experimental.pallas import tpu as pltpu

X_PAD = 128  # lane-aligned pad width for the tiny (input_size=2) token features


def _encoder_gru_kernel(x_ref, h0_ref, w_in_ref, b_gi_ref, w_hh_ref, b_hn_ref,
                        out_ref, gi_ref, *, T, H):
    """Whole EncoderRNN sequence in a single invocation.

    x_ref   : (T_pad, X_PAD)  bf16  zero-padded token features
    h0_ref  : (1, H)          f32   initial hidden state
    w_in_ref: (X_PAD, 3H)     bf16  Linear embedding folded into W_ih, gates [r|z|n]
    b_gi_ref: (1, 3H)         f32   input-side bias (r/z parts also absorb b_hh r/z)
    w_hh_ref: (H, 3H)         bf16  recurrent weight, gates [r|z|n]
    b_hn_ref: (1, H)          f32   b_hn (must stay inside the r-multiply)
    out_ref : (T_pad, H)      f32   per-step hidden states (== GRU outputs)
    gi_ref  : (T_pad, 3H)     f32   VMEM scratch: precomputed input transform
    """
    T_pad = out_ref.shape[0]

    # ---- Prologue (off the recurrence critical path) --------------------------------
    # One (T_pad,128)x(128,3H) MXU pass computes the input-side pre-activations for
    # every timestep at once; parked in VMEM scratch and sliced statically per step.
    gi_ref[...] = (
        jnp.dot(x_ref[...], w_in_ref[...], preferred_element_type=jnp.float32)
        + b_gi_ref[...]
    )

    if T < T_pad:  # static branch: make sublane-pad rows deterministic
        out_ref[pl.ds(T, T_pad - T), :] = jnp.zeros((T_pad - T, H), out_ref.dtype)

    w_hh = w_hh_ref[...]        # resident recurrent weight (bf16, loaded once)
    b_hn = b_hn_ref[...]

    # ---- Recurrence: fully unrolled in-kernel time loop (static addressing) ---------
    h = h0_ref[...]                                   # (1, H) f32 carried state
    for t in range(T):
        # Per-step MXU work is ONLY the recurrent GEMV: (1,H) x (H,3H).
        gh = jnp.dot(h.astype(jnp.bfloat16), w_hh,
                     preferred_element_type=jnp.float32)          # (1, 3H) f32
        gi = gi_ref[pl.ds(t, 1), :]                               # (1, 3H) f32

        rz = jax.nn.sigmoid(gi[:, :2 * H] + gh[:, :2 * H])        # lane-aligned slices
        r = rz[:, :H]
        z = rz[:, H:]
        n = jnp.tanh(gi[:, 2 * H:] + r * (gh[:, 2 * H:] + b_hn))
        h = (1.0 - z) * n + z * h                                 # f32 PyTorch GRU step

        out_ref[pl.ds(t, 1), :] = h     # row store into the resident output block


def encoder_rnn_forward_seq(x_seq, hidden, fused):
    """Run T EncoderRNN steps in a single pallas_call.

    x_seq: (T, input_size); hidden: (1, 1, H) (PyTorch layout).
    Returns (outputs (T, 1, H), final_hidden (1, 1, H)).
    """
    T, input_size = x_seq.shape
    H = hidden.shape[-1]
    XP = fused["w_in"].shape[0]
    T_pad = ((T + 7) // 8) * 8            # sublane-aligned output / gi scratch

    # Zero-pad token features to a lane-aligned width; bf16 for the MXU.
    x_pad = jnp.zeros((T_pad, XP), jnp.bfloat16)
    x_pad = x_pad.at[:T, :input_size].set(x_seq.astype(jnp.bfloat16))
    h0 = hidden.reshape(1, H).astype(jnp.float32)

    kernel = functools.partial(_encoder_gru_kernel, T=T, H=H)

    out = pl.pallas_call(
        kernel,
        out_shape=jax.ShapeDtypeStruct((T_pad, H), jnp.float32),
        grid_spec=pltpu.PrefetchScalarGridSpec(
            num_scalar_prefetch=0,
            grid=(1,),                                        # single invocation
            in_specs=[
                pl.BlockSpec((T_pad, XP), lambda i: (0, 0)),  # all tokens at once
                pl.BlockSpec((1, H), lambda i: (0, 0)),       # h0
                pl.BlockSpec((XP, 3 * H), lambda i: (0, 0)),  # fused input weight
                pl.BlockSpec((1, 3 * H), lambda i: (0, 0)),   # fused input bias
                pl.BlockSpec((H, 3 * H), lambda i: (0, 0)),   # recurrent weight
                pl.BlockSpec((1, H), lambda i: (0, 0)),       # b_hn
            ],
            out_specs=pl.BlockSpec((T_pad, H), lambda i: (0, 0)),
            scratch_shapes=[pltpu.VMEM((T_pad, 3 * H), jnp.float32)],  # gi scratch
        ),
        compiler_params=pltpu.CompilerParams(
            dimension_semantics=("arbitrary",),
        ),
    )(x_pad, h0, fused["w_in"], fused["b_gi"], fused["w_hh"], fused["b_hn"])

    outputs = out[:T].reshape(T, 1, H)                # GRU outputs per step
    final_hidden = out[T - 1:T].reshape(1, 1, H)      # output == hidden for a GRU
    return outputs, final_hidden


def encoder_rnn_forward(x, hidden, fused):
    """Single-step API matching the PyTorch module: x (1, input_size), hidden (1,1,H)."""
    outputs, final_hidden = encoder_rnn_forward_seq(x, hidden, fused)
    return outputs.reshape(1, 1, -1), final_hidden


def init_params(key, input_size, hidden_size):
    """PyTorch-layout (pre-transposed) parameters with torch-like uniform init."""
    H = hidden_size
    k_emb, k_ih, k_hh, k_b1, k_b2, k_b3 = jax.random.split(key, 6)
    lim_emb = 1.0 / jnp.sqrt(jnp.float32(input_size))
    lim_gru = 1.0 / jnp.sqrt(jnp.float32(H))
    return {
        # nn.Linear(input_size, H): weight (H, input_size) in torch; stored transposed.
        "w_emb": jax.random.uniform(k_emb, (input_size, H), jnp.float32, -lim_emb, lim_emb),
        "b_emb": jax.random.uniform(k_b1, (1, H), jnp.float32, -lim_emb, lim_emb),
        # nn.GRU weight_ih_l0 (3H, H) in torch; stored transposed (H, 3H), gates [r|z|n].
        "w_ih": jax.random.uniform(k_ih, (H, 3 * H), jnp.float32, -lim_gru, lim_gru),
        "b_ih": jax.random.uniform(k_b2, (1, 3 * H), jnp.float32, -lim_gru, lim_gru),
        # nn.GRU weight_hh_l0 (3H, H) in torch; stored transposed (H, 3H).
        "w_hh": jax.random.uniform(k_hh, (H, 3 * H), jnp.float32, -lim_gru, lim_gru),
        "b_hh": jax.random.uniform(k_b3, (1, 3 * H), jnp.float32, -lim_gru, lim_gru),
    }


def fuse_params(params, input_size, hidden_size, x_pad=X_PAD):
    """Fold nn.Linear into W_ih (exact in f32) and split biases for the hoisted gi."""
    H = hidden_size
    assert H % 128 == 0, "H must be a multiple of 128 for lane-aligned gate slices"
    assert input_size <= x_pad

    w_in = params["w_emb"] @ params["w_ih"]                        # (input_size, 3H)
    b_in = params["b_emb"] @ params["w_ih"] + params["b_ih"]       # (1, 3H)
    b_hh = params["b_hh"]

    # r/z biases from the h-side fold into the precomputed gi; b_hn must stay inside
    # the r-multiply (PyTorch GRU: n = tanh(W_in x + b_in + r*(W_hn h + b_hn))).
    b_gi = jnp.concatenate(
        [b_in[:, :2 * H] + b_hh[:, :2 * H], b_in[:, 2 * H:]], axis=-1)

    w_in_pad = jnp.zeros((x_pad, 3 * H), jnp.float32).at[:input_size].set(w_in)

    return {
        "w_in": w_in_pad.astype(jnp.bfloat16),   # bf16 weights, f32 accumulation
        "b_gi": b_gi.astype(jnp.float32),
        "w_hh": params["w_hh"].astype(jnp.bfloat16),
        "b_hn": b_hh[:, 2 * H:].astype(jnp.float32),
    }


def encoder_rnn_reference_seq(x_seq, hidden, params):
    """Pure-JAX f32 reference mirroring the PyTorch module called T times."""
    H = hidden.shape[-1]
    h = hidden.reshape(1, H)
    outs = []
    for t in range(x_seq.shape[0]):
        x = x_seq[t:t + 1]
        emb = x @ params["w_emb"] + params["b_emb"]
        gi = emb @ params["w_ih"] + params["b_ih"]
        gh = h @ params["w_hh"] + params["b_hh"]
        r = jax.nn.sigmoid(gi[:, :H] + gh[:, :H])
        z = jax.nn.sigmoid(gi[:, H:2 * H] + gh[:, H:2 * H])
        n = jnp.tanh(gi[:, 2 * H:] + r * gh[:, 2 * H:])
        h = (1.0 - z) * n + z * h
        outs.append(h)
    return jnp.stack(outs, axis=0), h.reshape(1, 1, H)


if __name__ == "__main__":
    input_size = 2      # module's input_size
    hidden_size = 256   # module's hidden_size (multiple of 128 -> lane-aligned gates)
    seq_len = 8

    key = jax.random.PRNGKey(0)
    k_params, k_x = jax.random.split(key)

    params = init_params(k_params, input_size, hidden_size)
    fused = fuse_params(params, input_size, hidden_size)

    x_seq = jax.random.normal(k_x, (seq_len, input_size), jnp.float32)
    hidden0 = jnp.zeros((1, 1, hidden_size), jnp.float32)   # initHidden()

    # Whole-sequence call: ONE pallas_call, weights resident, unrolled time loop.
    outputs, h_final = jax.jit(encoder_rnn_forward_seq)(x_seq, hidden0, fused)
    jax.block_until_ready((outputs, h_final))

    assert outputs.shape == (seq_len, 1, hidden_size)
    assert h_final.shape == (1, 1, hidden_size)

    # Numerical check against the f32 PyTorch-equivalent reference (bf16 weights
    # in the kernel -> loose-but-meaningful tolerance).
    ref_out, ref_h = encoder_rnn_reference_seq(x_seq, hidden0, params)
    assert bool(jnp.allclose(outputs, ref_out, atol=3e-2)), "sequence outputs mismatch"
    assert bool(jnp.allclose(h_final, ref_h, atol=3e-2)), "final hidden mismatch"

    # Single-step API parity with the PyTorch module's forward(input, hidden).
    out1, h1 = jax.jit(encoder_rnn_forward)(x_seq[0:1], hidden0, fused)
    jax.block_until_ready((out1, h1))
    assert out1.shape == (1, 1, hidden_size) and h1.shape == (1, 1, hidden_size)
    assert bool(jnp.allclose(out1, h1))                      # output == new hidden
    assert bool(jnp.allclose(out1, ref_out[0:1], atol=3e-2))

    print("KERNEL_OK")
</pallas_src>

<mosaic_0001>
module attributes {stable_mosaic.version = 11 : i64} {
  func.func @_encoder_gru_kernel(%arg0: i32, %arg1: memref<8x128xbf16, #tpu.memory_space<vmem>>, %arg2: memref<1x256xf32, #tpu.memory_space<vmem>>, %arg3: memref<128x768xbf16, #tpu.memory_space<vmem>>, %arg4: memref<1x768xf32, #tpu.memory_space<vmem>>, %arg5: memref<256x768xbf16, #tpu.memory_space<vmem>>, %arg6: memref<1x256xf32, #tpu.memory_space<vmem>>, %arg7: memref<8x256xf32, #tpu.memory_space<vmem>>, %arg8: memref<8x768xf32, #tpu.memory_space<vmem>>) attributes {dimension_semantics = [#tpu.dimension_semantics<arbitrary>], iteration_bounds = array<i64: 1>, scalar_prefetch = 0 : i64, scratch_operands = 1 : i64, tpu.core_type = #tpu.core_type<tc>, window_params = [{pipeline_mode = #tpu.pipeline_mode<synchronous>, transform_indices = @transform_0, window_bounds = array<i64: 8, 128>}, {pipeline_mode = #tpu.pipeline_mode<synchronous>, transform_indices = @transform_1, window_bounds = array<i64: 1, 256>}, {pipeline_mode = #tpu.pipeline_mode<synchronous>, transform_indices = @transform_2, window_bounds = array<i64: 128, 768>}, {pipeline_mode = #tpu.pipeline_mode<synchronous>, transform_indices = @transform_3, window_bounds = array<i64: 1, 768>}, {pipeline_mode = #tpu.pipeline_mode<synchronous>, transform_indices = @transform_4, window_bounds = array<i64: 256, 768>}, {pipeline_mode = #tpu.pipeline_mode<synchronous>, transform_indices = @transform_5, window_bounds = array<i64: 1, 256>}, {pipeline_mode = #tpu.pipeline_mode<synchronous>, transform_indices = @transform_6, window_bounds = array<i64: 8, 256>}]} {
    %c0 = arith.constant 0 : index
    %c0_0 = arith.constant 0 : index
    %0 = vector.load %arg1[%c0, %c0_0] : memref<8x128xbf16, #tpu.memory_space<vmem>>, vector<8x128xbf16>
    %c0_1 = arith.constant 0 : index
    %c0_2 = arith.constant 0 : index
    %1 = vector.load %arg3[%c0_1, %c0_2] : memref<128x768xbf16, #tpu.memory_space<vmem>>, vector<128x768xbf16>
    %cst = arith.constant dense<0.000000e+00> : vector<8x768xf32>
    %2 = tpu.matmul %0, %1, %cst {dimension_numbers = #tpu.dot_dimension_numbers<[1], [0], [0], [1], [0, 0, 1, 1], [], []>} : vector<8x128xbf16>, vector<128x768xbf16>, vector<8x768xf32> -> vector<8x768xf32>
    %c0_3 = arith.constant 0 : index
    %c0_4 = arith.constant 0 : index
    %3 = vector.load %arg4[%c0_3, %c0_4] : memref<1x768xf32, #tpu.memory_space<vmem>>, vector<1x768xf32>
    %4 = vector.broadcast %3 : vector<1x768xf32> to vector<8x768xf32>
    %5 = arith.addf %2, %4 : vector<8x768xf32>
    %c0_5 = arith.constant 0 : index
    %c0_6 = arith.constant 0 : index
    %6 = vector.load %arg8[%c0_5, %c0_6] : memref<8x768xf32, #tpu.memory_space<vmem>>, vector<8x768xf32>
    tpu.vector_store %arg8[%c0_5, %c0_6], %5 {strides = array<i32>} : memref<8x768xf32, #tpu.memory_space<vmem>>, vector<8x768xf32>,
    %c0_7 = arith.constant 0 : index
    %c0_8 = arith.constant 0 : index
    %7 = vector.load %arg5[%c0_7, %c0_8] : memref<256x768xbf16, #tpu.memory_space<vmem>>, vector<256x768xbf16>
    %c0_9 = arith.constant 0 : index
    %c0_10 = arith.constant 0 : index
    %8 = vector.load %arg6[%c0_9, %c0_10] : memref<1x256xf32, #tpu.memory_space<vmem>>, vector<1x256xf32>
    %c0_11 = arith.constant 0 : index
    %c0_12 = arith.constant 0 : index
    %9 = vector.load %arg2[%c0_11, %c0_12] : memref<1x256xf32, #tpu.memory_space<vmem>>, vector<1x256xf32>
    %10 = arith.truncf %9 : vector<1x256xf32> to vector<1x256xbf16>
    %cst_13 = arith.constant dense<0.000000e+00> : vector<1x768xf32>
    %11 = tpu.matmul %10, %7, %cst_13 {dimension_numbers = #tpu.dot_dimension_numbers<[1], [0], [0], [1], [0, 0, 1, 1], [], []>} : vector<1x256xbf16>, vector<256x768xbf16>, vector<1x768xf32> -> vector<1x768xf32>
    %c0_14 = arith.constant 0 : index
    %c0_15 = arith.constant 0 : index
    %12 = vector.load %arg8[%c0_14, %c0_15] : memref<8x768xf32, #tpu.memory_space<vmem>>, vector<1x768xf32>
    %13 = vector.extract_strided_slice %12 {offsets = [0, 0], sizes = [1, 512], strides = [1, 1]} : vector<1x768xf32> to vector<1x512xf32>
    %14 = vector.extract_strided_slice %11 {offsets = [0, 0], sizes = [1, 512], strides = [1, 1]} : vector<1x768xf32> to vector<1x512xf32>
    %15 = arith.addf %13, %14 : vector<1x512xf32>
    %16 = arith.negf %15 : vector<1x512xf32>
    %17 = math.exp %16 : vector<1x512xf32>
    %cst_16 = arith.constant 1.000000e+00 : f32
    %18 = vector.broadcast %cst_16 : f32 to vector<1x512xf32>
    %19 = arith.addf %18, %17 : vector<1x512xf32>
    %20 = arith.divf %18, %19 : vector<1x512xf32>
    %21 = vector.extract_strided_slice %20 {offsets = [0, 0], sizes = [1, 256], strides = [1, 1]} : vector<1x512xf32> to vector<1x256xf32>
    %22 = vector.extract_strided_slice %20 {offsets = [0, 256], sizes = [1, 256], strides = [1, 1]} : vector<1x512xf32> to vector<1x256xf32>
    %23 = vector.extract_strided_slice %12 {offsets = [0, 512], sizes = [1, 256], strides = [1, 1]} : vector<1x768xf32> to vector<1x256xf32>
    %24 = vector.extract_strided_slice %11 {offsets = [0, 512], sizes = [1, 256], strides = [1, 1]} : vector<1x768xf32> to vector<1x256xf32>
    %25 = arith.addf %24, %8 : vector<1x256xf32>
    %26 = arith.mulf %21, %25 : vector<1x256xf32>
    %27 = arith.addf %23, %26 : vector<1x256xf32>
    %28 = math.tanh %27 : vector<1x256xf32>
    %cst_17 = arith.constant 1.000000e+00 : f32
    %29 = vector.broadcast %cst_17 : f32 to vector<1x256xf32>
    %30 = arith.subf %29, %22 : vector<1x256xf32>
    %31 = arith.mulf %30, %28 : vector<1x256xf32>
    %32 = arith.mulf %22, %9 : vector<1x256xf32>
    %33 = arith.addf %31, %32 : vector<1x256xf32>
    %c0_18 = arith.constant 0 : index
    %c0_19 = arith.constant 0 : index
    %34 = vector.load %arg7[%c0_18, %c0_19] : memref<8x256xf32, #tpu.memory_space<vmem>>, vector<1x256xf32>
    tpu.vector_store %arg7[%c0_18, %c0_19], %33 {strides = array<i32>} : memref<8x256xf32, #tpu.memory_space<vmem>>, vector<1x256xf32>,
    %35 = arith.truncf %33 : vector<1x256xf32> to vector<1x256xbf16>
    %cst_20 = arith.constant dense<0.000000e+00> : vector<1x768xf32>
    %36 = tpu.matmul %35, %7, %cst_20 {dimension_numbers = #tpu.dot_dimension_numbers<[1], [0], [0], [1], [0, 0, 1, 1], [], []>} : vector<1x256xbf16>, vector<256x768xbf16>, vector<1x768xf32> -> vector<1x768xf32>
    %c1 = arith.constant 1 : index
    %c0_21 = arith.constant 0 : index
    %37 = vector.load %arg8[%c1, %c0_21] : memref<8x768xf32, #tpu.memory_space<vmem>>, vector<1x768xf32>
    %38 = vector.extract_strided_slice %37 {offsets = [0, 0], sizes = [1, 512], strides = [1, 1]} : vector<1x768xf32> to vector<1x512xf32>
    %39 = vector.extract_strided_slice %36 {offsets = [0, 0], sizes = [1, 512], strides = [1, 1]} : vector<1x768xf32> to vector<1x512xf32>
    %40 = arith.addf %38, %39 : vector<1x512xf32>
    %41 = arith.negf %40 : vector<1x512xf32>
    %42 = math.exp %41 : vector<1x512xf32>
    %cst_22 = arith.constant 1.000000e+00 : f32
    %43 = vector.broadcast %cst_22 : f32 to vector<1x512xf32>
    %44 = arith.addf %43, %42 : vector<1x512xf32>
    %45 = arith.divf %43, %44 : vector<1x512xf32>
    %46 = vector.extract_strided_slice %45 {offsets = [0, 0], sizes = [1, 256], strides = [1, 1]} : vector<1x512xf32> to vector<1x256xf32>
    %47 = vector.extract_strided_slice %45 {offsets = [0, 256], sizes = [1, 256], strides = [1, 1]} : vector<1x512xf32> to vector<1x256xf32>
    %48 = vector.extract_strided_slice %37 {offsets = [0, 512], sizes = [1, 256], strides = [1, 1]} : vector<1x768xf32> to vector<1x256xf32>
    %49 = vector.extract_strided_slice %36 {offsets = [0, 512], sizes = [1, 256], strides = [1, 1]} : vector<1x768xf32> to vector<1x256xf32>
    %50 = arith.addf %49, %8 : vector<1x256xf32>
    %51 = arith.mulf %46, %50 : vector<1x256xf32>
    %52 = arith.addf %48, %51 : vector<1x256xf32>
    %53 = math.tanh %52 : vector<1x256xf32>
    %cst_23 = arith.constant 1.000000e+00 : f32
    %54 = vector.broadcast %cst_23 : f32 to vector<1x256xf32>
    %55 = arith.subf %54, %47 : vector<1x256xf32>
    %56 = arith.mulf %55, %53 : vector<1x256xf32>
    %57 = arith.mulf %47, %33 : vector<1x256xf32>
    %58 = arith.addf %56, %57 : vector<1x256xf32>
    %c1_24 = arith.constant 1 : index
    %c0_25 = arith.constant 0 : index
    %59 = vector.load %arg7[%c1_24, %c0_25] : memref<8x256xf32, #tpu.memory_space<vmem>>, vector<1x256xf32>
    tpu.vector_store %arg7[%c1_24, %c0_25], %58 {strides = array<i32>} : memref<8x256xf32, #tpu.memory_space<vmem>>, vector<1x256xf32>,
    %60 = arith.truncf %58 : vector<1x256xf32> to vector<1x256xbf16>
    %cst_26 = arith.constant dense<0.000000e+00> : vector<1x768xf32>
    %61 = tpu.matmul %60, %7, %cst_26 {dimension_numbers = #tpu.dot_dimension_numbers<[1], [0], [0], [1], [0, 0, 1, 1], [], []>} : vector<1x256xbf16>, vector<256x768xbf16>, vector<1x768xf32> -> vector<1x768xf32>
    %c2 = arith.constant 2 : index
    %c0_27 = arith.constant 0 : index
    %62 = vector.load %arg8[%c2, %c0_27] : memref<8x768xf32, #tpu.memory_space<vmem>>, vector<1x768xf32>
    %63 = vector.extract_strided_slice %62 {offsets = [0, 0], sizes = [1, 512], strides = [1, 1]} : vector<1x768xf32> to vector<1x512xf32>
    %64 = vector.extract_strided_slice %61 {offsets = [0, 0], sizes = [1, 512], strides = [1, 1]} : vector<1x768xf32> to vector<1x512xf32>
    %65 = arith.addf %63, %64 : vector<1x512xf32>
    %66 = arith.negf %65 : vector<1x512xf32>
    %67 = math.exp %66 : vector<1x512xf32>
    %cst_28 = arith.constant 1.000000e+00 : f32
    %68 = vector.broadcast %cst_28 : f32 to vector<1x512xf32>
    %69 = arith.addf %68, %67 : vector<1x512xf32>
    %70 = arith.divf %68, %69 : vector<1x512xf32>
    %71 = vector.extract_strided_slice %70 {offsets = [0, 0], sizes = [1, 256], strides = [1, 1]} : vector<1x512xf32> to vector<1x256xf32>
    %72 = vector.extract_strided_slice %70 {offsets = [0, 256], sizes = [1, 256], strides = [1, 1]} : vector<1x512xf32> to vector<1x256xf32>
    %73 = vector.extract_strided_slice %62 {offsets = [0, 512], sizes = [1, 256], strides = [1, 1]} : vector<1x768xf32> to vector<1x256xf32>
    %74 = vector.extract_strided_slice %61 {offsets = [0, 512], sizes = [1, 256], strides = [1, 1]} : vector<1x768xf32> to vector<1x256xf32>
    %75 = arith.addf %74, %8 : vector<1x256xf32>
    %76 = arith.mulf %71, %75 : vector<1x256xf32>
    %77 = arith.addf %73, %76 : vector<1x256xf32>
    %78 = math.tanh %77 : vector<1x256xf32>
    %cst_29 = arith.constant 1.000000e+00 : f32
    %79 = vector.broadcast %cst_29 : f32 to vector<1x256xf32>
    %80 = arith.subf %79, %72 : vector<1x256xf32>
    %81 = arith.mulf %80, %78 : vector<1x256xf32>
    %82 = arith.mulf %72, %58 : vector<1x256xf32>
    %83 = arith.addf %81, %82 : vector<1x256xf32>
    %c2_30 = arith.constant 2 : index
    %c0_31 = arith.constant 0 : index
    %84 = vector.load %arg7[%c2_30, %c0_31] : memref<8x256xf32, #tpu.memory_space<vmem>>, vector<1x256xf32>
    tpu.vector_store %arg7[%c2_30, %c0_31], %83 {strides = array<i32>} : memref<8x256xf32, #tpu.memory_space<vmem>>, vector<1x256xf32>,
    %85 = arith.truncf %83 : vector<1x256xf32> to vector<1x256xbf16>
    %cst_32 = arith.constant dense<0.000000e+00> : vector<1x768xf32>
    %86 = tpu.matmul %85, %7, %cst_32 {dimension_numbers = #tpu.dot_dimension_numbers<[1], [0], [0], [1], [0, 0, 1, 1], [], []>} : vector<1x256xbf16>, vector<256x768xbf16>, vector<1x768xf32> -> vector<1x768xf32>
    %c3 = arith.constant 3 : index
    %c0_33 = arith.constant 0 : index
    %87 = vector.load %arg8[%c3, %c0_33] : memref<8x768xf32, #tpu.memory_space<vmem>>, vector<1x768xf32>
    %88 = vector.extract_strided_slice %87 {offsets = [0, 0], sizes = [1, 512], strides = [1, 1]} : vector<1x768xf32> to vector<1x512xf32>
    %89 = vector.extract_strided_slice %86 {offsets = [0, 0], sizes = [1, 512], strides = [1, 1]} : vector<1x768xf32> to vector<1x512xf32>
    %90 = arith.addf %88, %89 : vector<1x512xf32>
    %91 = arith.negf %90 : vector<1x512xf32>
    %92 = math.exp %91 : vector<1x512xf32>
    %cst_34 = arith.constant 1.000000e+00 : f32
    %93 = vector.broadcast %cst_34 : f32 to vector<1x512xf32>
    %94 = arith.addf %93, %92 : vector<1x512xf32>
    %95 = arith.divf %93, %94 : vector<1x512xf32>
    %96 = vector.extract_strided_slice %95 {offsets = [0, 0], sizes = [1, 256], strides = [1, 1]} : vector<1x512xf32> to vector<1x256xf32>
    %97 = vector.extract_strided_slice %95 {offsets = [0, 256], sizes = [1, 256], strides = [1, 1]} : vector<1x512xf32> to vector<1x256xf32>
    %98 = vector.extract_strided_slice %87 {offsets = [0, 512], sizes = [1, 256], strides = [1, 1]} : vector<1x768xf32> to vector<1x256xf32>
    %99 = vector.extract_strided_slice %86 {offsets = [0, 512], sizes = [1, 256], strides = [1, 1]} : vector<1x768xf32> to vector<1x256xf32>
    %100 = arith.addf %99, %8 : vector<1x256xf32>
    %101 = arith.mulf %96, %100 : vector<1x256xf32>
    %102 = arith.addf %98, %101 : vector<1x256xf32>
    %103 = math.tanh %102 : vector<1x256xf32>
    %cst_35 = arith.constant 1.000000e+00 : f32
    %104 = vector.broadcast %cst_35 : f32 to vector<1x256xf32>
    %105 = arith.subf %104, %97 : vector<1x256xf32>
    %106 = arith.mulf %105, %103 : vector<1x256xf32>
    %107 = arith.mulf %97, %83 : vector<1x256xf32>
    %108 = arith.addf %106, %107 : vector<1x256xf32>
    %c3_36 = arith.constant 3 : index
    %c0_37 = arith.constant 0 : index
    %109 = vector.load %arg7[%c3_36, %c0_37] : memref<8x256xf32, #tpu.memory_space<vmem>>, vector<1x256xf32>
    tpu.vector_store %arg7[%c3_36, %c0_37], %108 {strides = array<i32>} : memref<8x256xf32, #tpu.memory_space<vmem>>, vector<1x256xf32>,
    %110 = arith.truncf %108 : vector<1x256xf32> to vector<1x256xbf16>
    %cst_38 = arith.constant dense<0.000000e+00> : vector<1x768xf32>
    %111 = tpu.matmul %110, %7, %cst_38 {dimension_numbers = #tpu.dot_dimension_numbers<[1], [0], [0], [1], [0, 0, 1, 1], [], []>} : vector<1x256xbf16>, vector<256x768xbf16>, vector<1x768xf32> -> vector<1x768xf32>
    %c4 = arith.constant 4 : index
    %c0_39 = arith.constant 0 : index
    %112 = vector.load %arg8[%c4, %c0_39] : memref<8x768xf32, #tpu.memory_space<vmem>>, vector<1x768xf32>
    %113 = vector.extract_strided_slice %112 {offsets = [0, 0], sizes = [1, 512], strides = [1, 1]} : vector<1x768xf32> to vector<1x512xf32>
    %114 = vector.extract_strided_slice %111 {offsets = [0, 0], sizes = [1, 512], strides = [1, 1]} : vector<1x768xf32> to vector<1x512xf32>
    %115 = arith.addf %113, %114 : vector<1x512xf32>
    %116 = arith.negf %115 : vector<1x512xf32>
    %117 = math.exp %116 : vector<1x512xf32>
    %cst_40 = arith.constant 1.000000e+00 : f32
    %118 = vector.broadcast %cst_40 : f32 to vector<1x512xf32>
    %119 = arith.addf %118, %117 : vector<1x512xf32>
    %120 = arith.divf %118, %119 : vector<1x512xf32>
    %121 = vector.extract_strided_slice %120 {offsets = [0, 0], sizes = [1, 256], strides = [1, 1]} : vector<1x512xf32> to vector<1x256xf32>
    %122 = vector.extract_strided_slice %120 {offsets = [0, 256], sizes = [1, 256], strides = [1, 1]} : vector<1x512xf32> to vector<1x256xf32>
    %123 = vector.extract_strided_slice %112 {offsets = [0, 512], sizes = [1, 256], strides = [1, 1]} : vector<1x768xf32> to vector<1x256xf32>
    %124 = vector.extract_strided_slice %111 {offsets = [0, 512], sizes = [1, 256], strides = [1, 1]} : vector<1x768xf32> to vector<1x256xf32>
    %125 = arith.addf %124, %8 : vector<1x256xf32>
    %126 = arith.mulf %121, %125 : vector<1x256xf32>
    %127 = arith.addf %123, %126 : vector<1x256xf32>
    %128 = math.tanh %127 : vector<1x256xf32>
    %cst_41 = arith.constant 1.000000e+00 : f32
    %129 = vector.broadcast %cst_41 : f32 to vector<1x256xf32>
    %130 = arith.subf %129, %122 : vector<1x256xf32>
    %131 = arith.mulf %130, %128 : vector<1x256xf32>
    %132 = arith.mulf %122, %108 : vector<1x256xf32>
    %133 = arith.addf %131, %132 : vector<1x256xf32>
    %c4_42 = arith.constant 4 : index
    %c0_43 = arith.constant 0 : index
    %134 = vector.load %arg7[%c4_42, %c0_43] : memref<8x256xf32, #tpu.memory_space<vmem>>, vector<1x256xf32>
    tpu.vector_store %arg7[%c4_42, %c0_43], %133 {strides = array<i32>} : memref<8x256xf32, #tpu.memory_space<vmem>>, vector<1x256xf32>,
    %135 = arith.truncf %133 : vector<1x256xf32> to vector<1x256xbf16>
    %cst_44 = arith.constant dense<0.000000e+00> : vector<1x768xf32>
    %136 = tpu.matmul %135, %7, %cst_44 {dimension_numbers = #tpu.dot_dimension_numbers<[1], [0], [0], [1], [0, 0, 1, 1], [], []>} : vector<1x256xbf16>, vector<256x768xbf16>, vector<1x768xf32> -> vector<1x768xf32>
    %c5 = arith.constant 5 : index
    %c0_45 = arith.constant 0 : index
    %137 = vector.load %arg8[%c5, %c0_45] : memref<8x768xf32, #tpu.memory_space<vmem>>, vector<1x768xf32>
    %138 = vector.extract_strided_slice %137 {offsets = [0, 0], sizes = [1, 512], strides = [1, 1]} : vector<1x768xf32> to vector<1x512xf32>
    %139 = vector.extract_strided_slice %136 {offsets = [0, 0], sizes = [1, 512], strides = [1, 1]} : vector<1x768xf32> to vector<1x512xf32>
    %140 = arith.addf %138, %139 : vector<1x512xf32>
    %141 = arith.negf %140 : vector<1x512xf32>
    %142 = math.exp %141 : vector<1x512xf32>
    %cst_46 = arith.constant 1.000000e+00 : f32
    %143 = vector.broadcast %cst_46 : f32 to vector<1x512xf32>
    %144 = arith.addf %143, %142 : vector<1x512xf32>
    %145 = arith.divf %143, %144 : vector<1x512xf32>
    %146 = vector.extract_strided_slice %145 {offsets = [0, 0], sizes = [1, 256], strides = [1, 1]} : vector<1x512xf32> to vector<1x256xf32>
    %147 = vector.extract_strided_slice %145 {offsets = [0, 256], sizes = [1, 256], strides = [1, 1]} : vector<1x512xf32> to vector<1x256xf32>
    %148 = vector.extract_strided_slice %137 {offsets = [0, 512], sizes = [1, 256], strides = [1, 1]} : vector<1x768xf32> to vector<1x256xf32>
    %149 = vector.extract_strided_slice %136 {offsets = [0, 512], sizes = [1, 256], strides = [1, 1]} : vector<1x768xf32> to vector<1x256xf32>
    %150 = arith.addf %149, %8 : vector<1x256xf32>
    %151 = arith.mulf %146, %150 : vector<1x256xf32>
    %152 = arith.addf %148, %151 : vector<1x256xf32>
    %153 = math.tanh %152 : vector<1x256xf32>
    %cst_47 = arith.constant 1.000000e+00 : f32
    %154 = vector.broadcast %cst_47 : f32 to vector<1x256xf32>
    %155 = arith.subf %154, %147 : vector<1x256xf32>
    %156 = arith.mulf %155, %153 : vector<1x256xf32>
    %157 = arith.mulf %147, %133 : vector<1x256xf32>
    %158 = arith.addf %156, %157 : vector<1x256xf32>
    %c5_48 = arith.constant 5 : index
    %c0_49 = arith.constant 0 : index
    %159 = vector.load %arg7[%c5_48, %c0_49] : memref<8x256xf32, #tpu.memory_space<vmem>>, vector<1x256xf32>
    tpu.vector_store %arg7[%c5_48, %c0_49], %158 {strides = array<i32>} : memref<8x256xf32, #tpu.memory_space<vmem>>, vector<1x256xf32>,
    %160 = arith.truncf %158 : vector<1x256xf32> to vector<1x256xbf16>
    %cst_50 = arith.constant dense<0.000000e+00> : vector<1x768xf32>
    %161 = tpu.matmul %160, %7, %cst_50 {dimension_numbers = #tpu.dot_dimension_numbers<[1], [0], [0], [1], [0, 0, 1, 1], [], []>} : vector<1x256xbf16>, vector<256x768xbf16>, vector<1x768xf32> -> vector<1x768xf32>
    %c6 = arith.constant 6 : index
    %c0_51 = arith.constant 0 : index
    %162 = vector.load %arg8[%c6, %c0_51] : memref<8x768xf32, #tpu.memory_space<vmem>>, vector<1x768xf32>
    %163 = vector.extract_strided_slice %162 {offsets = [0, 0], sizes = [1, 512], strides = [1, 1]} : vector<1x768xf32> to vector<1x512xf32>
    %164 = vector.extract_strided_slice %161 {offsets = [0, 0], sizes = [1, 512], strides = [1, 1]} : vector<1x768xf32> to vector<1x512xf32>
    %165 = arith.addf %163, %164 : vector<1x512xf32>
    %166 = arith.negf %165 : vector<1x512xf32>
    %167 = math.exp %166 : vector<1x512xf32>
    %cst_52 = arith.constant 1.000000e+00 : f32
    %168 = vector.broadcast %cst_52 : f32 to vector<1x512xf32>
    %169 = arith.addf %168, %167 : vector<1x512xf32>
    %170 = arith.divf %168, %169 : vector<1x512xf32>
    %171 = vector.extract_strided_slice %170 {offsets = [0, 0], sizes = [1, 256], strides = [1, 1]} : vector<1x512xf32> to vector<1x256xf32>
    %172 = vector.extract_strided_slice %170 {offsets = [0, 256], sizes = [1, 256], strides = [1, 1]} : vector<1x512xf32> to vector<1x256xf32>
    %173 = vector.extract_strided_slice %162 {offsets = [0, 512], sizes = [1, 256], strides = [1, 1]} : vector<1x768xf32> to vector<1x256xf32>
    %174 = vector.extract_strided_slice %161 {offsets = [0, 512], sizes = [1, 256], strides = [1, 1]} : vector<1x768xf32> to vector<1x256xf32>
    %175 = arith.addf %174, %8 : vector<1x256xf32>
    %176 = arith.mulf %171, %175 : vector<1x256xf32>
    %177 = arith.addf %173, %176 : vector<1x256xf32>
    %178 = math.tanh %177 : vector<1x256xf32>
    %cst_53 = arith.constant 1.000000e+00 : f32
    %179 = vector.broadcast %cst_53 : f32 to vector<1x256xf32>
    %180 = arith.subf %179, %172 : vector<1x256xf32>
    %181 = arith.mulf %180, %178 : vector<1x256xf32>
    %182 = arith.mulf %172, %158 : vector<1x256xf32>
    %183 = arith.addf %181, %182 : vector<1x256xf32>
    %c6_54 = arith.constant 6 : index
    %c0_55 = arith.constant 0 : index
    %184 = vector.load %arg7[%c6_54, %c0_55] : memref<8x256xf32, #tpu.memory_space<vmem>>, vector<1x256xf32>
    tpu.vector_store %arg7[%c6_54, %c0_55], %183 {strides = array<i32>} : memref<8x256xf32, #tpu.memory_space<vmem>>, vector<1x256xf32>,
    %185 = arith.truncf %183 : vector<1x256xf32> to vector<1x256xbf16>
    %cst_56 = arith.constant dense<0.000000e+00> : vector<1x768xf32>
    %186 = tpu.matmul %185, %7, %cst_56 {dimension_numbers = #tpu.dot_dimension_numbers<[1], [0], [0], [1], [0, 0, 1, 1], [], []>} : vector<1x256xbf16>, vector<256x768xbf16>, vector<1x768xf32> -> vector<1x768xf32>
    %c7 = arith.constant 7 : index
    %c0_57 = arith.constant 0 : index
    %187 = vector.load %arg8[%c7, %c0_57] : memref<8x768xf32, #tpu.memory_space<vmem>>, vector<1x768xf32>
    %188 = vector.extract_strided_slice %187 {offsets = [0, 0], sizes = [1, 512], strides = [1, 1]} : vector<1x768xf32> to vector<1x512xf32>
    %189 = vector.extract_strided_slice %186 {offsets = [0, 0], sizes = [1, 512], strides = [1, 1]} : vector<1x768xf32> to vector<1x512xf32>
    %190 = arith.addf %188, %189 : vector<1x512xf32>
    %191 = arith.negf %190 : vector<1x512xf32>
    %192 = math.exp %191 : vector<1x512xf32>
    %cst_58 = arith.constant 1.000000e+00 : f32
    %193 = vector.broadcast %cst_58 : f32 to vector<1x512xf32>
    %194 = arith.addf %193, %192 : vector<1x512xf32>
    %195 = arith.divf %193, %194 : vector<1x512xf32>
    %196 = vector.extract_strided_slice %195 {offsets = [0, 0], sizes = [1, 256], strides = [1, 1]} : vector<1x512xf32> to vector<1x256xf32>
    %197 = vector.extract_strided_slice %195 {offsets = [0, 256], sizes = [1, 256], strides = [1, 1]} : vector<1x512xf32> to vector<1x256xf32>
    %198 = vector.extract_strided_slice %187 {offsets = [0, 512], sizes = [1, 256], strides = [1, 1]} : vector<1x768xf32> to vector<1x256xf32>
    %199 = vector.extract_strided_slice %186 {offsets = [0, 512], sizes = [1, 256], strides = [1, 1]} : vector<1x768xf32> to vector<1x256xf32>
    %200 = arith.addf %199, %8 : vector<1x256xf32>
    %201 = arith.mulf %196, %200 : vector<1x256xf32>
    %202 = arith.addf %198, %201 : vector<1x256xf32>
    %203 = math.tanh %202 : vector<1x256xf32>
    %cst_59 = arith.constant 1.000000e+00 : f32
    %204 = vector.broadcast %cst_59 : f32 to vector<1x256xf32>
    %205 = arith.subf %204, %197 : vector<1x256xf32>
    %206 = arith.mulf %205, %203 : vector<1x256xf32>
    %207 = arith.mulf %197, %183 : vector<1x256xf32>
    %208 = arith.addf %206, %207 : vector<1x256xf32>
    %c7_60 = arith.constant 7 : index
    %c0_61 = arith.constant 0 : index
    %209 = vector.load %arg7[%c7_60, %c0_61] : memref<8x256xf32, #tpu.memory_space<vmem>>, vector<1x256xf32>
    tpu.vector_store %arg7[%c7_60, %c0_61], %208 {strides = array<i32>} : memref<8x256xf32, #tpu.memory_space<vmem>>, vector<1x256xf32>,
    return
  }
  func.func @transform_0(%arg0: i32) -> (i32, i32) {
    %c0_i32 = arith.constant 0 : i32
    %c0_i32_0 = arith.constant 0 : i32
    %c0_i32_1 = arith.constant 0 : i32
    return %c0_i32, %c0_i32_0 : i32, i32
  }
  func.func @transform_1(%arg0: i32) -> (i32, i32) {
    %c0_i32 = arith.constant 0 : i32
    %c0_i32_0 = arith.constant 0 : i32
    %c0_i32_1 = arith.constant 0 : i32
    return %c0_i32, %c0_i32_0 : i32, i32
  }
  func.func @transform_2(%arg0: i32) -> (i32, i32) {
    %c0_i32 = arith.constant 0 : i32
    %c0_i32_0 = arith.constant 0 : i32
    %c0_i32_1 = arith.constant 0 : i32
    return %c0_i32, %c0_i32_0 : i32, i32
  }
  func.func @transform_3(%arg0: i32) -> (i32, i32) {
    %c0_i32 = arith.constant 0 : i32
    %c0_i32_0 = arith.constant 0 : i32
    %c0_i32_1 = arith.constant 0 : i32
    return %c0_i32, %c0_i32_0 : i32, i32
  }
  func.func @transform_4(%arg0: i32) -> (i32, i32) {
    %c0_i32 = arith.constant 0 : i32
    %c0_i32_0 = arith.constant 0 : i32
    %c0_i32_1 = arith.constant 0 : i32
    return %c0_i32, %c0_i32_0 : i32, i32
  }
  func.func @transform_5(%arg0: i32) -> (i32, i32) {
    %c0_i32 = arith.constant 0 : i32
    %c0_i32_0 = arith.constant 0 : i32
    %c0_i32_1 = arith.constant 0 : i32
    return %c0_i32, %c0_i32_0 : i32, i32
  }
  func.func @transform_6(%arg0: i32) -> (i32, i32) {
    %c0_i32 = arith.constant 0 : i32
    %c0_i32_0 = arith.constant 0 : i32
    %c0_i32_1 = arith.constant 0 : i32
    return %c0_i32, %c0_i32_0 : i32, i32
  }
}

</mosaic_0001>

<bundles_post_ra>
// kernel: encoder_rnn_forward_seq.1
= control target key start
LH: loop header
LB: loop body
LE: loop exit
PB: predicated region body
PF: predicated region fallthrough
CT: control target
= control target key end

     0   :  { %11 = vsyncpa [#allocation4], 0  ;;  %s4816_s0 = inlined_call_operand.vmem [shape: bf16[8,128], index: 0, kind: input, shape index: {}]   ;;  %s4817_s1 = inlined_call_operand.vmem [shape: f32[1,256], index: 1, kind: input, shape index: {}]   ;;  %s4818_s2 = inlined_call_operand.hbm [shape: bf16[128,768], index: 2, kind: input, shape index: {}]   ;;  %s4819_s3 = inlined_call_operand.vmem [shape: f32[1,768], index: 3, kind: input, shape index: {}]   ;;  %s4820_s4 = inlined_call_operand.hbm [shape: bf16[256,768], index: 4, kind: input, shape index: {}]   ;;  %s4821_s5 = inlined_call_operand.vmem [shape: f32[1,256], index: 5, kind: input, shape index: {}]   ;;  %s4822_s6 = inlined_call_operand.vmem [shape: f32[8,256], index: 6, kind: output, shape index: {}]  }
   0x1   :  { %12 = vsyncpa [#allocation6], 0  ;;  %s3438_s21 = smov [#allocation3]  }
   0x2   :  { %s22_s22 = sshll.u32 %s3438_s21, 4  ;;  %s23_s22 = int_to_ptr.vmem [resolvable:$true] %s22_s22 }
   0x3   :  { %s3402_s23 = scalar_lea.vmem %s23_s22, 6144  ;;  %p3407_p1 = scmp.lt.s32.totalorder %s23_s22, %s23_s22 }
   0x4   :  { %p3403_p0 = scmp.ne.s32.totalorder %s23_s22, %s3402_s23  ;;  %p3408_p2 = scmp.lt.s32.totalorder %s3402_s23, %s3402_s23 }
   0x6   :  { %p3409_p3 = por %p3408_p2, %p3407_p1 }
   0x8   :  { %p3410_p4 = pnand %p3409_p3, %p3403_p0 }
   0xa   :  { %3413 = shalt.err (!%p3410_p4)
}
   0xb   :  { %s3439_s24 = smov 384   ;;  %s3440_s25 = smov 24  }
   0xc   :  { %28 = dma.hbm_to_vmem [thread:$0]  %s4818_s2, 6144, %s23_s22, [#allocation4], %s3439_s24, %s3439_s24, %s3440_s25  }
   0xd   :  { %s3441_s28 = smov [#allocation5]  }
   0xe   :  { %s36_s29 = sshll.u32 %s3441_s28, 4  ;;  %s37_s29 = int_to_ptr.vmem [resolvable:$true] %s36_s29 }
   0xf   :  { %s3422_s30 = scalar_lea.vmem %s37_s29, 12288  ;;  %p3427_p6 = scmp.lt.s32.totalorder %s37_s29, %s37_s29 }
  0x10   :  { %p3423_p5 = scmp.ne.s32.totalorder %s37_s29, %s3422_s30  ;;  %p3428_p7 = scmp.lt.s32.totalorder %s3422_s30, %s3422_s30 }
  0x12   :  { %p3429_p8 = por %p3428_p7, %p3427_p6 }
  0x14   :  { %p3430_p9 = pnand %p3429_p8, %p3423_p5 }
  0x16   :  { %3433 = shalt.err (!%p3430_p9)
}
  0x17   :  { %42 = dma.hbm_to_vmem [thread:$0]  %s4820_s4, 12288, %s37_s29, [#allocation6], %s3439_s24, %s3439_s24, %s3440_s25  }
  0x18   :  { %3434 = dma.done.wait [#allocation4], 6144  }
  0x19   :  { %3435 = vsyncadd [#allocation4], 4294961152 }
  0x1a   :  { %3436 = dma.done.wait [#allocation6], 12288  }
  0x1b   :  { %3437 = vsyncadd [#allocation6], 4294955008  ;;  %v3442_v0 = vmov 0   ;;  %v2960_v1 = vld [vmem:[#allocation3 + $0x154] ss:$24 sps:$4 sm:$0xff]   ;;  %v4823_v60 = vlaneseq }
  0x1c   :  { %405 = vmatprep.mubr.bf16.mxu0 %v3442_v0  ;;  %446 = vmatprep.mubr.bf16.mxu1 %v3442_v0  ;;  %v2962_v2 = vld [vmem:[#allocation3 + $0x15c] ss:$24 sps:$4 sm:$0xff]   ;;  %v2964_v3 = vld [vmem:[#allocation3 + $0x150] ss:$24 sps:$4 sm:$0xff]   ;;  %v2968_v6 = vld [vmem:[#allocation3 + $0x12c] ss:$24 sps:$4 sm:$0xff]  }
  0x1d   :  { %373 = vmatprep.subr.bf16.mxu0 %v2960_v1  ;;  %v2965_v4 = vld [vmem:[#allocation3 + $0x158] ss:$24 sps:$4 sm:$0xff]   ;;  %414 = vmatprep.subr.bf16.mxu1 %v2962_v2  ;;  %v2966_v5 = vld [vmem:[#allocation3 + $0x124] ss:$24 sps:$4 sm:$0xff]   ;;  %v2971_v8 = vld [vmem:[#allocation3 + $0x128] ss:$24 sps:$4 sm:$0xff]  }
  0x1e   :  { %374 = vmatpush1.bf16.msra.mxu0 %v2964_v3  ;;  %415 = vmatpush1.bf16.msra.mxu1 %v2965_v4  ;;  %v2970_v7 = vld [vmem:[#allocation3 + $0x120] ss:$24 sps:$4 sm:$0xff]   ;;  %v2972_v9 = vld [vmem:[#allocation3 + $0xf4] ss:$24 sps:$4 sm:$0xff]   ;;  %v2976_v11 = vld [vmem:[#allocation3 + $0xf0] ss:$24 sps:$4 sm:$0xff]  }
  0x1f   :  { %375 = vmatprep.subr.bf16.mxu0 %v2966_v5  ;;  %416 = vmatprep.subr.bf16.mxu1 %v2968_v6  ;;  %v2974_v10 = vld [vmem:[#allocation3 + $0xfc] ss:$24 sps:$4 sm:$0xff]   ;;  %v2977_v12 = vld [vmem:[#allocation3 + $0xf8] ss:$24 sps:$4 sm:$0xff]   ;;  %v2980_v14 = vld [vmem:[#allocation3 + $0xcc] ss:$24 sps:$4 sm:$0xff]  }
  0x20   :  { %v2978_v13 = vld [vmem:[#allocation3 + $0xc4] ss:$24 sps:$4 sm:$0xff]   ;;  %v2982_v15 = vld [vmem:[#allocation3 + $0xc0] ss:$24 sps:$4 sm:$0xff]   ;;  %v2984_v17 = vld [vmem:[#allocation3 + $0x94] ss:$24 sps:$4 sm:$0xff]  }
  0x21   :  { %v2983_v16 = vld [vmem:[#allocation3 + $0xc8] ss:$24 sps:$4 sm:$0xff]   ;;  %v2986_v18 = vld [vmem:[#allocation3 + $0x9c] ss:$24 sps:$4 sm:$0xff]   ;;  %v2989_v20 = vld [vmem:[#allocation3 + $0x98] ss:$24 sps:$4 sm:$0xff]  }
  0x22   :  { %376 = vmatpush1.bf16.msra.mxu0 %v2970_v7  ;;  %417 = vmatpush1.bf16.msra.mxu1 %v2971_v8  ;;  %v2988_v19 = vld [vmem:[#allocation3 + $0x90] ss:$24 sps:$4 sm:$0xff]   ;;  %v2990_v21 = vld [vmem:[#allocation3 + $0x64] ss:$24 sps:$4 sm:$0xff]   ;;  %v2994_v23 = vld [vmem:[#allocation3 + $0x60] ss:$24 sps:$4 sm:$0xff]  }
  0x23   :  { %377 = vmatprep.subr.bf16.mxu0 %v2972_v9  ;;  %418 = vmatprep.subr.bf16.mxu1 %v2974_v10  ;;  %v2992_v22 = vld [vmem:[#allocation3 + $0x6c] ss:$24 sps:$4 sm:$0xff]   ;;  %v2995_v24 = vld [vmem:[#allocation3 + $0x68] ss:$24 sps:$4 sm:$0xff]   ;;  %v2998_v26 = vld [vmem:[#allocation3 + $0x3c] ss:$24 sps:$4 sm:$0xff]  }
  0x24   :  { %v2996_v25 = vld [vmem:[#allocation3 + $0x34] ss:$24 sps:$4 sm:$0xff]   ;;  %v3000_v27 = vld [vmem:[#allocation3 + $0x30] ss:$24 sps:$4 sm:$0xff]   ;;  %v3002_v29 = vld [vmem:[#allocation3 + $0x4] ss:$24 sps:$4 sm:$0xff]  }
  0x25   :  { %v3001_v28 = vld [vmem:[#allocation3 + $0x38] ss:$24 sps:$4 sm:$0xff]   ;;  %v3004_v30 = vld [vmem:[#allocation3 + $0xc] ss:$24 sps:$4 sm:$0xff]   ;;  %v3007_v32 = vld [vmem:[#allocation3 + $0x8] ss:$24 sps:$4 sm:$0xff]  }
  0x26   :  { %378 = vmatpush1.bf16.msra.mxu0 %v2976_v11  ;;  %419 = vmatpush1.bf16.msra.mxu1 %v2977_v12  ;;  %v3006_v31 = vld [vmem:[#allocation3] ss:$24 sps:$4 sm:$0xff]   ;;  %v3010_v33 = vld [vmem:[#allocation3 + $0x164] ss:$24 sps:$4 sm:$0xff]   ;;  %v3487_v34 = vld [vmem:[#allocation5 + $0x154] ss:$24 sps:$4 sm:$0xff]  }
  0x27   :  { %379 = vmatprep.subr.bf16.mxu0 %v2978_v13  ;;  %420 = vmatprep.subr.bf16.mxu1 %v2980_v14  ;;  %v3492_v35 = vld [vmem:[%s4816_s0] sm:$0xf]  ;;  %v3008_v36 = vld [vmem:[#allocation3 + $0x160] ss:$24 sps:$4 sm:$0xff]   ;;  %v3016_v38 = vld [vmem:[#allocation3 + $0x134] ss:$24 sps:$4 sm:$0xff]  }
  0x28   :  { %v3494_v37 = vld [vmem:[#allocation5 + $0x150] ss:$24 sps:$4 sm:$0xff]   ;;  %v3497_v39 = vld [vmem:[#allocation5 + $0x124] ss:$24 sps:$4 sm:$0xff]   ;;  %v3502_v41 = vld [vmem:[#allocation5 + $0x120] ss:$24 sps:$4 sm:$0xff]  }
  0x29   :  { %v3014_v40 = vld [vmem:[#allocation3 + $0x130] ss:$24 sps:$4 sm:$0xff]   ;;  %v3022_v42 = vld [vmem:[#allocation3 + $0x104] ss:$24 sps:$4 sm:$0xff]   ;;  %v3505_v43 = vld [vmem:[#allocation5 + $0xf4] ss:$24 sps:$4 sm:$0xff]  }
  0x2a   :  { %380 = vmatpush1.bf16.msra.mxu0 %v2982_v15  ;;  %421 = vmatpush1.bf16.msra.mxu1 %v2983_v16  ;;  %v3020_v44 = vld [vmem:[#allocation3 + $0x100] ss:$24 sps:$4 sm:$0xff]   ;;  %v3509_v45 = vld [vmem:[#allocation5 + $0xf0] ss:$24 sps:$4 sm:$0xff]   ;;  %v3028_v46 = vld [vmem:[#allocation3 + $0xd4] ss:$24 sps:$4 sm:$0xff]  }
  0x2b   :  { %381 = vmatprep.subr.bf16.mxu0 %v2984_v17  ;;  %422 = vmatprep.subr.bf16.mxu1 %v2986_v18  ;;  %v3512_v47 = vld [vmem:[#allocation5 + $0xc4] ss:$24 sps:$4 sm:$0xff]   ;;  %v3026_v48 = vld [vmem:[#allocation3 + $0xd0] ss:$24 sps:$4 sm:$0xff]   ;;  %v3515_v49 = vld [vmem:[#allocation5 + $0xc0] ss:$24 sps:$4 sm:$0xff]  }
  0x2c   :  { %v3034_v50 = vld [vmem:[#allocation3 + $0xa4] ss:$24 sps:$4 sm:$0xff]   ;;  %v3518_v51 = vld [vmem:[#allocation5 + $0x94] ss:$24 sps:$4 sm:$0xff]   ;;  %v3032_v52 = vld [vmem:[#allocation3 + $0xa0] ss:$24 sps:$4 sm:$0xff]  }
  0x2d   :  { %v3520_v53 = vld [vmem:[#allocation5 + $0x90] ss:$24 sps:$4 sm:$0xff]   ;;  %v3040_v54 = vld [vmem:[#allocation3 + $0x74] ss:$24 sps:$4 sm:$0xff]   ;;  %v3524_v55 = vld [vmem:[#allocation5 + $0x64] ss:$24 sps:$4 sm:$0xff]  }
  0x2e   :  { %382 = vmatpush1.bf16.msra.mxu0 %v2988_v19  ;;  %423 = vmatpush1.bf16.msra.mxu1 %v2989_v20  ;;  %v3038_v56 = vld [vmem:[#allocation3 + $0x70] ss:$24 sps:$4 sm:$0xff]   ;;  %v3527_v57 = vld [vmem:[#allocation5 + $0x60] ss:$24 sps:$4 sm:$0xff]   ;;  %v3046_v58 = vld [vmem:[#allocation3 + $0x44] ss:$24 sps:$4 sm:$0xff]  }
  0x2f   :  { %383 = vmatprep.subr.bf16.mxu0 %v2990_v21  ;;  %424 = vmatprep.subr.bf16.mxu1 %v2992_v22  ;;  %v3530_v59 = vld [vmem:[#allocation5 + $0x34] ss:$24 sps:$4 sm:$0xff]   ;;  %v3044_v61 = vld [vmem:[#allocation3 + $0x40] ss:$24 sps:$4 sm:$0xff]   ;;  %v3532_v62 = vld [vmem:[#allocation5 + $0x30] ss:$24 sps:$4 sm:$0xff]  }
  0x30   :  { %v3052_v63 = vld [vmem:[#allocation3 + $0x14] ss:$24 sps:$4 sm:$0xff]   ;;  %v3539_v1 = vshrl.u32 %v4823_v60, 7  ;;  %v3050_v2 = vld [vmem:[#allocation3 + $0x10] ss:$24 sps:$4 sm:$0xff]  }
  0x31   :  { %v3542_v3 = vld [vmem:[#allocation5] ss:$24 sps:$4 sm:$0xff]   ;;  %v3545_v4 = vld [vmem:[#allocation5 + $0x2d4] ss:$24 sps:$4 sm:$0xff]   ;;  %v3552_v7 = vld [vmem:[#allocation5 + $0x2d0] ss:$24 sps:$4 sm:$0xff]  }
  0x32   :  { %384 = vmatpush1.bf16.msra.mxu0 %v2994_v23  ;;  %425 = vmatpush1.bf16.msra.mxu1 %v2995_v24  ;;  %5052 = vst [vmem:[#allocation9_spill] sm:$0xff] %v3539_v1  ;;  %v3547_v5 = vld [vmem:[#allocation5 + $0x15c] ss:$24 sps:$4 sm:$0xff]   ;;  %v3550_v6 = vsub.s32 1, %v3539_v1  ;;  %v3554_v8 = vld [vmem:[#allocation5 + $0x158] ss:$24 sps:$4 sm:$0xff]  }
  0x33   :  { %385 = vmatprep.subr.bf16.mxu0 %v2996_v25  ;;  %426 = vmatprep.subr.bf16.mxu1 %v2998_v26  ;;  %v3557_v9 = vld [vmem:[#allocation5 + $0x2a4] ss:$24 sps:$4 sm:$0xff]   ;;  %v3562_v10 = vld [vmem:[%s4817_s1] sm:$0x3]  ;;  %v3571_v13 = vld [vmem:[#allocation5 + $0x2a0] ss:$24 sps:$4 sm:$0xff]  }
  0x34   :  { %5053 = vst [vmem:[#allocation10_spill] sm:$0xff] %v3550_v6  ;;  %5054 = vst [vmem:[#allocation11_spill] sm:$0xff] %v3562_v10  ;;  %v3566_v11 = vld [vmem:[#allocation5 + $0x12c] ss:$24 sps:$4 sm:$0xff]   ;;  %v608_v12 = vrot.slane %v3562_v10, %v3550_v6  ;;  %v3577_v15 = vld [vmem:[#allocation5 + $0x128] ss:$24 sps:$4 sm:$0xff]  }
  0x35   :  { %5055 = vst [vmem:[#allocation12_spill] sm:$0xff] %v3566_v11  ;;  %5056 = vst [vmem:[#allocation13_spill] sm:$0xff] %v3577_v15  ;;  %v3581_v16 = vld [vmem:[#allocation5 + $0x274] ss:$24 sps:$4 sm:$0xff]   ;;  %v3587_v18 = vld [vmem:[#allocation5 + $0x270] ss:$24 sps:$4 sm:$0xff]  }
  0x36   :  { %386 = vmatpush1.bf16.msra.mxu0 %v3000_v27  ;;  %427 = vmatpush1.bf16.msra.mxu1 %v3001_v28  ;;  %v3573_v14 = vpack.c.bf16 %v608_v12, %v608_v12  ;;  %v3583_v17 = vld [vmem:[#allocation5 + $0xfc] ss:$24 sps:$4 sm:$0xff]   ;;  %v3591_v19 = vld [vmem:[#allocation5 + $0xf8] ss:$24 sps:$4 sm:$0xff]   ;;  %v3597_v21 = vld [vmem:[#allocation5 + $0xcc] ss:$24 sps:$4 sm:$0xff]  }
  0x37   :  { %387 = vmatprep.subr.bf16.mxu0 %v3002_v29  ;;  %428 = vmatprep.subr.bf16.mxu1 %v3004_v30  ;;  %5057 = vst [vmem:[#allocation14_spill] sm:$0xff] %v3583_v17  ;;  %5058 = vst [vmem:[#allocation15_spill] sm:$0xff] %v3591_v19  ;;  %v3593_v20 = vld [vmem:[#allocation5 + $0x244] ss:$24 sps:$4 sm:$0xff]   ;;  %v3599_v22 = vld [vmem:[#allocation5 + $0x240] ss:$24 sps:$4 sm:$0xff]  }
  0x38   :  { %5059 = vst [vmem:[#allocation16_spill] sm:$0xff] %v3597_v21  ;;  %v3603_v23 = vld [vmem:[#allocation5 + $0xc8] ss:$24 sps:$4 sm:$0xff]   ;;  %v3607_v24 = vld [vmem:[#allocation5 + $0x214] ss:$24 sps:$4 sm:$0xff]  }
  0x39   :  { %5060 = vst [vmem:[#allocation17_spill] sm:$0xff] %v3603_v23  ;;  %v3609_v25 = vld [vmem:[#allocation5 + $0x9c] ss:$24 sps:$4 sm:$0xff]   ;;  %v3611_v26 = vld [vmem:[#allocation5 + $0x210] ss:$24 sps:$4 sm:$0xff]  }
  0x3a   :  { %388 = vmatpush1.bf16.msra.mxu0 %v3006_v31  ;;  %429 = vmatpush1.bf16.msra.mxu1 %v3007_v32  ;;  %5061 = vst [vmem:[#allocation18_spill] sm:$0xff] %v3609_v25  ;;  %v3615_v27 = vld [vmem:[#allocation5 + $0x98] ss:$24 sps:$4 sm:$0xff]   ;;  %v3617_v28 = vld [vmem:[#allocation5 + $0x1e4] ss:$24 sps:$4 sm:$0xff]  }
  0x3b   :  { %455 = vmatprep.subr.bf16.mxu0 %v3010_v33  ;;  %1093 = vmatprep.subr.bf16.mxu1 %v3487_v34  ;;  %5062 = vst [vmem:[#allocation19_spill] sm:$0xff] %v3615_v27  ;;  %v3621_v29 = vld [vmem:[#allocation5 + $0x6c] ss:$24 sps:$4 sm:$0xff]   ;;  %v3623_v30 = vld [vmem:[#allocation5 + $0x1e0] ss:$24 sps:$4 sm:$0xff]  }
  0x3c   :  { %5063 = vst [vmem:[#allocation20_spill] sm:$0xff] %v3621_v29  ;;  %v3627_v31 = vld [vmem:[#allocation5 + $0x68] ss:$24 sps:$4 sm:$0xff]   ;;  %v3631_v32 = vld [vmem:[#allocation5 + $0x1b4] ss:$24 sps:$4 sm:$0xff]  }
  0x3d   :  { %406 = vmatmul.mubr.bf16.vlgmr.msra.gmra.mxu0 %v3492_v35  ;;  %447 = vmatmul.mubr.bf16.vlgmr.msra.gmra.mxu1 %v3492_v35  ;;  %5064 = vst [vmem:[#allocation21_spill] sm:$0xff] %v3627_v31  ;;  %v3633_v33 = vld [vmem:[#allocation5 + $0x3c] ss:$24 sps:$4 sm:$0xff]   ;;  %v3683_v12 = vld [vmem:[#allocation5 + $0x130] ss:$24 sps:$4 sm:$0xff]  }
  0x3e   :  { %456 = vmatpush1.bf16.msra.mxu0 %v3008_v36  ;;  %1094 = vmatpush1.bf16.msra.mxu1 %v3494_v37  ;;  %5065 = vst [vmem:[#allocation22_spill] sm:$0xff] %v3633_v33  ;;  %v3640_v36 = vld [vmem:[#allocation5 + $0x1b0] ss:$24 sps:$4 sm:$0xff]   ;;  %5076 = vst [vmem:[#allocation33_spill] sm:$0xff] %v3683_v12  ;;  %v3689_v60 = vld [vmem:[#allocation5 + $0x104] ss:$24 sps:$4 sm:$0xff]  }
  0x3f   :  { %457 = vmatprep.subr.bf16.mxu0 %v3016_v38  ;;  %1095 = vmatprep.subr.bf16.mxu1 %v3497_v39  ;;  %v3642_v38 = vld [vmem:[#allocation5 + $0x38] ss:$24 sps:$4 sm:$0xff]   ;;  %5078 = vst [vmem:[#allocation35_spill] sm:$0xff] %v3689_v60  ;;  %v3700_v6 = vld [vmem:[#allocation5 + $0x24c] ss:$24 sps:$4 sm:$0xff]  }
  0x40   :  { %487 = vmatprep.mubr.bf16.mxu0 %v3442_v0  ;;  %v3536_v0 = vld [vmem:[#allocation5 + $0x4] ss:$24 sps:$4 sm:$0xff]   ;;  %1125 = vmatprep.mubr.bf16.mxu1 %v3573_v14  ;;  %5067 = vst [vmem:[#allocation24_spill] sm:$0xff] %v3642_v38  ;;  %5081 = vst [vmem:[#allocation38_spill] sm:$0xff] %v3700_v6 }
  0x42   :  { %458 = vmatpush1.bf16.msra.mxu0 %v3014_v40  ;;  %1096 = vmatpush1.bf16.msra.mxu1 %v3502_v41  ;;  %v3646_v40 = vld [vmem:[#allocation5 + $0x184] ss:$24 sps:$4 sm:$0xff]  }
  0x43   :  { %459 = vmatprep.subr.bf16.mxu0 %v3022_v42  ;;  %1097 = vmatprep.subr.bf16.mxu1 %v3505_v43  ;;  %v3648_v42 = vld [vmem:[#allocation5 + $0xc] ss:$24 sps:$4 sm:$0xff]  }
  0x44   :  { %5068 = vst [vmem:[#allocation25_spill] sm:$0xff] %v3648_v42 }
  0x46   :  { %460 = vmatpush1.bf16.msra.mxu0 %v3020_v44  ;;  %1098 = vmatpush1.bf16.msra.mxu1 %v3509_v45 }
  0x47   :  { %461 = vmatprep.subr.bf16.mxu0 %v3028_v46  ;;  %1099 = vmatprep.subr.bf16.mxu1 %v3512_v47  ;;  %v3654_v46 = vld [vmem:[#allocation5 + $0x180] ss:$24 sps:$4 sm:$0xff]  }
  0x4a   :  { %462 = vmatpush1.bf16.msra.mxu0 %v3026_v48  ;;  %1100 = vmatpush1.bf16.msra.mxu1 %v3515_v49  ;;  %v3656_v48 = vld [vmem:[#allocation5 + $0x8] ss:$24 sps:$4 sm:$0xff]  }
  0x4b   :  { %463 = vmatprep.subr.bf16.mxu0 %v3034_v50  ;;  %1101 = vmatprep.subr.bf16.mxu1 %v3518_v51  ;;  %5069 = vst [vmem:[#allocation26_spill] sm:$0xff] %v3656_v48  ;;  %v3660_v50 = vld [vmem:[#allocation5 + $0x2dc] ss:$24 sps:$4 sm:$0xff]  }
  0x4c   :  { %5070 = vst [vmem:[#allocation27_spill] sm:$0xff] %v3660_v50 }
  0x4e   :  { %464 = vmatpush1.bf16.msra.mxu0 %v3032_v52  ;;  %1102 = vmatpush1.bf16.msra.mxu1 %v3520_v53  ;;  %v3662_v52 = vld [vmem:[#allocation5 + $0x164] ss:$24 sps:$4 sm:$0xff]  }
  0x4f   :  { %465 = vmatprep.subr.bf16.mxu0 %v3040_v54  ;;  %1103 = vmatprep.subr.bf16.mxu1 %v3524_v55 }
  0x52   :  { %466 = vmatpush1.bf16.msra.mxu0 %v3038_v56  ;;  %1104 = vmatpush1.bf16.msra.mxu1 %v3527_v57  ;;  %v3668_v56 = vld [vmem:[#allocation5 + $0x2d8] ss:$24 sps:$4 sm:$0xff]  }
  0x53   :  { %467 = vmatprep.subr.bf16.mxu0 %v3046_v58  ;;  %1105 = vmatprep.subr.bf16.mxu1 %v3530_v59  ;;  %5071 = vst [vmem:[#allocation28_spill] sm:$0xff] %v3668_v56  ;;  %v3670_v58 = vld [vmem:[#allocation5 + $0x160] ss:$24 sps:$4 sm:$0xff]  }
  0x54   :  { %5072 = vst [vmem:[#allocation29_spill] sm:$0xff] %v3670_v58 }
  0x56   :  { %468 = vmatpush1.bf16.msra.mxu0 %v3044_v61  ;;  %1106 = vmatpush1.bf16.msra.mxu1 %v3532_v62  ;;  %v3674_v61 = vld [vmem:[#allocation5 + $0x2ac] ss:$24 sps:$4 sm:$0xff]  }
  0x57   :  { %469 = vmatprep.subr.bf16.mxu0 %v3052_v63  ;;  %1107 = vmatprep.subr.bf16.mxu1 %v3536_v0  ;;  %5073 = vst [vmem:[#allocation30_spill] sm:$0xff] %v3674_v61  ;;  %v3676_v63 = vld [vmem:[#allocation5 + $0x134] ss:$24 sps:$4 sm:$0xff]  }
  0x58   :  { %5074 = vst [vmem:[#allocation31_spill] sm:$0xff] %v3676_v63 }
  0x5a   :  { %470 = vmatpush1.bf16.msra.mxu0 %v3050_v2  ;;  %1108 = vmatpush1.bf16.msra.mxu1 %v3542_v3  ;;  %v3681_v2 = vld [vmem:[#allocation5 + $0x2a8] ss:$24 sps:$4 sm:$0xff]  }
  0x5b   :  { %1109 = vmatprep.subr.bf16.mxu1 %v3545_v4  ;;  %1134 = vmatprep.subr.bf16.mxu0 %v3547_v5  ;;  %5075 = vst [vmem:[#allocation32_spill] sm:$0xff] %v3681_v2 }
  0x5d   :  { %488 = vmatmul.mubr.bf16.vlgmr.msra.gmra.mxu0 %v3492_v35  ;;  %v3636_v35 = vsub.s32 0, %v3539_v1  ;;  %v3714_v1 = vld [vmem:[#allocation5 + $0xa4] ss:$24 sps:$4 sm:$0xff]  }
  0x5e   :  { %1110 = vmatpush2.bf16.msra.mxu1 %v3552_v7  ;;  %1135 = vmatpush1.bf16.msra.mxu0 %v3554_v8  ;;  %5086 = vst [vmem:[#allocation43_spill] sm:$0xff] %v3714_v1 }
  0x5f   :  { %1111 = vmatprep.subr.bf16.mxu1 %v3557_v9  ;;  %1136 = vmatprep.subr.bf16.mxu0 %v3566_v11  ;;  %5066 = vst [vmem:[#allocation23_spill] sm:$0xff] %v3636_v35  ;;  %v604_v44 = vrot.slane %v3562_v10, %v3636_v35  ;;  %v3694_v10 = vld [vmem:[#allocation5 + $0x278] ss:$24 sps:$4 sm:$0xff]  }
  0x60   :  { %1166 = vmatprep.mubr.bf16.mxu0 %v3573_v14  ;;  %5079 = vst [vmem:[#allocation36_spill] sm:$0xff] %v3694_v10  ;;  %v3708_v35 = vld [vmem:[#allocation5 + $0xd0] ss:$24 sps:$4 sm:$0xff]  }
  0x61   :  { %v3664_v54 = vpack.c.bf16 %v604_v44, %v604_v44  ;;  %v3687_v44 = vld [vmem:[#allocation5 + $0x27c] ss:$24 sps:$4 sm:$0xff]   ;;  %5084 = vst [vmem:[#allocation41_spill] sm:$0xff] %v3708_v35 }
  0x62   :  { %1112 = vmatpush2.bf16.msra.mxu1 %v3571_v13  ;;  %1137 = vmatpush1.bf16.msra.mxu0 %v3577_v15  ;;  %5077 = vst [vmem:[#allocation34_spill] sm:$0xff] %v3687_v44 }
  0x63   :  { %1113 = vmatprep.subr.bf16.mxu1 %v3581_v16  ;;  %1138 = vmatprep.subr.bf16.mxu0 %v3583_v17 }
  0x66   :  { %1114 = vmatpush2.bf16.msra.mxu1 %v3587_v18  ;;  %1139 = vmatpush1.bf16.msra.mxu0 %v3591_v19 }
  0x67   :  { %1115 = vmatprep.subr.bf16.mxu1 %v3593_v20  ;;  %1140 = vmatprep.subr.bf16.mxu0 %v3597_v21 }
  0x6a   :  { %1116 = vmatpush2.bf16.msra.mxu1 %v3599_v22  ;;  %1141 = vmatpush1.bf16.msra.mxu0 %v3603_v23 }
  0x6b   :  { %1117 = vmatprep.subr.bf16.mxu1 %v3607_v24  ;;  %1142 = vmatprep.subr.bf16.mxu0 %v3609_v25 }
  0x6e   :  { %1118 = vmatpush2.bf16.msra.mxu1 %v3611_v26  ;;  %1143 = vmatpush1.bf16.msra.mxu0 %v3615_v27 }
  0x6f   :  { %1119 = vmatprep.subr.bf16.mxu1 %v3617_v28  ;;  %1144 = vmatprep.subr.bf16.mxu0 %v3621_v29 }
  0x72   :  { %1120 = vmatpush2.bf16.msra.mxu1 %v3623_v30  ;;  %1145 = vmatpush1.bf16.msra.mxu0 %v3627_v31 }
  0x73   :  { %1121 = vmatprep.subr.bf16.mxu1 %v3631_v32  ;;  %1146 = vmatprep.subr.bf16.mxu0 %v3633_v33 }
  0x76   :  { %1122 = vmatpush2.bf16.msra.mxu1 %v3640_v36  ;;  %1147 = vmatpush1.bf16.msra.mxu0 %v3642_v38 }
  0x77   :  { %1123 = vmatprep.subr.bf16.mxu1 %v3646_v40  ;;  %1148 = vmatprep.subr.bf16.mxu0 %v3648_v42 }
  0x7a   :  { %1124 = vmatpush2.bf16.msra.mxu1 %v3654_v46  ;;  %1149 = vmatpush1.bf16.msra.mxu0 %v3656_v48 }
  0x7b   :  { %1150 = vmatprep.subr.bf16.mxu0 %v3660_v50  ;;  %1175 = vmatprep.subr.bf16.mxu1 %v3662_v52 }
  0x7d   :  { %1126 = vmatmul.mubr.bf16.vlgmr.msra.gmra.mxu1 %v3664_v54 }
  0x7e   :  { %1151 = vmatpush2.bf16.msra.mxu0 %v3668_v56  ;;  %1176 = vmatpush1.bf16.msra.mxu1 %v3670_v58  ;;  %v3696_v58 = vld [vmem:[#allocation5 + $0x100] ss:$24 sps:$4 sm:$0xff]  }
  0x7f   :  { %1152 = vmatprep.subr.bf16.mxu0 %v3674_v61  ;;  %1177 = vmatprep.subr.bf16.mxu1 %v3676_v63  ;;  %5080 = vst [vmem:[#allocation37_spill] sm:$0xff] %v3696_v58  ;;  %v3702_v63 = vld [vmem:[#allocation5 + $0xd4] ss:$24 sps:$4 sm:$0xff]  }
  0x80   :  { %1207 = vmatprep.mubr.bf16.mxu1 %v3573_v14  ;;  %5082 = vst [vmem:[#allocation39_spill] sm:$0xff] %v3702_v63  ;;  %v3706_v14 = vld [vmem:[#allocation5 + $0x248] ss:$24 sps:$4 sm:$0xff]  }
  0x81   :  { %5083 = vst [vmem:[#allocation40_spill] sm:$0xff] %v3706_v14 }
  0x82   :  { %1153 = vmatpush2.bf16.msra.mxu0 %v3681_v2  ;;  %1178 = vmatpush1.bf16.msra.mxu1 %v3683_v12  ;;  %v3712_v12 = vld [vmem:[#allocation5 + $0x21c] ss:$24 sps:$4 sm:$0xff]  }
  0x83   :  { %1154 = vmatprep.subr.bf16.mxu0 %v3687_v44  ;;  %1179 = vmatprep.subr.bf16.mxu1 %v3689_v60  ;;  %5085 = vst [vmem:[#allocation42_spill] sm:$0xff] %v3712_v12  ;;  %v3718_v60 = vld [vmem:[#allocation5 + $0x218] ss:$24 sps:$4 sm:$0xff]  }
  0x84   :  { %5087 = vst [vmem:[#allocation44_spill] sm:$0xff] %v3718_v60 }
  0x86   :  { %1155 = vmatpush2.bf16.msra.mxu0 %v3694_v10  ;;  %1180 = vmatpush1.bf16.msra.mxu1 %v3696_v58  ;;  %v3720_v10 = vld [vmem:[#allocation5 + $0xa0] ss:$24 sps:$4 sm:$0xff]   ;;  %v3724_v58 = vld [vmem:[#allocation5 + $0x1ec] ss:$24 sps:$4 sm:$0xff]  }
  0x87   :  { %1156 = vmatprep.subr.bf16.mxu0 %v3700_v6  ;;  %1181 = vmatprep.subr.bf16.mxu1 %v3702_v63  ;;  %5088 = vst [vmem:[#allocation45_spill] sm:$0xff] %v3720_v10  ;;  %5089 = vst [vmem:[#allocation46_spill] sm:$0xff] %v3724_v58  ;;  %v3726_v6 = vld [vmem:[#allocation5 + $0x74] ss:$24 sps:$4 sm:$0xff]   ;;  %v3730_v63 = vld [vmem:[#allocation5 + $0x1e8] ss:$24 sps:$4 sm:$0xff]  }
  0x88   :  { %5090 = vst [vmem:[#allocation47_spill] sm:$0xff] %v3726_v6  ;;  %5091 = vst [vmem:[#allocation48_spill] sm:$0xff] %v3730_v63 }
  0x8a   :  { %1157 = vmatpush2.bf16.msra.mxu0 %v3706_v14  ;;  %1182 = vmatpush1.bf16.msra.mxu1 %v3708_v35  ;;  %v3732_v14 = vld [vmem:[#allocation5 + $0x70] ss:$24 sps:$4 sm:$0xff]   ;;  %v3736_v35 = vld [vmem:[#allocation5 + $0x1bc] ss:$24 sps:$4 sm:$0xff]  }
  0x8b   :  { %1158 = vmatprep.subr.bf16.mxu0 %v3712_v12  ;;  %1183 = vmatprep.subr.bf16.mxu1 %v3714_v1  ;;  %5092 = vst [vmem:[#allocation49_spill] sm:$0xff] %v3732_v14  ;;  %5093 = vst [vmem:[#allocation50_spill] sm:$0xff] %v3736_v35  ;;  %v3738_v12 = vld [vmem:[#allocation5 + $0x44] ss:$24 sps:$4 sm:$0xff]   ;;  %v3742_v1 = vld [vmem:[#allocation5 + $0x1b8] ss:$24 sps:$4 sm:$0xff]  }
  0x8c   :  { %5094 = vst [vmem:[#allocation51_spill] sm:$0xff] %v3738_v12  ;;  %5095 = vst [vmem:[#allocation52_spill] sm:$0xff] %v3742_v1 }
  0x8e   :  { %1159 = vmatpush2.bf16.msra.mxu0 %v3718_v60  ;;  %1184 = vmatpush1.bf16.msra.mxu1 %v3720_v10  ;;  %v3744_v60 = vld [vmem:[#allocation5 + $0x40] ss:$24 sps:$4 sm:$0xff]   ;;  %v3748_v10 = vld [vmem:[#allocation5 + $0x18c] ss:$24 sps:$4 sm:$0xff]  }
  0x8f   :  { %1160 = vmatprep.subr.bf16.mxu0 %v3724_v58  ;;  %1185 = vmatprep.subr.bf16.mxu1 %v3726_v6  ;;  %5096 = vst [vmem:[#allocation53_spill] sm:$0xff] %v3744_v60  ;;  %5097 = vst [vmem:[#allocation54_spill] sm:$0xff] %v3748_v10  ;;  %v3750_v58 = vld [vmem:[#allocation5 + $0x14] ss:$24 sps:$4 sm:$0xff]   ;;  %v3754_v6 = vld [vmem:[#allocation5 + $0x188] ss:$24 sps:$4 sm:$0xff]  }
  0x90   :  { %5098 = vst [vmem:[#allocation55_spill] sm:$0xff] %v3750_v58  ;;  %5099 = vst [vmem:[#allocation56_spill] sm:$0xff] %v3754_v6 }
  0x92   :  { %1161 = vmatpush2.bf16.msra.mxu0 %v3730_v63  ;;  %1186 = vmatpush1.bf16.msra.mxu1 %v3732_v14  ;;  %v3756_v63 = vld [vmem:[#allocation5 + $0x10] ss:$24 sps:$4 sm:$0xff]   ;;  %v3760_v14 = vld [vmem:[#allocation5 + $0x2e4] ss:$24 sps:$4 sm:$0xff]  }
  0x93   :  { %1162 = vmatprep.subr.bf16.mxu0 %v3736_v35  ;;  %1187 = vmatprep.subr.bf16.mxu1 %v3738_v12  ;;  %5100 = vst [vmem:[#allocation57_spill] sm:$0xff] %v3756_v63  ;;  %5101 = vst [vmem:[#allocation58_spill] sm:$0xff] %v3760_v14  ;;  %v3764_v12 = vld [vmem:[#allocation5 + $0x2e0] ss:$24 sps:$4 sm:$0xff]  }
  0x94   :  { %5102 = vst [vmem:[#allocation59_spill] sm:$0xff] %v3764_v12 }
  0x96   :  { %1163 = vmatpush2.bf16.msra.mxu0 %v3742_v1  ;;  %1188 = vmatpush1.bf16.msra.mxu1 %v3744_v60  ;;  %v3767_v1 = vld [vmem:[#allocation5 + $0x2b4] ss:$24 sps:$4 sm:$0xff]   ;;  %v3772_v60 = vld [vmem:[#allocation5 + $0x2b0] ss:$24 sps:$4 sm:$0xff]  }
  0x97   :  { %1164 = vmatprep.subr.bf16.mxu0 %v3748_v10  ;;  %1189 = vmatprep.subr.bf16.mxu1 %v3750_v58  ;;  %5103 = vst [vmem:[#allocation60_spill] sm:$0xff] %v3767_v1  ;;  %5104 = vst [vmem:[#allocation61_spill] sm:$0xff] %v3772_v60  ;;  %v3776_v58 = vld [vmem:[#allocation5 + $0x284] ss:$24 sps:$4 sm:$0xff]  }
  0x98   :  { %5105 = vst [vmem:[#allocation62_spill] sm:$0xff] %v3776_v58 }
  0x9a   :  { %1165 = vmatpush2.bf16.msra.mxu0 %v3754_v6  ;;  %1190 = vmatpush1.bf16.msra.mxu1 %v3756_v63  ;;  %v3784_v63 = vld [vmem:[#allocation5 + $0x254] ss:$24 sps:$4 sm:$0xff]  }
  0x9b   :  { %1191 = vmatprep.subr.bf16.mxu1 %v3760_v14  ;;  %1318 = vmatprep.subr.bf16.mxu0 %v3487_v34  ;;  %v3780_v14 = vld [vmem:[#allocation5 + $0x280] ss:$24 sps:$4 sm:$0xff]   ;;  %5107 = vst [vmem:[#allocation64_spill] sm:$0xff] %v3784_v63 }
  0x9c   :  { %5106 = vst [vmem:[#allocation63_spill] sm:$0xff] %v3780_v14 }
  0x9d   :  { %1167 = vmatmul.mubr.bf16.vlgmr.msra.gmra.mxu0 %v3664_v54 }
  0x9e   :  { %1192 = vmatpush2.bf16.msra.mxu1 %v3764_v12  ;;  %1319 = vmatpush1.bf16.msra.mxu0 %v3494_v37  ;;  %v3788_v12 = vld [vmem:[#allocation5 + $0x250] ss:$24 sps:$4 sm:$0xff]  }
  0x9f   :  { %1193 = vmatprep.subr.bf16.mxu1 %v3767_v1  ;;  %1320 = vmatprep.subr.bf16.mxu0 %v3497_v39  ;;  %5108 = vst [vmem:[#allocation65_spill] sm:$0xff] %v3788_v12  ;;  %v3792_v1 = vld [vmem:[#allocation5 + $0x224] ss:$24 sps:$4 sm:$0xff]  }
  0xa0   :  { %5109 = vst [vmem:[#allocation66_spill] sm:$0xff] %v3792_v1 }
  0xa2   :  { %1194 = vmatpush2.bf16.msra.mxu1 %v3772_v60  ;;  %1321 = vmatpush1.bf16.msra.mxu0 %v3502_v41  ;;  %v3796_v60 = vld [vmem:[#allocation5 + $0x220] ss:$24 sps:$4 sm:$0xff]  }
  0xa3   :  { %1195 = vmatprep.subr.bf16.mxu1 %v3776_v58  ;;  %1322 = vmatprep.subr.bf16.mxu0 %v3505_v43  ;;  %5110 = vst [vmem:[#allocation67_spill] sm:$0xff] %v3796_v60  ;;  %v3800_v58 = vld [vmem:[#allocation5 + $0x1f4] ss:$24 sps:$4 sm:$0xff]  }
  0xa6   :  { %1196 = vmatpush2.bf16.msra.mxu1 %v3780_v14  ;;  %1323 = vmatpush1.bf16.msra.mxu0 %v3509_v45  ;;  %v3804_v14 = vld [vmem:[#allocation5 + $0x1f0] ss:$24 sps:$4 sm:$0xff]  }
  0xa7   :  { %1197 = vmatprep.subr.bf16.mxu1 %v3784_v63  ;;  %1324 = vmatprep.subr.bf16.mxu0 %v3512_v47  ;;  %v3808_v63 = vld [vmem:[#allocation5 + $0x1c4] ss:$24 sps:$4 sm:$0xff]  }
  0xaa   :  { %1198 = vmatpush2.bf16.msra.mxu1 %v3788_v12  ;;  %1325 = vmatpush1.bf16.msra.mxu0 %v3515_v49  ;;  %v3812_v12 = vld [vmem:[#allocation5 + $0x1c0] ss:$24 sps:$4 sm:$0xff]  }
  0xab   :  { %1199 = vmatprep.subr.bf16.mxu1 %v3792_v1  ;;  %1326 = vmatprep.subr.bf16.mxu0 %v3518_v51  ;;  %v3816_v1 = vld [vmem:[#allocation5 + $0x194] ss:$24 sps:$4 sm:$0xff]  }
  0xae   :  { %1200 = vmatpush2.bf16.msra.mxu1 %v3796_v60  ;;  %1327 = vmatpush1.bf16.msra.mxu0 %v3520_v53  ;;  %v3820_v60 = vld [vmem:[#allocation5 + $0x190] ss:$24 sps:$4 sm:$0xff]  }
  0xaf   :  { %1201 = vmatprep.subr.bf16.mxu1 %v3800_v58  ;;  %1328 = vmatprep.subr.bf16.mxu0 %v3524_v55 }
  0xb2   :  { %1202 = vmatpush2.bf16.msra.mxu1 %v3804_v14  ;;  %1329 = vmatpush1.bf16.msra.mxu0 %v3527_v57 }
  0xb3   :  { %1203 = vmatprep.subr.bf16.mxu1 %v3808_v63  ;;  %1330 = vmatprep.subr.bf16.mxu0 %v3530_v59 }
  0xb6   :  { %1204 = vmatpush2.bf16.msra.mxu1 %v3812_v12  ;;  %1331 = vmatpush1.bf16.msra.mxu0 %v3532_v62 }
  0xb7   :  { %1205 = vmatprep.subr.bf16.mxu1 %v3816_v1  ;;  %1332 = vmatprep.subr.bf16.mxu0 %v3536_v0 }
  0xba   :  { %1206 = vmatpush2.bf16.msra.mxu1 %v3820_v60  ;;  %1333 = vmatpush1.bf16.msra.mxu0 %v3542_v3 }
  0xbb   :  { %1359 = vmatprep.subr.bf16.mxu1 %v3547_v5  ;;  %1334 = vmatprep.subr.bf16.mxu0 %v3545_v4 }
  0xbd   :  { %1208 = vmatmul.mubr.bf16.vlgmr.msra.gmra.mxu1 %v3664_v54  ;;  %v5111_v54 = vld [vmem:[#allocation36_spill] sm:$0xff] }
  0xbe   :  { %1360 = vmatpush1.bf16.msra.mxu1 %v3554_v8  ;;  %1335 = vmatpush2.bf16.msra.mxu0 %v3552_v7 }
  0xbf   :  { %1361 = vmatprep.subr.bf16.mxu1 %v3566_v11  ;;  %1336 = vmatprep.subr.bf16.mxu0 %v3557_v9 }
  0xc2   :  { %1362 = vmatpush1.bf16.msra.mxu1 %v3577_v15  ;;  %1337 = vmatpush2.bf16.msra.mxu0 %v3571_v13 }
  0xc3   :  { %1363 = vmatprep.subr.bf16.mxu1 %v3583_v17  ;;  %1338 = vmatprep.subr.bf16.mxu0 %v3581_v16 }
  0xc6   :  { %1364 = vmatpush1.bf16.msra.mxu1 %v3591_v19  ;;  %1339 = vmatpush2.bf16.msra.mxu0 %v3587_v18 }
  0xc7   :  { %1365 = vmatprep.subr.bf16.mxu1 %v3597_v21  ;;  %1340 = vmatprep.subr.bf16.mxu0 %v3593_v20 }
  0xca   :  { %1366 = vmatpush1.bf16.msra.mxu1 %v3603_v23  ;;  %1341 = vmatpush2.bf16.msra.mxu0 %v3599_v22 }
  0xcb   :  { %1367 = vmatprep.subr.bf16.mxu1 %v3609_v25  ;;  %1342 = vmatprep.subr.bf16.mxu0 %v3607_v24 }
  0xce   :  { %1368 = vmatpush1.bf16.msra.mxu1 %v3615_v27  ;;  %1343 = vmatpush2.bf16.msra.mxu0 %v3611_v26 }
  0xcf   :  { %1369 = vmatprep.subr.bf16.mxu1 %v3621_v29  ;;  %1344 = vmatprep.subr.bf16.mxu0 %v3617_v28 }
  0xd2   :  { %1370 = vmatpush1.bf16.msra.mxu1 %v3627_v31  ;;  %1345 = vmatpush2.bf16.msra.mxu0 %v3623_v30  ;;  %v5117_v31 = vld [vmem:[#allocation48_spill] sm:$0xff] }
  0xd3   :  { %1371 = vmatprep.subr.bf16.mxu1 %v3633_v33  ;;  %1346 = vmatprep.subr.bf16.mxu0 %v3631_v32  ;;  %v5115_v33 = vld [vmem:[#allocation44_spill] sm:$0xff] }
  0xd6   :  { %1372 = vmatpush1.bf16.msra.mxu1 %v3642_v38  ;;  %1347 = vmatpush2.bf16.msra.mxu0 %v3640_v36  ;;  %v5113_v38 = vld [vmem:[#allocation40_spill] sm:$0xff] }
  0xd7   :  { %1373 = vmatprep.subr.bf16.mxu1 %v3648_v42  ;;  %1348 = vmatprep.subr.bf16.mxu0 %v3646_v40  ;;  %v5112_v42 = vld [vmem:[#allocation38_spill] sm:$0xff] }
  0xda   :  { %1374 = vmatpush1.bf16.msra.mxu1 %v3656_v48  ;;  %1349 = vmatpush2.bf16.msra.mxu0 %v3654_v46  ;;  %v5114_v48 = vld [vmem:[#allocation42_spill] sm:$0xff] }
  0xdb   :  { %1375 = vmatprep.subr.bf16.mxu1 %v3660_v50  ;;  %1400 = vmatprep.subr.bf16.mxu0 %v3662_v52  ;;  %v5116_v50 = vld [vmem:[#allocation46_spill] sm:$0xff] }
  0xde   :  { %1376 = vmatpush2.bf16.msra.mxu1 %v3668_v56  ;;  %v5119_v56 = vld [vmem:[#allocation52_spill] sm:$0xff] }
  0xdf   :  { %1377 = vmatprep.subr.bf16.mxu1 %v3674_v61  ;;  %v5118_v61 = vld [vmem:[#allocation9_spill] sm:$0xff] }
  0xe2   :  { %1378 = vmatpush2.bf16.msra.mxu1 %v3681_v2  ;;  %v113_v2 = vsub.s32 2, %v5118_v61 }
  0xe3   :  { %1379 = vmatprep.subr.bf16.mxu1 %v3687_v44 }
  0xe6   :  { %1380 = vmatpush2.bf16.msra.mxu1 %v5111_v54 }
  0xe7   :  { %1381 = vmatprep.subr.bf16.mxu1 %v5112_v42  ;;  %v101_v42 = vld [vmem:[%s4819_s3] sm:$0x3f] }
  0xe8   :  { %v114_v54 = vrot.slane %v101_v42, %v113_v2 }
  0xea   :  { %1382 = vmatpush2.bf16.msra.mxu1 %v5113_v38  ;;  %v5120_v38 = vld [vmem:[#allocation23_spill] sm:$0xff] }
  0xeb   :  { %1383 = vmatprep.subr.bf16.mxu1 %v5114_v48  ;;  %v117_v48 = vsub.s32 3, %v5118_v61 }
  0xee   :  { %1384 = vmatpush2.bf16.msra.mxu1 %v5115_v33  ;;  %v106_v33 = vrot.slane %v101_v42, %v5120_v38 }
  0xef   :  { %1385 = vmatprep.subr.bf16.mxu1 %v5116_v50  ;;  %v118_v50 = vrot.slane %v101_v42, %v117_v48  ;;  %v125_v48 = vsub.s32 5, %v5118_v61 }
  0xf1   :  { %v126_v11 = vrot.slane %v101_v42, %v125_v48 }
  0xf2   :  { %1386 = vmatpush2.bf16.msra.mxu1 %v5117_v31 }
  0xf3   :  { %1387 = vmatprep.subr.bf16.mxu1 %v3736_v35  ;;  %v5121_v35 = vld [vmem:[#allocation10_spill] sm:$0xff] }
  0xf4   :  { %v110_v31 = vrot.slane %v101_v42, %v5121_v35 }
  0xf6   :  { %1388 = vmatpush2.bf16.msra.mxu1 %v5119_v56 }
  0xf7   :  { %1389 = vmatprep.subr.bf16.mxu1 %v3748_v10 }
  0xfa   :  { %1390 = vmatpush2.bf16.msra.mxu1 %v3754_v6 }
  0xfb   :  { %1530 = vmatprep.subr.bf16.mxu1 %v3487_v34  ;;  %v121_v34 = vsub.s32 4, %v5118_v61 }
  0xfd   :  { %v407_v44 = vpop.f32.mrf.mxu0  ;;  %v448_v56 = vpop.f32.mrf.mxu1  ;;  %v122_v15 = vrot.slane %v101_v42, %v121_v34 }
  0xfe   :  { %v408_v29 = vadd.f32 %v407_v44, %v106_v33  ;;  %v449_v27 = vadd.f32 %v448_v56, %v114_v54 }
  0xff   :  { %v409_v25 = vpop.f32.mrf.mxu0  ;;  %v450_v23 = vpop.f32.mrf.mxu1 }
 0x100   :  { %496 = vst [vmem:[#allocation2] sm:$0xff] %v408_v29  ;;  %498 = vst [vmem:[#allocation2 + $0x10] sm:$0xff] %v449_v27  ;;  %v410_v10 = vadd.f32 %v409_v25, %v110_v31  ;;  %v451_v21 = vadd.f32 %v450_v23, %v118_v50  ;;  %v3443_v25 = vmov 1966171168  }
 0x101   :  { %v411_v19 = vpop.f32.mrf.mxu0  ;;  %v452_v17 = vpop.f32.mrf.mxu1 }
 0x102   :  { %497 = vst [vmem:[#allocation2 + $0x8] sm:$0xff] %v410_v10  ;;  %499 = vst [vmem:[#allocation2 + $0x18] sm:$0xff] %v451_v21 }
 0x103   :  { %v412_v2 = vpop.f32.mrf.mxu0  ;;  %v453_v6 = vpop.f32.mrf.mxu1 }
 0x104   :  { %v1226_v6 = vunpack.c.l.s4 %v3443_v25 }
 0x106   :  { %v1227_v31 = vunpack.c.0.s8 %v1226_v6 }
 0x108   :  { %v3888_v54 = vsub.s32 %v1227_v31, %v5118_v61  ;;  %v598_v61 = vld [vmem:[%s4821_s5] sm:$0x3] }
 0x109   :  { %v3897_v25 = vrot.slane %v598_v61, %v5120_v38  ;;  %v3900_v6 = vrot.slane %v598_v61, %v5121_v35 }
 0x10b   :  { %5122 = vst [vmem:[#allocation9_spill] sm:$0xff] %v3897_v25 }
 0x11d   :  { %v489_v33 = vpop.f32.mrf.mxu0 }
 0x11e   :  { %v490_v56 = vadd.f32 %v489_v33, %v122_v15 }
 0x11f   :  { %v491_v44 = vpop.f32.mrf.mxu0 }
 0x120   :  { %500 = vst [vmem:[#allocation2 + $0x20] sm:$0xff] %v490_v56  ;;  %v492_v29 = vadd.f32 %v491_v44, %v126_v11 }
 0x121   :  { %v493_v27 = vpop.f32.mrf.mxu0 }
 0x122   :  { %501 = vst [vmem:[#allocation2 + $0x28] sm:$0xff] %v492_v29  ;;  %v1216_v29 = vld [vmem:[#allocation2] ss:$8 sm:$0xf] }
 0x123   :  { %v494_v23 = vpop.f32.mrf.mxu0 }
 0x129   :  { %v1217_v33 = vld [vmem:[#allocation2] ss:$8 sm:$0x30] }
 0x12a   :  { %v1218_v27 = vor.u32 %v1217_v33, %v1216_v29 }
 0x12c   :  { %v1288_v29 = vrot.slane %v1218_v27, 4 }
 0x13d   :  { %v1127_v19 = vpop.f32.mrf.mxu1 }
 0x13f   :  { %v1129_v17 = vpop.f32.mrf.mxu1 }
 0x140   :  { %v1223_v42 = vcombine.low %v1127_v19, %v1129_v17 }
 0x141   :  { %v1131_v10 = vpop.f32.mrf.mxu1 }
 0x142   :  { %v1231_v11 = vrot.slane %v1223_v42, %v3888_v54 }
 0x143   :  { %v1132_v21 = vpop.f32.mrf.mxu1 }
 0x15d   :  { %v1168_v50 = vpop.f32.mrf.mxu0 }
 0x15f   :  { %v1170_v2 = vpop.f32.mrf.mxu0 }
 0x160   :  { %v1224_v15 = vcombine.low %v1168_v50, %v1170_v2 }
 0x161   :  { %v1172_v34 = vpop.f32.mrf.mxu0 }
 0x162   :  { %v1238_v48 = vrot.slane %v1224_v15, %v3888_v54 }
 0x163   :  { %v1173_v56 = vpop.f32.mrf.mxu0 }
 0x164   :  { %v1239_v44 = vcombine.low %v1231_v11, %v1238_v48 }
 0x166   :  { %v1246_v23 = vrot.slane %v1239_v44, %v3888_v54 }
 0x168   :  { %v1248_v10 = vadd.f32 %v1246_v23, %v1218_v27 }
 0x16a   :  { %v2939_v21 = vmul.f32 -1.442695, %v1248_v10 }
 0x16c   :  { %3176 = vpow2.f32 %v2939_v21 }
 0x179   :  { %v3177_v19 = vpop.eup %3176 }
 0x17a   :  { %v1252_v17 = vadd.f32 1.0, %v3177_v19 }
 0x17c   :  { %3178 = vrcp.f32 %v1252_v17  ;;  %v5123_v17 = vld [vmem:[#allocation11_spill] sm:$0xff] }
 0x17d   :  { %v1209_v31 = vpop.f32.mrf.mxu1 }
 0x17e   :  { %v1266_v50 = vadd.f32 %v3897_v25, %v1209_v31  ;;  %v5124_v25 = vlaneseq }
 0x17f   :  { %v1211_v42 = vpop.f32.mrf.mxu1 }
 0x180   :  { %v1267_v2 = vadd.f32 %v3900_v6, %v1211_v42  ;;  %vm3908_vm0 = vcmp.lt.s32.totalorder %v5124_v25, 256 }
 0x181   :  { %v1213_v15 = vpop.f32.mrf.mxu1 }
 0x182   :  { %v1270_v34 = vcombine.low %v1266_v50, %v1267_v2 }
 0x183   :  { %v1214_v11 = vpop.f32.mrf.mxu1 }
 0x184   :  { %v1277_v48 = vrot.slane %v1270_v34, %v3888_v54  ;;  %v5127_v34 = vld [vmem:[#allocation29_spill] sm:$0xff]  ;;  %v5128_v11 = vld [vmem:[#allocation31_spill] sm:$0xff] }
 0x186   :  { %v1284_v33 = vrot.slane %v1277_v48, %v3888_v54  ;;  %v5129_v48 = vld [vmem:[#allocation33_spill] sm:$0xff] }
 0x189   :  { %v3179_v56 = vpop.eup %3178 }
 0x18a   :  { %v1286_v44 = vmul.f32 %v3179_v56, %v1284_v33  ;;  %v1293_v10 = vrot.slane %v3179_v56, 2  ;;  %v5130_v33 = vld [vmem:[#allocation35_spill] sm:$0xff]  ;;  %v5131_v56 = vld [vmem:[#allocation37_spill] sm:$0xff] }
 0x18c   :  { %v1290_v23 = vadd.f32 %v1288_v29, %v1286_v44  ;;  %v1295_v21 = vsub.f32 1.0, %v1293_v10  ;;  %v1297_v31 = vmul.f32 %v1293_v10, %v5123_v17  ;;  %v5132_v44 = vld [vmem:[#allocation39_spill] sm:$0xff]  ;;  %v5133_v29 = vld [vmem:[#allocation41_spill] sm:$0xff]  ;;  %v5168_v17 = vld [vmem:[#allocation30_spill] sm:$0xff] }
 0x18d   :  { %v5164_v10 = vld [vmem:[#allocation25_spill] sm:$0xff] }
 0x18e   :  { %3180 = vtanh.f32 %v1290_v23  ;;  %v5163_v23 = vld [vmem:[#allocation24_spill] sm:$0xff] }
 0x19b   :  { %v3181_v61 = vpop.eup %3180 }
 0x19c   :  { %v1296_v19 = vmul.f32 %v3181_v61, %v1295_v21  ;;  %v5165_v21 = vld [vmem:[#allocation26_spill] sm:$0xff]  ;;  %v5166_v61 = vld [vmem:[#allocation27_spill] sm:$0xff] }
 0x19e   :  { %v3912_v50 = vadd.f32 %v1297_v31, %v1296_v19  ;;  %v5167_v19 = vld [vmem:[#allocation28_spill] sm:$0xff] }
 0x19f   :  { %v5169_v31 = vld [vmem:[#allocation32_spill] sm:$0xff] }
 0x1a0   :  { %1303 = vst.msk [vmem:[%s4822_s6] ss:$8 sm:$0x3] %vm3908_vm0, %v3912_v50  ;;  %v1313_v27 = vrot.slane %v3912_v50, %v5121_v35  ;;  %v1309_v2 = vrot.slane %v3912_v50, %v5120_v38 }
 0x1a2   :  { %v1317_v15 = vpack.c.bf16 %v1313_v27, %v1313_v27  ;;  %v3924_v25 = vpack.c.bf16 %v1309_v2, %v1309_v2  ;;  %v5170_v27 = vld [vmem:[#allocation34_spill] sm:$0xff]  ;;  %v5171_v2 = vld [vmem:[#allocation36_spill] sm:$0xff] }
 0x1a4   :  { %1350 = vmatprep.mubr.bf16.mxu0 %v1317_v15  ;;  %1391 = vmatprep.mubr.bf16.mxu1 %v1317_v15 }
 0x1a5   :  { %1351 = vmatmul.mubr.bf16.vlgmr.msra.gmra.mxu0 %v3924_v25  ;;  %1392 = vmatmul.mubr.bf16.vlgmr.msra.gmra.mxu1 %v3924_v25 }
 0x1a6   :  { %1401 = vmatpush1.bf16.msra.mxu0 %v5127_v34  ;;  %1432 = vmatprep.mubr.bf16.mxu0 %v1317_v15  ;;  %v5172_v15 = vld [vmem:[#allocation38_spill] sm:$0xff] }
 0x1a7   :  { %1402 = vmatprep.subr.bf16.mxu0 %v5128_v11  ;;  %1531 = vmatpush1.bf16.msra.mxu1 %v3494_v37  ;;  %v5134_v37 = vld [vmem:[#allocation43_spill] sm:$0xff] }
 0x1a8   :  { %1532 = vmatprep.subr.bf16.mxu1 %v3497_v39  ;;  %v5135_v39 = vld [vmem:[#allocation45_spill] sm:$0xff] }
 0x1aa   :  { %1403 = vmatpush1.bf16.msra.mxu0 %v5129_v48 }
 0x1ab   :  { %1404 = vmatprep.subr.bf16.mxu0 %v5130_v33  ;;  %1533 = vmatpush1.bf16.msra.mxu1 %v3502_v41  ;;  %v5136_v41 = vld [vmem:[#allocation47_spill] sm:$0xff] }
 0x1ac   :  { %1534 = vmatprep.subr.bf16.mxu1 %v3505_v43  ;;  %v5137_v43 = vld [vmem:[#allocation49_spill] sm:$0xff] }
 0x1ae   :  { %1405 = vmatpush1.bf16.msra.mxu0 %v5131_v56 }
 0x1af   :  { %1406 = vmatprep.subr.bf16.mxu0 %v5132_v44  ;;  %1535 = vmatpush1.bf16.msra.mxu1 %v3509_v45  ;;  %v5138_v45 = vld [vmem:[#allocation51_spill] sm:$0xff] }
 0x1b0   :  { %1536 = vmatprep.subr.bf16.mxu1 %v3512_v47  ;;  %v5139_v47 = vld [vmem:[#allocation53_spill] sm:$0xff] }
 0x1b2   :  { %1407 = vmatpush1.bf16.msra.mxu0 %v5133_v29 }
 0x1b3   :  { %1408 = vmatprep.subr.bf16.mxu0 %v5134_v37  ;;  %1537 = vmatpush1.bf16.msra.mxu1 %v3515_v49  ;;  %v5140_v49 = vld [vmem:[#allocation55_spill] sm:$0xff] }
 0x1b4   :  { %1538 = vmatprep.subr.bf16.mxu1 %v3518_v51  ;;  %v5141_v51 = vld [vmem:[#allocation57_spill] sm:$0xff] }
 0x1b6   :  { %1409 = vmatpush1.bf16.msra.mxu0 %v5135_v39 }
 0x1b7   :  { %1410 = vmatprep.subr.bf16.mxu0 %v5136_v41  ;;  %1539 = vmatpush1.bf16.msra.mxu1 %v3520_v53  ;;  %v5142_v53 = vld [vmem:[#allocation58_spill] sm:$0xff] }
 0x1b8   :  { %1540 = vmatprep.subr.bf16.mxu1 %v3524_v55  ;;  %v5143_v55 = vld [vmem:[#allocation59_spill] sm:$0xff] }
 0x1ba   :  { %1411 = vmatpush1.bf16.msra.mxu0 %v5137_v43 }
 0x1bb   :  { %1412 = vmatprep.subr.bf16.mxu0 %v5138_v45  ;;  %1541 = vmatpush1.bf16.msra.mxu1 %v3527_v57  ;;  %v5144_v57 = vld [vmem:[#allocation60_spill] sm:$0xff] }
 0x1bc   :  { %1542 = vmatprep.subr.bf16.mxu1 %v3530_v59  ;;  %v5145_v59 = vld [vmem:[#allocation61_spill] sm:$0xff] }
 0x1be   :  { %1413 = vmatpush1.bf16.msra.mxu0 %v5139_v47 }
 0x1bf   :  { %1414 = vmatprep.subr.bf16.mxu0 %v5140_v49  ;;  %1543 = vmatpush1.bf16.msra.mxu1 %v3532_v62  ;;  %v5146_v62 = vld [vmem:[#allocation62_spill] sm:$0xff] }
 0x1c0   :  { %1544 = vmatprep.subr.bf16.mxu1 %v3536_v0  ;;  %v5147_v0 = vld [vmem:[#allocation63_spill] sm:$0xff] }
 0x1c2   :  { %1415 = vmatpush1.bf16.msra.mxu0 %v5141_v51 }
 0x1c3   :  { %1416 = vmatprep.subr.bf16.mxu0 %v5142_v53  ;;  %1545 = vmatpush1.bf16.msra.mxu1 %v3542_v3  ;;  %v5148_v3 = vld [vmem:[#allocation64_spill] sm:$0xff] }
 0x1c4   :  { %1546 = vmatprep.subr.bf16.mxu1 %v3545_v4  ;;  %v5149_v4 = vld [vmem:[#allocation65_spill] sm:$0xff] }
 0x1c6   :  { %1417 = vmatpush2.bf16.msra.mxu0 %v5143_v55 }
 0x1c7   :  { %1418 = vmatprep.subr.bf16.mxu0 %v5144_v57  ;;  %1547 = vmatpush2.bf16.msra.mxu1 %v3552_v7  ;;  %v5150_v7 = vld [vmem:[#allocation66_spill] sm:$0xff] }
 0x1c8   :  { %1548 = vmatprep.subr.bf16.mxu1 %v3557_v9  ;;  %v5151_v9 = vld [vmem:[#allocation67_spill] sm:$0xff] }
 0x1ca   :  { %1419 = vmatpush2.bf16.msra.mxu0 %v5145_v59 }
 0x1cb   :  { %1420 = vmatprep.subr.bf16.mxu0 %v5146_v62  ;;  %1549 = vmatpush2.bf16.msra.mxu1 %v3571_v13  ;;  %v5152_v13 = vld [vmem:[#allocation12_spill] sm:$0xff] }
 0x1cc   :  { %1550 = vmatprep.subr.bf16.mxu1 %v3581_v16  ;;  %v5153_v16 = vld [vmem:[#allocation13_spill] sm:$0xff] }
 0x1ce   :  { %1421 = vmatpush2.bf16.msra.mxu0 %v5147_v0 }
 0x1cf   :  { %1422 = vmatprep.subr.bf16.mxu0 %v5148_v3  ;;  %1551 = vmatpush2.bf16.msra.mxu1 %v3587_v18  ;;  %v5154_v18 = vld [vmem:[#allocation14_spill] sm:$0xff] }
 0x1d0   :  { %1552 = vmatprep.subr.bf16.mxu1 %v3593_v20  ;;  %v5155_v20 = vld [vmem:[#allocation15_spill] sm:$0xff] }
 0x1d2   :  { %1423 = vmatpush2.bf16.msra.mxu0 %v5149_v4 }
 0x1d3   :  { %1424 = vmatprep.subr.bf16.mxu0 %v5150_v7  ;;  %1553 = vmatpush2.bf16.msra.mxu1 %v3599_v22  ;;  %v5156_v22 = vld [vmem:[#allocation16_spill] sm:$0xff] }
 0x1d4   :  { %1554 = vmatprep.subr.bf16.mxu1 %v3607_v24  ;;  %v5157_v24 = vld [vmem:[#allocation17_spill] sm:$0xff] }
 0x1d6   :  { %1425 = vmatpush2.bf16.msra.mxu0 %v5151_v9 }
 0x1d7   :  { %1426 = vmatprep.subr.bf16.mxu0 %v3800_v58  ;;  %1555 = vmatpush2.bf16.msra.mxu1 %v3611_v26  ;;  %v5159_v26 = vld [vmem:[#allocation19_spill] sm:$0xff] }
 0x1d8   :  { %1556 = vmatprep.subr.bf16.mxu1 %v3617_v28  ;;  %v5160_v28 = vld [vmem:[#allocation20_spill] sm:$0xff] }
 0x1da   :  { %1427 = vmatpush2.bf16.msra.mxu0 %v3804_v14 }
 0x1db   :  { %1428 = vmatprep.subr.bf16.mxu0 %v3808_v63  ;;  %1557 = vmatpush2.bf16.msra.mxu1 %v3623_v30  ;;  %v5161_v30 = vld [vmem:[#allocation21_spill] sm:$0xff] }
 0x1dc   :  { %1558 = vmatprep.subr.bf16.mxu1 %v3631_v32 }
 0x1de   :  { %1429 = vmatpush2.bf16.msra.mxu0 %v3812_v12 }
 0x1df   :  { %1430 = vmatprep.subr.bf16.mxu0 %v3816_v1  ;;  %1559 = vmatpush2.bf16.msra.mxu1 %v3640_v36 }
 0x1e0   :  { %1560 = vmatprep.subr.bf16.mxu1 %v3646_v40 }
 0x1e2   :  { %1431 = vmatpush2.bf16.msra.mxu0 %v3820_v60 }
 0x1e3   :  { %1571 = vmatprep.subr.bf16.mxu0 %v3547_v5  ;;  %1561 = vmatpush2.bf16.msra.mxu1 %v3654_v46  ;;  %v5158_v5 = vld [vmem:[#allocation18_spill] sm:$0xff] }
 0x1e4   :  { %1612 = vmatprep.subr.bf16.mxu1 %v3662_v52 }
 0x1e5   :  { %1433 = vmatmul.mubr.bf16.vlgmr.msra.gmra.mxu0 %v3924_v25  ;;  %v5173_v25 = vld [vmem:[#allocation40_spill] sm:$0xff] }
 0x1e6   :  { %1572 = vmatpush1.bf16.msra.mxu0 %v3554_v8  ;;  %v5162_v8 = vld [vmem:[#allocation22_spill] sm:$0xff] }
 0x1e7   :  { %1573 = vmatprep.subr.bf16.mxu0 %v5152_v13  ;;  %v5174_v13 = vld [vmem:[#allocation42_spill] sm:$0xff] }
 0x1ea   :  { %1574 = vmatpush1.bf16.msra.mxu0 %v5153_v16  ;;  %v5175_v16 = vld [vmem:[#allocation44_spill] sm:$0xff] }
 0x1eb   :  { %1575 = vmatprep.subr.bf16.mxu0 %v5154_v18  ;;  %v5176_v18 = vld [vmem:[#allocation46_spill] sm:$0xff] }
 0x1ee   :  { %1576 = vmatpush1.bf16.msra.mxu0 %v5155_v20  ;;  %v5177_v20 = vld [vmem:[#allocation48_spill] sm:$0xff] }
 0x1ef   :  { %1577 = vmatprep.subr.bf16.mxu0 %v5156_v22  ;;  %v5178_v22 = vld [vmem:[#allocation50_spill] sm:$0xff] }
 0x1f2   :  { %1578 = vmatpush1.bf16.msra.mxu0 %v5157_v24  ;;  %v5179_v24 = vld [vmem:[#allocation52_spill] sm:$0xff] }
 0x1f3   :  { %1579 = vmatprep.subr.bf16.mxu0 %v5158_v5  ;;  %v5180_v5 = vld [vmem:[#allocation54_spill] sm:$0xff] }
 0x1f6   :  { %1580 = vmatpush1.bf16.msra.mxu0 %v5159_v26  ;;  %v5181_v26 = vld [vmem:[#allocation56_spill] sm:$0xff] }
 0x1f7   :  { %1581 = vmatprep.subr.bf16.mxu0 %v5160_v28  ;;  %v4024_v28 = vld [vmem:[#allocation5 + $0x154] ss:$24 sps:$4 sm:$0xff]  }
 0x1f8   :  { %5182 = vst [vmem:[#allocation23_spill] sm:$0xff] %v4024_v28 }
 0x1fa   :  { %1582 = vmatpush1.bf16.msra.mxu0 %v5161_v30 }
 0x1fb   :  { %1583 = vmatprep.subr.bf16.mxu0 %v5162_v8 }
 0x1fe   :  { %1584 = vmatpush1.bf16.msra.mxu0 %v5163_v23 }
 0x1ff   :  { %1585 = vmatprep.subr.bf16.mxu0 %v5164_v10 }
 0x202   :  { %1586 = vmatpush1.bf16.msra.mxu0 %v5165_v21 }
 0x203   :  { %1587 = vmatprep.subr.bf16.mxu0 %v5166_v61 }
 0x206   :  { %1588 = vmatpush2.bf16.msra.mxu0 %v5167_v19 }
 0x207   :  { %1589 = vmatprep.subr.bf16.mxu0 %v5168_v17 }
 0x20a   :  { %1590 = vmatpush2.bf16.msra.mxu0 %v5169_v31 }
 0x20b   :  { %1591 = vmatprep.subr.bf16.mxu0 %v5170_v27  ;;  %v1442_v27 = vld [vmem:[#allocation2 + $0x1] ss:$8 sm:$0xf] }
 0x20e   :  { %1592 = vmatpush2.bf16.msra.mxu0 %v5171_v2 }
 0x20f   :  { %1593 = vmatprep.subr.bf16.mxu0 %v5172_v15 }
 0x212   :  { %1594 = vmatpush2.bf16.msra.mxu0 %v5173_v25 }
 0x213   :  { %1595 = vmatprep.subr.bf16.mxu0 %v5174_v13 }
 0x216   :  { %1596 = vmatpush2.bf16.msra.mxu0 %v5175_v16 }
 0x217   :  { %1597 = vmatprep.subr.bf16.mxu0 %v5176_v18 }
 0x21a   :  { %1598 = vmatpush2.bf16.msra.mxu0 %v5177_v20 }
 0x21b   :  { %1599 = vmatprep.subr.bf16.mxu0 %v5178_v22 }
 0x21e   :  { %1600 = vmatpush2.bf16.msra.mxu0 %v5179_v24 }
 0x21f   :  { %1601 = vmatprep.subr.bf16.mxu0 %v5180_v5 }
 0x222   :  { %1602 = vmatpush2.bf16.msra.mxu0 %v5181_v26  ;;  %v1443_v26 = vld [vmem:[#allocation2 + $0x1] ss:$8 sm:$0x30] }
 0x223   :  { %1742 = vmatprep.subr.bf16.mxu0 %v4024_v28  ;;  %v1444_v28 = vor.u32 %v1443_v26, %v1442_v27 }
 0x265   :  { %v1352_v30 = vpop.f32.mrf.mxu0  ;;  %v1393_v8 = vpop.f32.mrf.mxu1 }
 0x267   :  { %v1354_v23 = vpop.f32.mrf.mxu0  ;;  %v1395_v10 = vpop.f32.mrf.mxu1 }
 0x268   :  { %v1449_v25 = vcombine.low %v1352_v30, %v1354_v23  ;;  %v1450_v22 = vcombine.low %v1393_v8, %v1395_v10 }
 0x269   :  { %v1356_v16 = vpop.f32.mrf.mxu0  ;;  %v1397_v18 = vpop.f32.mrf.mxu1 }
 0x26a   :  { %v1457_v24 = vrot.slane %v1449_v25, %v3888_v54  ;;  %v1464_v5 = vrot.slane %v1450_v22, %v3888_v54 }
 0x26b   :  { %v1357_v13 = vpop.f32.mrf.mxu0  ;;  %v1398_v20 = vpop.f32.mrf.mxu1 }
 0x26c   :  { %v1465_v15 = vcombine.low %v1457_v24, %v1464_v5  ;;  %v5183_v20 = vld [vmem:[#allocation9_spill] sm:$0xff] }
 0x26e   :  { %v1472_v2 = vrot.slane %v1465_v15, %v3888_v54 }
 0x270   :  { %v1474_v31 = vadd.f32 %v1472_v2, %v1444_v28 }
 0x272   :  { %v2940_v17 = vmul.f32 -1.442695, %v1474_v31  ;;  %v1503_v31 = vrot.slane %v1444_v28, 4 }
 0x274   :  { %3182 = vpow2.f32 %v2940_v17 }
 0x281   :  { %v3183_v19 = vpop.eup %3182 }
 0x282   :  { %v1478_v16 = vadd.f32 1.0, %v3183_v19 }
 0x284   :  { %3184 = vrcp.f32 %v1478_v16 }
 0x291   :  { %v3185_v27 = vpop.eup %3184 }
 0x292   :  { %v1508_v19 = vrot.slane %v3185_v27, 2 }
 0x294   :  { %v1510_v26 = vsub.f32 1.0, %v1508_v19  ;;  %v1512_v16 = vmul.f32 %v1508_v19, %v3912_v50  ;;  %v4053_v50 = vld [vmem:[#allocation5 + $0x150] ss:$24 sps:$4 sm:$0xff]   ;;  %v5212_v19 = vld [vmem:[#allocation36_spill] sm:$0xff] }
 0x2a5   :  { %v1434_v13 = vpop.f32.mrf.mxu0 }
 0x2a6   :  { %v1481_v30 = vadd.f32 %v1434_v13, %v5183_v20 }
 0x2a7   :  { %v1436_v18 = vpop.f32.mrf.mxu0 }
 0x2a8   :  { %v1482_v25 = vadd.f32 %v1436_v18, %v3900_v6 }
 0x2a9   :  { %v1438_v8 = vpop.f32.mrf.mxu0 }
 0x2aa   :  { %v1485_v22 = vcombine.low %v1481_v30, %v1482_v25  ;;  %v4056_v8 = vld [vmem:[#allocation5 + $0x124] ss:$24 sps:$4 sm:$0xff]  }
 0x2ab   :  { %v1439_v24 = vpop.f32.mrf.mxu0 }
 0x2ac   :  { %v1492_v5 = vrot.slane %v1485_v22, %v3888_v54  ;;  %v4061_v22 = vld [vmem:[#allocation5 + $0x120] ss:$24 sps:$4 sm:$0xff]   ;;  %v4072_v24 = vld [vmem:[#allocation5 + $0xc4] ss:$24 sps:$4 sm:$0xff]  }
 0x2ae   :  { %v1499_v15 = vrot.slane %v1492_v5, %v3888_v54  ;;  %v4208_v5 = vld [vmem:[#allocation5 + $0x38] ss:$24 sps:$4 sm:$0xff]  }
 0x2af   :  { %5206 = vst [vmem:[#allocation63_spill] sm:$0xff] %v4208_v5 }
 0x2b0   :  { %v1501_v2 = vmul.f32 %v3185_v27, %v1499_v15  ;;  %v4211_v15 = vld [vmem:[#allocation5 + $0xc] ss:$24 sps:$4 sm:$0xff]   ;;  %v5208_v27 = vld [vmem:[#allocation28_spill] sm:$0xff] }
 0x2b1   :  { %5207 = vst [vmem:[#allocation64_spill] sm:$0xff] %v4211_v15 }
 0x2b2   :  { %v1505_v17 = vadd.f32 %v1503_v31, %v1501_v2  ;;  %v5209_v2 = vld [vmem:[#allocation30_spill] sm:$0xff]  ;;  %v5210_v31 = vld [vmem:[#allocation32_spill] sm:$0xff] }
 0x2b4   :  { %3186 = vtanh.f32 %v1505_v17  ;;  %v5211_v17 = vld [vmem:[#allocation34_spill] sm:$0xff] }
 0x2c1   :  { %v3187_v23 = vpop.eup %3186 }
 0x2c2   :  { %v1511_v10 = vmul.f32 %v3187_v23, %v1510_v26  ;;  %v5213_v26 = vld [vmem:[#allocation38_spill] sm:$0xff]  ;;  %v5214_v23 = vld [vmem:[#allocation40_spill] sm:$0xff] }
 0x2c4   :  { %v4035_v13 = vadd.f32 %v1512_v16, %v1511_v10  ;;  %v5215_v10 = vld [vmem:[#allocation42_spill] sm:$0xff]  ;;  %v5216_v16 = vld [vmem:[#allocation44_spill] sm:$0xff] }
 0x2c6   :  { %2941 = vst.msk [vmem:[%s4822_s6 + $0x1] ss:$8 sm:$0x3] %vm3908_vm0, %v4035_v13  ;;  %v1525_v28 = vrot.slane %v4035_v13, %v5121_v35  ;;  %v1521_v18 = vrot.slane %v4035_v13, %v5120_v38 }
 0x2c8   :  { %v1529_v30 = vpack.c.bf16 %v1525_v28, %v1525_v28  ;;  %v4047_v25 = vpack.c.bf16 %v1521_v18, %v1521_v18  ;;  %v5219_v28 = vld [vmem:[#allocation50_spill] sm:$0xff]  ;;  %v5220_v18 = vld [vmem:[#allocation52_spill] sm:$0xff] }
 0x2ca   :  { %1562 = vmatprep.mubr.bf16.mxu1 %v1529_v30  ;;  %1603 = vmatprep.mubr.bf16.mxu0 %v1529_v30 }
 0x2cb   :  { %1563 = vmatmul.mubr.bf16.vlgmr.msra.gmra.mxu1 %v4047_v25  ;;  %1604 = vmatmul.mubr.bf16.vlgmr.msra.gmra.mxu0 %v4047_v25 }
 0x2cc   :  { %1613 = vmatpush1.bf16.msra.mxu1 %v5127_v34  ;;  %1644 = vmatprep.mubr.bf16.mxu1 %v1529_v30  ;;  %v4064_v34 = vld [vmem:[#allocation5 + $0xf4] ss:$24 sps:$4 sm:$0xff]  }
 0x2cd   :  { %1614 = vmatprep.subr.bf16.mxu1 %v5128_v11  ;;  %1743 = vmatpush1.bf16.msra.mxu0 %v4053_v50  ;;  %v4069_v11 = vld [vmem:[#allocation5 + $0xf0] ss:$24 sps:$4 sm:$0xff]  }
 0x2ce   :  { %1744 = vmatprep.subr.bf16.mxu0 %v4056_v8  ;;  %v5221_v30 = vld [vmem:[#allocation54_spill] sm:$0xff] }
 0x2d0   :  { %1615 = vmatpush1.bf16.msra.mxu1 %v5129_v48  ;;  %v4077_v48 = vld [vmem:[#allocation5 + $0xc0] ss:$24 sps:$4 sm:$0xff]  }
 0x2d1   :  { %1616 = vmatprep.subr.bf16.mxu1 %v5130_v33  ;;  %1745 = vmatpush1.bf16.msra.mxu0 %v4061_v22  ;;  %v4080_v33 = vld [vmem:[#allocation5 + $0x94] ss:$24 sps:$4 sm:$0xff]  }
 0x2d2   :  { %1746 = vmatprep.subr.bf16.mxu0 %v4064_v34 }
 0x2d4   :  { %1617 = vmatpush1.bf16.msra.mxu1 %v5131_v56  ;;  %v4085_v56 = vld [vmem:[#allocation5 + $0x90] ss:$24 sps:$4 sm:$0xff]  }
 0x2d5   :  { %1618 = vmatprep.subr.bf16.mxu1 %v5132_v44  ;;  %1747 = vmatpush1.bf16.msra.mxu0 %v4069_v11  ;;  %v4088_v44 = vld [vmem:[#allocation5 + $0x64] ss:$24 sps:$4 sm:$0xff]  }
 0x2d6   :  { %1748 = vmatprep.subr.bf16.mxu0 %v4072_v24 }
 0x2d8   :  { %1619 = vmatpush1.bf16.msra.mxu1 %v5133_v29  ;;  %v4093_v29 = vld [vmem:[#allocation5 + $0x60] ss:$24 sps:$4 sm:$0xff]  }
 0x2d9   :  { %1620 = vmatprep.subr.bf16.mxu1 %v5134_v37  ;;  %1749 = vmatpush1.bf16.msra.mxu0 %v4077_v48  ;;  %v4096_v37 = vld [vmem:[#allocation5 + $0x34] ss:$24 sps:$4 sm:$0xff]  }
 0x2da   :  { %1750 = vmatprep.subr.bf16.mxu0 %v4080_v33 }
 0x2dc   :  { %1621 = vmatpush1.bf16.msra.mxu1 %v5135_v39  ;;  %v4101_v39 = vld [vmem:[#allocation5 + $0x30] ss:$24 sps:$4 sm:$0xff]  }
 0x2dd   :  { %1622 = vmatprep.subr.bf16.mxu1 %v5136_v41  ;;  %1751 = vmatpush1.bf16.msra.mxu0 %v4085_v56  ;;  %v4104_v41 = vld [vmem:[#allocation5 + $0x4] ss:$24 sps:$4 sm:$0xff]  }
 0x2de   :  { %1752 = vmatprep.subr.bf16.mxu0 %v4088_v44 }
 0x2e0   :  { %1623 = vmatpush1.bf16.msra.mxu1 %v5137_v43  ;;  %v4109_v43 = vld [vmem:[#allocation5] ss:$24 sps:$4 sm:$0xff]  }
 0x2e1   :  { %1624 = vmatprep.subr.bf16.mxu1 %v5138_v45  ;;  %1753 = vmatpush1.bf16.msra.mxu0 %v4093_v29  ;;  %v4112_v45 = vld [vmem:[#allocation5 + $0x2d4] ss:$24 sps:$4 sm:$0xff]  }
 0x2e2   :  { %1754 = vmatprep.subr.bf16.mxu0 %v4096_v37 }
 0x2e4   :  { %1625 = vmatpush1.bf16.msra.mxu1 %v5139_v47  ;;  %v4117_v47 = vld [vmem:[#allocation5 + $0x2d0] ss:$24 sps:$4 sm:$0xff]  }
 0x2e5   :  { %1626 = vmatprep.subr.bf16.mxu1 %v5140_v49  ;;  %1755 = vmatpush1.bf16.msra.mxu0 %v4101_v39  ;;  %v4120_v49 = vld [vmem:[#allocation5 + $0x2a4] ss:$24 sps:$4 sm:$0xff]  }
 0x2e6   :  { %1756 = vmatprep.subr.bf16.mxu0 %v4104_v41 }
 0x2e8   :  { %1627 = vmatpush1.bf16.msra.mxu1 %v5141_v51  ;;  %v4125_v51 = vld [vmem:[#allocation5 + $0x2a0] ss:$24 sps:$4 sm:$0xff]  }
 0x2e9   :  { %1628 = vmatprep.subr.bf16.mxu1 %v5142_v53  ;;  %1757 = vmatpush1.bf16.msra.mxu0 %v4109_v43  ;;  %5184 = vst [vmem:[#allocation10_spill] sm:$0xff] %v4125_v51  ;;  %v4128_v53 = vld [vmem:[#allocation5 + $0x274] ss:$24 sps:$4 sm:$0xff]  }
 0x2ea   :  { %1758 = vmatprep.subr.bf16.mxu0 %v4112_v45  ;;  %5185 = vst [vmem:[#allocation11_spill] sm:$0xff] %v4128_v53 }
 0x2ec   :  { %1629 = vmatpush2.bf16.msra.mxu1 %v5143_v55  ;;  %v4133_v55 = vld [vmem:[#allocation5 + $0x270] ss:$24 sps:$4 sm:$0xff]  }
 0x2ed   :  { %1630 = vmatprep.subr.bf16.mxu1 %v5144_v57  ;;  %1759 = vmatpush2.bf16.msra.mxu0 %v4117_v47  ;;  %5186 = vst [vmem:[#allocation29_spill] sm:$0xff] %v4133_v55  ;;  %v4136_v57 = vld [vmem:[#allocation5 + $0x244] ss:$24 sps:$4 sm:$0xff]  }
 0x2ee   :  { %1760 = vmatprep.subr.bf16.mxu0 %v4120_v49  ;;  %5187 = vst [vmem:[#allocation31_spill] sm:$0xff] %v4136_v57 }
 0x2f0   :  { %1631 = vmatpush2.bf16.msra.mxu1 %v5145_v59  ;;  %v4141_v59 = vld [vmem:[#allocation5 + $0x240] ss:$24 sps:$4 sm:$0xff]  }
 0x2f1   :  { %1632 = vmatprep.subr.bf16.mxu1 %v5146_v62  ;;  %1761 = vmatpush2.bf16.msra.mxu0 %v4125_v51  ;;  %5188 = vst [vmem:[#allocation33_spill] sm:$0xff] %v4141_v59  ;;  %v4144_v62 = vld [vmem:[#allocation5 + $0x214] ss:$24 sps:$4 sm:$0xff]  }
 0x2f2   :  { %1762 = vmatprep.subr.bf16.mxu0 %v4128_v53  ;;  %5189 = vst [vmem:[#allocation35_spill] sm:$0xff] %v4144_v62 }
 0x2f4   :  { %1633 = vmatpush2.bf16.msra.mxu1 %v5147_v0  ;;  %v4149_v0 = vld [vmem:[#allocation5 + $0x210] ss:$24 sps:$4 sm:$0xff]  }
 0x2f5   :  { %1634 = vmatprep.subr.bf16.mxu1 %v5148_v3  ;;  %1763 = vmatpush2.bf16.msra.mxu0 %v4133_v55  ;;  %5190 = vst [vmem:[#allocation37_spill] sm:$0xff] %v4149_v0  ;;  %v4152_v3 = vld [vmem:[#allocation5 + $0x1e4] ss:$24 sps:$4 sm:$0xff]  }
 0x2f6   :  { %1764 = vmatprep.subr.bf16.mxu0 %v4136_v57  ;;  %5191 = vst [vmem:[#allocation39_spill] sm:$0xff] %v4152_v3 }
 0x2f8   :  { %1635 = vmatpush2.bf16.msra.mxu1 %v5149_v4  ;;  %v4157_v4 = vld [vmem:[#allocation5 + $0x1e0] ss:$24 sps:$4 sm:$0xff]  }
 0x2f9   :  { %1636 = vmatprep.subr.bf16.mxu1 %v5150_v7  ;;  %1765 = vmatpush2.bf16.msra.mxu0 %v4141_v59  ;;  %5192 = vst [vmem:[#allocation41_spill] sm:$0xff] %v4157_v4  ;;  %v4202_v7 = vld [vmem:[#allocation5 + $0x68] ss:$24 sps:$4 sm:$0xff]  }
 0x2fa   :  { %1766 = vmatprep.subr.bf16.mxu0 %v4144_v62  ;;  %5204 = vst [vmem:[#allocation61_spill] sm:$0xff] %v4202_v7 }
 0x2fc   :  { %1637 = vmatpush2.bf16.msra.mxu1 %v5151_v9  ;;  %v4205_v9 = vld [vmem:[#allocation5 + $0x3c] ss:$24 sps:$4 sm:$0xff]  }
 0x2fd   :  { %1638 = vmatprep.subr.bf16.mxu1 %v3800_v58  ;;  %1767 = vmatpush2.bf16.msra.mxu0 %v4149_v0  ;;  %v4166_v58 = vld [vmem:[#allocation5 + $0x15c] ss:$24 sps:$4 sm:$0xff]   ;;  %5205 = vst [vmem:[#allocation62_spill] sm:$0xff] %v4205_v9 }
 0x2fe   :  { %1768 = vmatprep.subr.bf16.mxu0 %v4152_v3  ;;  %5193 = vst [vmem:[#allocation43_spill] sm:$0xff] %v4166_v58 }
 0x300   :  { %1639 = vmatpush2.bf16.msra.mxu1 %v3804_v14  ;;  %v4199_v14 = vld [vmem:[#allocation5 + $0x6c] ss:$24 sps:$4 sm:$0xff]  }
 0x301   :  { %1640 = vmatprep.subr.bf16.mxu1 %v3808_v63  ;;  %1769 = vmatpush2.bf16.msra.mxu0 %v4157_v4  ;;  %v4193_v63 = vld [vmem:[#allocation5 + $0x9c] ss:$24 sps:$4 sm:$0xff]   ;;  %5203 = vst [vmem:[#allocation60_spill] sm:$0xff] %v4199_v14 }
 0x302   :  { %1770 = vmatprep.subr.bf16.mxu0 %v3631_v32  ;;  %v4172_v32 = vld [vmem:[#allocation5 + $0x158] ss:$24 sps:$4 sm:$0xff]   ;;  %5201 = vst [vmem:[#allocation58_spill] sm:$0xff] %v4193_v63 }
 0x303   :  { %5194 = vst [vmem:[#allocation45_spill] sm:$0xff] %v4172_v32 }
 0x304   :  { %1641 = vmatpush2.bf16.msra.mxu1 %v3812_v12  ;;  %v4196_v12 = vld [vmem:[#allocation5 + $0x98] ss:$24 sps:$4 sm:$0xff]  }
 0x305   :  { %1642 = vmatprep.subr.bf16.mxu1 %v3816_v1  ;;  %1771 = vmatpush2.bf16.msra.mxu0 %v3640_v36  ;;  %v4175_v1 = vld [vmem:[#allocation5 + $0x12c] ss:$24 sps:$4 sm:$0xff]   ;;  %v4178_v36 = vld [vmem:[#allocation5 + $0x128] ss:$24 sps:$4 sm:$0xff]   ;;  %5202 = vst [vmem:[#allocation59_spill] sm:$0xff] %v4196_v12 }
 0x306   :  { %1772 = vmatprep.subr.bf16.mxu0 %v3646_v40  ;;  %5195 = vst [vmem:[#allocation47_spill] sm:$0xff] %v4175_v1  ;;  %5196 = vst [vmem:[#allocation49_spill] sm:$0xff] %v4178_v36  ;;  %v4184_v40 = vld [vmem:[#allocation5 + $0xf8] ss:$24 sps:$4 sm:$0xff]  }
 0x307   :  { %5198 = vst [vmem:[#allocation53_spill] sm:$0xff] %v4184_v40 }
 0x308   :  { %1643 = vmatpush2.bf16.msra.mxu1 %v3820_v60  ;;  %v4181_v60 = vld [vmem:[#allocation5 + $0xfc] ss:$24 sps:$4 sm:$0xff]  }
 0x309   :  { %1783 = vmatprep.subr.bf16.mxu1 %v4166_v58  ;;  %1773 = vmatpush2.bf16.msra.mxu0 %v3654_v46  ;;  %5197 = vst [vmem:[#allocation51_spill] sm:$0xff] %v4181_v60  ;;  %v4187_v46 = vld [vmem:[#allocation5 + $0xcc] ss:$24 sps:$4 sm:$0xff]  }
 0x30a   :  { %1824 = vmatprep.subr.bf16.mxu0 %v3662_v52  ;;  %5199 = vst [vmem:[#allocation55_spill] sm:$0xff] %v4187_v46  ;;  %v4190_v52 = vld [vmem:[#allocation5 + $0xc8] ss:$24 sps:$4 sm:$0xff]  }
 0x30b   :  { %1645 = vmatmul.mubr.bf16.vlgmr.msra.gmra.mxu1 %v4047_v25  ;;  %5200 = vst [vmem:[#allocation57_spill] sm:$0xff] %v4190_v52  ;;  %v5222_v25 = vld [vmem:[#allocation56_spill] sm:$0xff] }
 0x30c   :  { %1784 = vmatpush1.bf16.msra.mxu1 %v4172_v32 }
 0x30d   :  { %1785 = vmatprep.subr.bf16.mxu1 %v4175_v1 }
 0x310   :  { %1786 = vmatpush1.bf16.msra.mxu1 %v4178_v36 }
 0x311   :  { %1787 = vmatprep.subr.bf16.mxu1 %v4181_v60 }
 0x314   :  { %1788 = vmatpush1.bf16.msra.mxu1 %v4184_v40 }
 0x315   :  { %1789 = vmatprep.subr.bf16.mxu1 %v4187_v46 }
 0x318   :  { %1790 = vmatpush1.bf16.msra.mxu1 %v4190_v52 }
 0x319   :  { %1791 = vmatprep.subr.bf16.mxu1 %v4193_v63 }
 0x31c   :  { %1792 = vmatpush1.bf16.msra.mxu1 %v4196_v12 }
 0x31d   :  { %1793 = vmatprep.subr.bf16.mxu1 %v4199_v14 }
 0x320   :  { %1794 = vmatpush1.bf16.msra.mxu1 %v4202_v7 }
 0x321   :  { %1795 = vmatprep.subr.bf16.mxu1 %v4205_v9 }
 0x324   :  { %1796 = vmatpush1.bf16.msra.mxu1 %v4208_v5  ;;  %v1654_v5 = vld [vmem:[#allocation2 + $0x2] ss:$8 sm:$0xf] }
 0x325   :  { %1797 = vmatprep.subr.bf16.mxu1 %v4211_v15 }
 0x328   :  { %1798 = vmatpush1.bf16.msra.mxu1 %v5165_v21  ;;  %v5217_v21 = vld [vmem:[#allocation46_spill] sm:$0xff] }
 0x329   :  { %1799 = vmatprep.subr.bf16.mxu1 %v5166_v61  ;;  %v5218_v61 = vld [vmem:[#allocation48_spill] sm:$0xff] }
 0x32c   :  { %1800 = vmatpush2.bf16.msra.mxu1 %v5208_v27  ;;  %v5223_v27 = vld [vmem:[#allocation23_spill] sm:$0xff] }
 0x32d   :  { %1801 = vmatprep.subr.bf16.mxu1 %v5209_v2 }
 0x330   :  { %1802 = vmatpush2.bf16.msra.mxu1 %v5210_v31 }
 0x331   :  { %1803 = vmatprep.subr.bf16.mxu1 %v5211_v17 }
 0x334   :  { %1804 = vmatpush2.bf16.msra.mxu1 %v5212_v19 }
 0x335   :  { %1805 = vmatprep.subr.bf16.mxu1 %v5213_v26 }
 0x338   :  { %1806 = vmatpush2.bf16.msra.mxu1 %v5214_v23 }
 0x339   :  { %1807 = vmatprep.subr.bf16.mxu1 %v5215_v10 }
 0x33c   :  { %1808 = vmatpush2.bf16.msra.mxu1 %v5216_v16 }
 0x33d   :  { %1809 = vmatprep.subr.bf16.mxu1 %v5217_v21 }
 0x340   :  { %1810 = vmatpush2.bf16.msra.mxu1 %v5218_v61 }
 0x341   :  { %1811 = vmatprep.subr.bf16.mxu1 %v5219_v28 }
 0x344   :  { %1812 = vmatpush2.bf16.msra.mxu1 %v5220_v18 }
 0x345   :  { %1813 = vmatprep.subr.bf16.mxu1 %v5221_v30  ;;  %v1655_v30 = vld [vmem:[#allocation2 + $0x2] ss:$8 sm:$0x30] }
 0x348   :  { %1814 = vmatpush2.bf16.msra.mxu1 %v5222_v25 }
 0x349   :  { %1954 = vmatprep.subr.bf16.mxu1 %v5223_v27  ;;  %v1656_v27 = vor.u32 %v1655_v30, %v1654_v5 }
 0x38b   :  { %v1564_v2 = vpop.f32.mrf.mxu1  ;;  %v1605_v31 = vpop.f32.mrf.mxu0 }
 0x38d   :  { %v1566_v17 = vpop.f32.mrf.mxu1  ;;  %v1607_v19 = vpop.f32.mrf.mxu0 }
 0x38e   :  { %v1661_v21 = vcombine.low %v1564_v2, %v1566_v17  ;;  %v1662_v61 = vcombine.low %v1605_v31, %v1607_v19 }
 0x38f   :  { %v1568_v26 = vpop.f32.mrf.mxu1  ;;  %v1609_v23 = vpop.f32.mrf.mxu0 }
 0x390   :  { %v1669_v28 = vrot.slane %v1661_v21, %v3888_v54  ;;  %v1676_v18 = vrot.slane %v1662_v61, %v3888_v54 }
 0x391   :  { %v1569_v10 = vpop.f32.mrf.mxu1  ;;  %v1610_v16 = vpop.f32.mrf.mxu0 }
 0x392   :  { %v1677_v15 = vcombine.low %v1669_v28, %v1676_v18 }
 0x394   :  { %v1684_v25 = vrot.slane %v1677_v15, %v3888_v54 }
 0x396   :  { %v1686_v9 = vadd.f32 %v1684_v25, %v1656_v27 }
 0x398   :  { %v2942_v7 = vmul.f32 -1.442695, %v1686_v9  ;;  %v1715_v9 = vrot.slane %v1656_v27, 4 }
 0x39a   :  { %3188 = vpow2.f32 %v2942_v7 }
 0x3a7   :  { %v3189_v14 = vpop.eup %3188 }
 0x3a8   :  { %v1690_v26 = vadd.f32 1.0, %v3189_v14 }
 0x3aa   :  { %3190 = vrcp.f32 %v1690_v26 }
 0x3b7   :  { %v3191_v5 = vpop.eup %3190 }
 0x3b8   :  { %v1720_v14 = vrot.slane %v3191_v5, 2 }
 0x3ba   :  { %v1722_v28 = vsub.f32 1.0, %v1720_v14  ;;  %v1724_v25 = vmul.f32 %v1720_v14, %v4035_v13  ;;  %v4256_v13 = vld [vmem:[#allocation5 + $0x160] ss:$24 sps:$4 sm:$0xff]   ;;  %v4299_v14 = vld [vmem:[#allocation5 + $0x44] ss:$24 sps:$4 sm:$0xff]  }
 0x3cb   :  { %v1646_v23 = vpop.f32.mrf.mxu1 }
 0x3cc   :  { %v1693_v2 = vadd.f32 %v1646_v23, %v5183_v20 }
 0x3cd   :  { %v1648_v10 = vpop.f32.mrf.mxu1 }
 0x3ce   :  { %v1694_v31 = vadd.f32 %v1648_v10, %v3900_v6 }
 0x3cf   :  { %v1650_v17 = vpop.f32.mrf.mxu1 }
 0x3d0   :  { %v1697_v19 = vcombine.low %v1693_v2, %v1694_v31  ;;  %v4259_v31 = vld [vmem:[#allocation5 + $0x134] ss:$24 sps:$4 sm:$0xff]   ;;  %v4264_v17 = vld [vmem:[#allocation5 + $0x130] ss:$24 sps:$4 sm:$0xff]  }
 0x3d1   :  { %v1651_v16 = vpop.f32.mrf.mxu1 }
 0x3d2   :  { %v1704_v21 = vrot.slane %v1697_v19, %v3888_v54  ;;  %v4267_v19 = vld [vmem:[#allocation5 + $0x104] ss:$24 sps:$4 sm:$0xff]   ;;  %v4272_v16 = vld [vmem:[#allocation5 + $0x100] ss:$24 sps:$4 sm:$0xff]  }
 0x3d4   :  { %v1711_v15 = vrot.slane %v1704_v21, %v3888_v54  ;;  %v4275_v21 = vld [vmem:[#allocation5 + $0xd4] ss:$24 sps:$4 sm:$0xff]  }
 0x3d6   :  { %v1713_v61 = vmul.f32 %v3191_v5, %v1711_v15  ;;  %v4280_v15 = vld [vmem:[#allocation5 + $0xd0] ss:$24 sps:$4 sm:$0xff]   ;;  %v4283_v5 = vld [vmem:[#allocation5 + $0xa4] ss:$24 sps:$4 sm:$0xff]  }
 0x3d8   :  { %v1717_v7 = vadd.f32 %v1715_v9, %v1713_v61  ;;  %v4288_v61 = vld [vmem:[#allocation5 + $0xa0] ss:$24 sps:$4 sm:$0xff]   ;;  %v4291_v9 = vld [vmem:[#allocation5 + $0x74] ss:$24 sps:$4 sm:$0xff]  }
 0x3da   :  { %3192 = vtanh.f32 %v1717_v7  ;;  %v4296_v7 = vld [vmem:[#allocation5 + $0x70] ss:$24 sps:$4 sm:$0xff]  }
 0x3e7   :  { %v3193_v18 = vpop.eup %3192 }
 0x3e8   :  { %v1723_v30 = vmul.f32 %v3193_v18, %v1722_v28  ;;  %v4304_v28 = vld [vmem:[#allocation5 + $0x40] ss:$24 sps:$4 sm:$0xff]   ;;  %v4307_v18 = vld [vmem:[#allocation5 + $0x14] ss:$24 sps:$4 sm:$0xff]  }
 0x3ea   :  { %v4240_v26 = vadd.f32 %v1724_v25, %v1723_v30  ;;  %v4312_v30 = vld [vmem:[#allocation5 + $0x10] ss:$24 sps:$4 sm:$0xff]   ;;  %v4315_v25 = vld [vmem:[#allocation5 + $0x2e4] ss:$24 sps:$4 sm:$0xff]  }
 0x3eb   :  { %5224 = vst [vmem:[#allocation65_spill] sm:$0xff] %v4315_v25 }
 0x3ec   :  { %2943 = vst.msk [vmem:[%s4822_s6 + $0x2] ss:$8 sm:$0x3] %vm3908_vm0, %v4240_v26  ;;  %v1737_v27 = vrot.slane %v4240_v26, %v5121_v35  ;;  %v1733_v23 = vrot.slane %v4240_v26, %v5120_v38 }
 0x3ee   :  { %v1741_v10 = vpack.c.bf16 %v1737_v27, %v1737_v27  ;;  %v4252_v2 = vpack.c.bf16 %v1733_v23, %v1733_v23  ;;  %v4320_v27 = vld [vmem:[#allocation5 + $0x2e0] ss:$24 sps:$4 sm:$0xff]   ;;  %v4323_v23 = vld [vmem:[#allocation5 + $0x2b4] ss:$24 sps:$4 sm:$0xff]  }
 0x3ef   :  { %5225 = vst [vmem:[#allocation66_spill] sm:$0xff] %v4320_v27  ;;  %5226 = vst [vmem:[#allocation67_spill] sm:$0xff] %v4323_v23 }
 0x3f0   :  { %1774 = vmatprep.mubr.bf16.mxu0 %v1741_v10  ;;  %1815 = vmatprep.mubr.bf16.mxu1 %v1741_v10 }
 0x3f1   :  { %1775 = vmatmul.mubr.bf16.vlgmr.msra.gmra.mxu0 %v4252_v2  ;;  %1816 = vmatmul.mubr.bf16.vlgmr.msra.gmra.mxu1 %v4252_v2 }
 0x3f2   :  { %1825 = vmatpush1.bf16.msra.mxu0 %v4256_v13  ;;  %1856 = vmatprep.mubr.bf16.mxu0 %v1741_v10  ;;  %v4328_v10 = vld [vmem:[#allocation5 + $0x2b0] ss:$24 sps:$4 sm:$0xff]  }
 0x3f3   :  { %1826 = vmatprep.subr.bf16.mxu0 %v4259_v31  ;;  %1955 = vmatpush1.bf16.msra.mxu1 %v4053_v50  ;;  %5227 = vst [vmem:[#allocation12_spill] sm:$0xff] %v4328_v10 }
 0x3f4   :  { %1956 = vmatprep.subr.bf16.mxu1 %v4056_v8 }
 0x3f6   :  { %1827 = vmatpush1.bf16.msra.mxu0 %v4264_v17 }
 0x3f7   :  { %1828 = vmatprep.subr.bf16.mxu0 %v4267_v19  ;;  %1957 = vmatpush1.bf16.msra.mxu1 %v4061_v22 }
 0x3f8   :  { %1958 = vmatprep.subr.bf16.mxu1 %v4064_v34 }
 0x3fa   :  { %1829 = vmatpush1.bf16.msra.mxu0 %v4272_v16 }
 0x3fb   :  { %1830 = vmatprep.subr.bf16.mxu0 %v4275_v21  ;;  %1959 = vmatpush1.bf16.msra.mxu1 %v4069_v11 }
 0x3fc   :  { %1960 = vmatprep.subr.bf16.mxu1 %v4072_v24 }
 0x3fe   :  { %1831 = vmatpush1.bf16.msra.mxu0 %v4280_v15 }
 0x3ff   :  { %1832 = vmatprep.subr.bf16.mxu0 %v4283_v5  ;;  %1961 = vmatpush1.bf16.msra.mxu1 %v4077_v48 }
 0x400   :  { %1962 = vmatprep.subr.bf16.mxu1 %v4080_v33 }
 0x402   :  { %1833 = vmatpush1.bf16.msra.mxu0 %v4288_v61 }
 0x403   :  { %1834 = vmatprep.subr.bf16.mxu0 %v4291_v9  ;;  %1963 = vmatpush1.bf16.msra.mxu1 %v4085_v56 }
 0x404   :  { %1964 = vmatprep.subr.bf16.mxu1 %v4088_v44 }
 0x406   :  { %1835 = vmatpush1.bf16.msra.mxu0 %v4296_v7 }
 0x407   :  { %1836 = vmatprep.subr.bf16.mxu0 %v4299_v14  ;;  %1965 = vmatpush1.bf16.msra.mxu1 %v4093_v29 }
 0x408   :  { %1966 = vmatprep.subr.bf16.mxu1 %v4096_v37 }
 0x40a   :  { %1837 = vmatpush1.bf16.msra.mxu0 %v4304_v28 }
 0x40b   :  { %1838 = vmatprep.subr.bf16.mxu0 %v4307_v18  ;;  %1967 = vmatpush1.bf16.msra.mxu1 %v4101_v39 }
 0x40c   :  { %1968 = vmatprep.subr.bf16.mxu1 %v4104_v41 }
 0x40e   :  { %1839 = vmatpush1.bf16.msra.mxu0 %v4312_v30 }
 0x40f   :  { %1840 = vmatprep.subr.bf16.mxu0 %v4315_v25  ;;  %1969 = vmatpush1.bf16.msra.mxu1 %v4109_v43  ;;  %v4331_v25 = vld [vmem:[#allocation5 + $0x284] ss:$24 sps:$4 sm:$0xff]  }
 0x410   :  { %1970 = vmatprep.subr.bf16.mxu1 %v4112_v45  ;;  %5228 = vst [vmem:[#allocation13_spill] sm:$0xff] %v4331_v25 }
 0x412   :  { %1841 = vmatpush2.bf16.msra.mxu0 %v4320_v27  ;;  %v4336_v27 = vld [vmem:[#allocation5 + $0x280] ss:$24 sps:$4 sm:$0xff]  }
 0x413   :  { %1842 = vmatprep.subr.bf16.mxu0 %v4323_v23  ;;  %1971 = vmatpush2.bf16.msra.mxu1 %v4117_v47  ;;  %5229 = vst [vmem:[#allocation14_spill] sm:$0xff] %v4336_v27  ;;  %v4339_v23 = vld [vmem:[#allocation5 + $0x254] ss:$24 sps:$4 sm:$0xff]  }
 0x414   :  { %1972 = vmatprep.subr.bf16.mxu1 %v4120_v49  ;;  %5230 = vst [vmem:[#allocation15_spill] sm:$0xff] %v4339_v23 }
 0x416   :  { %1843 = vmatpush2.bf16.msra.mxu0 %v4328_v10  ;;  %v4344_v10 = vld [vmem:[#allocation5 + $0x250] ss:$24 sps:$4 sm:$0xff]  }
 0x417   :  { %1844 = vmatprep.subr.bf16.mxu0 %v4331_v25  ;;  %1973 = vmatpush2.bf16.msra.mxu1 %v4125_v51  ;;  %5231 = vst [vmem:[#allocation16_spill] sm:$0xff] %v4344_v10  ;;  %v4347_v25 = vld [vmem:[#allocation5 + $0x224] ss:$24 sps:$4 sm:$0xff]  }
 0x418   :  { %1974 = vmatprep.subr.bf16.mxu1 %v4128_v53  ;;  %5232 = vst [vmem:[#allocation17_spill] sm:$0xff] %v4347_v25 }
 0x41a   :  { %1845 = vmatpush2.bf16.msra.mxu0 %v4336_v27  ;;  %v4352_v27 = vld [vmem:[#allocation5 + $0x220] ss:$24 sps:$4 sm:$0xff]  }
 0x41b   :  { %1846 = vmatprep.subr.bf16.mxu0 %v4339_v23  ;;  %1975 = vmatpush2.bf16.msra.mxu1 %v4133_v55  ;;  %5233 = vst [vmem:[#allocation18_spill] sm:$0xff] %v4352_v27  ;;  %v4355_v23 = vld [vmem:[#allocation5 + $0x1f4] ss:$24 sps:$4 sm:$0xff]  }
 0x41c   :  { %1976 = vmatprep.subr.bf16.mxu1 %v4136_v57  ;;  %5234 = vst [vmem:[#allocation19_spill] sm:$0xff] %v4355_v23 }
 0x41e   :  { %1847 = vmatpush2.bf16.msra.mxu0 %v4344_v10  ;;  %v4360_v10 = vld [vmem:[#allocation5 + $0x1f0] ss:$24 sps:$4 sm:$0xff]  }
 0x41f   :  { %1848 = vmatprep.subr.bf16.mxu0 %v4347_v25  ;;  %1977 = vmatpush2.bf16.msra.mxu1 %v4141_v59  ;;  %5235 = vst [vmem:[#allocation20_spill] sm:$0xff] %v4360_v10  ;;  %v4363_v25 = vld [vmem:[#allocation5 + $0x1c4] ss:$24 sps:$4 sm:$0xff]  }
 0x420   :  { %1978 = vmatprep.subr.bf16.mxu1 %v4144_v62  ;;  %5236 = vst [vmem:[#allocation21_spill] sm:$0xff] %v4363_v25  ;;  %v4367_v62 = vld [vmem:[#allocation5 + $0x1b4] ss:$24 sps:$4 sm:$0xff]  }
 0x421   :  { %5237 = vst [vmem:[#allocation22_spill] sm:$0xff] %v4367_v62 }
 0x422   :  { %1849 = vmatpush2.bf16.msra.mxu0 %v4352_v27  ;;  %v4370_v27 = vld [vmem:[#allocation5 + $0x1c0] ss:$24 sps:$4 sm:$0xff]  }
 0x423   :  { %1850 = vmatprep.subr.bf16.mxu0 %v4355_v23  ;;  %1979 = vmatpush2.bf16.msra.mxu1 %v4149_v0  ;;  %5238 = vst [vmem:[#allocation24_spill] sm:$0xff] %v4370_v27  ;;  %v4373_v0 = vld [vmem:[#allocation5 + $0x194] ss:$24 sps:$4 sm:$0xff]  }
 0x424   :  { %1980 = vmatprep.subr.bf16.mxu1 %v4152_v3  ;;  %5239 = vst [vmem:[#allocation25_spill] sm:$0xff] %v4373_v0  ;;  %v4376_v3 = vld [vmem:[#allocation5 + $0x1b0] ss:$24 sps:$4 sm:$0xff]  }
 0x425   :  { %5240 = vst [vmem:[#allocation26_spill] sm:$0xff] %v4376_v3 }
 0x426   :  { %1851 = vmatpush2.bf16.msra.mxu0 %v4360_v10  ;;  %v4379_v10 = vld [vmem:[#allocation5 + $0x184] ss:$24 sps:$4 sm:$0xff]  }
 0x427   :  { %1852 = vmatprep.subr.bf16.mxu0 %v4363_v25  ;;  %1981 = vmatpush2.bf16.msra.mxu1 %v4157_v4  ;;  %5241 = vst [vmem:[#allocation27_spill] sm:$0xff] %v4379_v10  ;;  %v4382_v4 = vld [vmem:[#allocation5 + $0x190] ss:$24 sps:$4 sm:$0xff]  }
 0x428   :  { %1982 = vmatprep.subr.bf16.mxu1 %v4367_v62  ;;  %5242 = vst [vmem:[#allocation9_spill] sm:$0xff] %v4382_v4  ;;  %v4386_v62 = vld [vmem:[#allocation5 + $0x180] ss:$24 sps:$4 sm:$0xff]  }
 0x429   :  { %5243 = vst [vmem:[#allocation28_spill] sm:$0xff] %v4386_v62 }
 0x42a   :  { %1853 = vmatpush2.bf16.msra.mxu0 %v4370_v27  ;;  %v4389_v27 = vld [vmem:[#allocation5 + $0x164] ss:$24 sps:$4 sm:$0xff]  }
 0x42b   :  { %1854 = vmatprep.subr.bf16.mxu0 %v4373_v0  ;;  %1983 = vmatpush2.bf16.msra.mxu1 %v4376_v3  ;;  %5244 = vst [vmem:[#allocation30_spill] sm:$0xff] %v4389_v27  ;;  %v1867_v3 = vld [vmem:[#allocation2 + $0x3] ss:$8 sm:$0x30] }
 0x42c   :  { %1984 = vmatprep.subr.bf16.mxu1 %v4379_v10  ;;  %v1866_v0 = vld [vmem:[#allocation2 + $0x3] ss:$8 sm:$0xf] }
 0x42e   :  { %1855 = vmatpush2.bf16.msra.mxu0 %v4382_v4 }
 0x42f   :  { %1995 = vmatprep.subr.bf16.mxu0 %v4166_v58  ;;  %1985 = vmatpush2.bf16.msra.mxu1 %v4386_v62 }
 0x430   :  { %2036 = vmatprep.subr.bf16.mxu1 %v4389_v27  ;;  %v5245_v27 = vld [vmem:[#allocation60_spill] sm:$0xff] }
 0x431   :  { %1857 = vmatmul.mubr.bf16.vlgmr.msra.gmra.mxu0 %v4252_v2  ;;  %v5246_v2 = vld [vmem:[#allocation61_spill] sm:$0xff] }
 0x432   :  { %1996 = vmatpush1.bf16.msra.mxu0 %v4172_v32  ;;  %v5247_v32 = vld [vmem:[#allocation62_spill] sm:$0xff] }
 0x433   :  { %1997 = vmatprep.subr.bf16.mxu0 %v4175_v1  ;;  %v5248_v1 = vld [vmem:[#allocation63_spill] sm:$0xff] }
 0x436   :  { %1998 = vmatpush1.bf16.msra.mxu0 %v4178_v36  ;;  %v5249_v36 = vld [vmem:[#allocation64_spill] sm:$0xff] }
 0x437   :  { %1999 = vmatprep.subr.bf16.mxu0 %v4181_v60  ;;  %v4407_v60 = vld [vmem:[#allocation5 + $0x8] ss:$24 sps:$4 sm:$0xff]  }
 0x438   :  { %5250 = vst [vmem:[#allocation32_spill] sm:$0xff] %v4407_v60 }
 0x43a   :  { %2000 = vmatpush1.bf16.msra.mxu0 %v4184_v40 }
 0x43b   :  { %2001 = vmatprep.subr.bf16.mxu0 %v4187_v46  ;;  %v4410_v46 = vld [vmem:[#allocation5 + $0x2dc] ss:$24 sps:$4 sm:$0xff]  }
 0x43c   :  { %5251 = vst [vmem:[#allocation34_spill] sm:$0xff] %v4410_v46 }
 0x43e   :  { %2002 = vmatpush1.bf16.msra.mxu0 %v4190_v52 }
 0x43f   :  { %2003 = vmatprep.subr.bf16.mxu0 %v4193_v63  ;;  %v4413_v63 = vld [vmem:[#allocation5 + $0x2d8] ss:$24 sps:$4 sm:$0xff]  }
 0x440   :  { %5252 = vst [vmem:[#allocation36_spill] sm:$0xff] %v4413_v63 }
 0x442   :  { %2004 = vmatpush1.bf16.msra.mxu0 %v4196_v12 }
 0x443   :  { %2005 = vmatprep.subr.bf16.mxu0 %v5245_v27  ;;  %v4416_v27 = vld [vmem:[#allocation5 + $0x2ac] ss:$24 sps:$4 sm:$0xff]  }
 0x444   :  { %5253 = vst [vmem:[#allocation38_spill] sm:$0xff] %v4416_v27 }
 0x446   :  { %2006 = vmatpush1.bf16.msra.mxu0 %v5246_v2 }
 0x447   :  { %2007 = vmatprep.subr.bf16.mxu0 %v5247_v32  ;;  %v4419_v32 = vld [vmem:[#allocation5 + $0x2a8] ss:$24 sps:$4 sm:$0xff]  }
 0x448   :  { %5254 = vst [vmem:[#allocation40_spill] sm:$0xff] %v4419_v32 }
 0x44a   :  { %2008 = vmatpush1.bf16.msra.mxu0 %v5248_v1 }
 0x44b   :  { %2009 = vmatprep.subr.bf16.mxu0 %v5249_v36  ;;  %v4422_v36 = vld [vmem:[#allocation5 + $0x27c] ss:$24 sps:$4 sm:$0xff]  }
 0x44c   :  { %5255 = vst [vmem:[#allocation42_spill] sm:$0xff] %v4422_v36 }
 0x44e   :  { %2010 = vmatpush1.bf16.msra.mxu0 %v4407_v60  ;;  %v4425_v60 = vld [vmem:[#allocation5 + $0x278] ss:$24 sps:$4 sm:$0xff]  }
 0x44f   :  { %2011 = vmatprep.subr.bf16.mxu0 %v4410_v46  ;;  %5256 = vst [vmem:[#allocation44_spill] sm:$0xff] %v4425_v60  ;;  %v4428_v46 = vld [vmem:[#allocation5 + $0x24c] ss:$24 sps:$4 sm:$0xff]  }
 0x450   :  { %5257 = vst [vmem:[#allocation46_spill] sm:$0xff] %v4428_v46 }
 0x452   :  { %2012 = vmatpush2.bf16.msra.mxu0 %v4413_v63  ;;  %v4431_v63 = vld [vmem:[#allocation5 + $0x248] ss:$24 sps:$4 sm:$0xff]  }
 0x453   :  { %2013 = vmatprep.subr.bf16.mxu0 %v4416_v27  ;;  %5258 = vst [vmem:[#allocation48_spill] sm:$0xff] %v4431_v63  ;;  %v4434_v27 = vld [vmem:[#allocation5 + $0x21c] ss:$24 sps:$4 sm:$0xff]  }
 0x454   :  { %5259 = vst [vmem:[#allocation50_spill] sm:$0xff] %v4434_v27 }
 0x456   :  { %2014 = vmatpush2.bf16.msra.mxu0 %v4419_v32  ;;  %v4437_v32 = vld [vmem:[#allocation5 + $0x218] ss:$24 sps:$4 sm:$0xff]  }
 0x457   :  { %2015 = vmatprep.subr.bf16.mxu0 %v4422_v36  ;;  %5260 = vst [vmem:[#allocation52_spill] sm:$0xff] %v4437_v32  ;;  %v4440_v36 = vld [vmem:[#allocation5 + $0x1ec] ss:$24 sps:$4 sm:$0xff]  }
 0x458   :  { %5261 = vst [vmem:[#allocation54_spill] sm:$0xff] %v4440_v36 }
 0x45a   :  { %2016 = vmatpush2.bf16.msra.mxu0 %v4425_v60  ;;  %v4443_v60 = vld [vmem:[#allocation5 + $0x1e8] ss:$24 sps:$4 sm:$0xff]  }
 0x45b   :  { %2017 = vmatprep.subr.bf16.mxu0 %v4428_v46  ;;  %5262 = vst [vmem:[#allocation56_spill] sm:$0xff] %v4443_v60  ;;  %v4446_v46 = vld [vmem:[#allocation5 + $0x1bc] ss:$24 sps:$4 sm:$0xff]  }
 0x45c   :  { %5263 = vst [vmem:[#allocation68_spill] sm:$0xff] %v4446_v46 }
 0x45e   :  { %2018 = vmatpush2.bf16.msra.mxu0 %v4431_v63  ;;  %v4449_v63 = vld [vmem:[#allocation5 + $0x1b8] ss:$24 sps:$4 sm:$0xff]  }
 0x45f   :  { %2019 = vmatprep.subr.bf16.mxu0 %v4434_v27  ;;  %5264 = vst [vmem:[#allocation69_spill] sm:$0xff] %v4449_v63  ;;  %v4452_v27 = vld [vmem:[#allocation5 + $0x18c] ss:$24 sps:$4 sm:$0xff]  }
 0x460   :  { %5265 = vst [vmem:[#allocation70_spill] sm:$0xff] %v4452_v27 }
 0x462   :  { %2020 = vmatpush2.bf16.msra.mxu0 %v4437_v32  ;;  %v4455_v32 = vld [vmem:[#allocation5 + $0x188] ss:$24 sps:$4 sm:$0xff]  }
 0x463   :  { %2021 = vmatprep.subr.bf16.mxu0 %v4440_v36  ;;  %5266 = vst [vmem:[#allocation71_spill] sm:$0xff] %v4455_v32  ;;  %v5267_v36 = vld [vmem:[#allocation23_spill] sm:$0xff] }
 0x466   :  { %2022 = vmatpush2.bf16.msra.mxu0 %v4443_v60 }
 0x467   :  { %2023 = vmatprep.subr.bf16.mxu0 %v4446_v46 }
 0x46a   :  { %2024 = vmatpush2.bf16.msra.mxu0 %v4449_v63 }
 0x46b   :  { %2025 = vmatprep.subr.bf16.mxu0 %v4452_v27 }
 0x46e   :  { %2026 = vmatpush2.bf16.msra.mxu0 %v4455_v32 }
 0x46f   :  { %2166 = vmatprep.subr.bf16.mxu0 %v5267_v36  ;;  %v1868_v36 = vor.u32 %v1867_v3, %v1866_v0 }
 0x4b1   :  { %v1776_v1 = vpop.f32.mrf.mxu0  ;;  %v1817_v60 = vpop.f32.mrf.mxu1 }
 0x4b3   :  { %v1778_v2 = vpop.f32.mrf.mxu0  ;;  %v1819_v12 = vpop.f32.mrf.mxu1 }
 0x4b4   :  { %v1873_v58 = vcombine.low %v1776_v1, %v1778_v2  ;;  %v1874_v63 = vcombine.low %v1817_v60, %v1819_v12 }
 0x4b5   :  { %v1780_v52 = vpop.f32.mrf.mxu0  ;;  %v1821_v46 = vpop.f32.mrf.mxu1 }
 0x4b6   :  { %v1881_v4 = vrot.slane %v1873_v58, %v3888_v54  ;;  %v1888_v27 = vrot.slane %v1874_v63, %v3888_v54 }
 0x4b7   :  { %v1781_v40 = vpop.f32.mrf.mxu0  ;;  %v1822_v62 = vpop.f32.mrf.mxu1 }
 0x4b8   :  { %v1889_v10 = vcombine.low %v1881_v4, %v1888_v27 }
 0x4ba   :  { %v1896_v32 = vrot.slane %v1889_v10, %v3888_v54 }
 0x4bc   :  { %v1898_v25 = vadd.f32 %v1896_v32, %v1868_v36  ;;  %v1927_v32 = vrot.slane %v1868_v36, 4 }
 0x4be   :  { %v2944_v23 = vmul.f32 -1.442695, %v1898_v25 }
 0x4c0   :  { %3194 = vpow2.f32 %v2944_v23 }
 0x4cd   :  { %v3195_v59 = vpop.eup %3194 }
 0x4ce   :  { %v1902_v52 = vadd.f32 1.0, %v3195_v59 }
 0x4d0   :  { %3196 = vrcp.f32 %v1902_v52 }
 0x4dd   :  { %v3197_v0 = vpop.eup %3196 }
 0x4de   :  { %v1932_v59 = vrot.slane %v3197_v0, 2 }
 0x4e0   :  { %v1934_v27 = vsub.f32 1.0, %v1932_v59  ;;  %v1936_v2 = vmul.f32 %v1932_v59, %v4240_v26  ;;  %v5268_v26 = vld [vmem:[#allocation65_spill] sm:$0xff]  ;;  %v5279_v59 = vld [vmem:[#allocation18_spill] sm:$0xff] }
 0x4f1   :  { %v1858_v40 = vpop.f32.mrf.mxu0 }
 0x4f2   :  { %v1905_v1 = vadd.f32 %v1858_v40, %v5183_v20 }
 0x4f3   :  { %v1860_v62 = vpop.f32.mrf.mxu0 }
 0x4f4   :  { %v1906_v58 = vadd.f32 %v1860_v62, %v3900_v6 }
 0x4f5   :  { %v1862_v60 = vpop.f32.mrf.mxu0 }
 0x4f6   :  { %v1909_v46 = vcombine.low %v1905_v1, %v1906_v58  ;;  %v5269_v58 = vld [vmem:[#allocation66_spill] sm:$0xff]  ;;  %v5270_v60 = vld [vmem:[#allocation67_spill] sm:$0xff] }
 0x4f7   :  { %v1863_v4 = vpop.f32.mrf.mxu0 }
 0x4f8   :  { %v1916_v63 = vrot.slane %v1909_v46, %v3888_v54  ;;  %v5271_v46 = vld [vmem:[#allocation12_spill] sm:$0xff]  ;;  %v5272_v4 = vld [vmem:[#allocation13_spill] sm:$0xff] }
 0x4fa   :  { %v1923_v12 = vrot.slane %v1916_v63, %v3888_v54  ;;  %v5273_v63 = vld [vmem:[#allocation14_spill] sm:$0xff] }
 0x4fc   :  { %v1925_v3 = vmul.f32 %v3197_v0, %v1923_v12  ;;  %v5274_v12 = vld [vmem:[#allocation15_spill] sm:$0xff]  ;;  %v5275_v0 = vld [vmem:[#allocation16_spill] sm:$0xff] }
 0x4fe   :  { %v1929_v25 = vadd.f32 %v1927_v32, %v1925_v3  ;;  %v5276_v3 = vld [vmem:[#allocation17_spill] sm:$0xff] }
 0x4ff   :  { %v5277_v32 = vld [vmem:[#allocation33_spill] sm:$0xff] }
 0x500   :  { %3198 = vtanh.f32 %v1929_v25  ;;  %v5278_v25 = vld [vmem:[#allocation35_spill] sm:$0xff] }
 0x50d   :  { %v3199_v23 = vpop.eup %3198 }
 0x50e   :  { %v1935_v10 = vmul.f32 %v3199_v23, %v1934_v27  ;;  %v5280_v27 = vld [vmem:[#allocation19_spill] sm:$0xff]  ;;  %v5281_v23 = vld [vmem:[#allocation37_spill] sm:$0xff] }
 0x510   :  { %v4467_v52 = vadd.f32 %v1936_v2, %v1935_v10  ;;  %v5282_v10 = vld [vmem:[#allocation39_spill] sm:$0xff]  ;;  %v5283_v2 = vld [vmem:[#allocation20_spill] sm:$0xff] }
 0x512   :  { %2945 = vst.msk [vmem:[%s4822_s6 + $0x3] ss:$8 sm:$0x3] %vm3908_vm0, %v4467_v52  ;;  %v1949_v36 = vrot.slane %v4467_v52, %v5121_v35  ;;  %v1945_v40 = vrot.slane %v4467_v52, %v5120_v38 }
 0x514   :  { %v1953_v62 = vpack.c.bf16 %v1949_v36, %v1949_v36  ;;  %v4479_v1 = vpack.c.bf16 %v1945_v40, %v1945_v40  ;;  %v5284_v36 = vld [vmem:[#allocation21_spill] sm:$0xff] }
 0x515   :  { %v5285_v40 = vld [vmem:[#allocation41_spill] sm:$0xff] }
 0x516   :  { %1986 = vmatprep.mubr.bf16.mxu1 %v1953_v62  ;;  %2027 = vmatprep.mubr.bf16.mxu0 %v1953_v62 }
 0x517   :  { %1987 = vmatmul.mubr.bf16.vlgmr.msra.gmra.mxu1 %v4479_v1  ;;  %2028 = vmatmul.mubr.bf16.vlgmr.msra.gmra.mxu0 %v4479_v1 }
 0x518   :  { %2037 = vmatpush1.bf16.msra.mxu1 %v4256_v13  ;;  %2068 = vmatprep.mubr.bf16.mxu1 %v1953_v62  ;;  %v5286_v62 = vld [vmem:[#allocation22_spill] sm:$0xff] }
 0x519   :  { %2038 = vmatprep.subr.bf16.mxu1 %v4259_v31  ;;  %2167 = vmatpush1.bf16.msra.mxu0 %v4053_v50 }
 0x51a   :  { %2168 = vmatprep.subr.bf16.mxu0 %v4056_v8 }
 0x51c   :  { %2039 = vmatpush1.bf16.msra.mxu1 %v4264_v17 }
 0x51d   :  { %2040 = vmatprep.subr.bf16.mxu1 %v4267_v19  ;;  %2169 = vmatpush1.bf16.msra.mxu0 %v4061_v22 }
 0x51e   :  { %2170 = vmatprep.subr.bf16.mxu0 %v4064_v34 }
 0x520   :  { %2041 = vmatpush1.bf16.msra.mxu1 %v4272_v16 }
 0x521   :  { %2042 = vmatprep.subr.bf16.mxu1 %v4275_v21  ;;  %2171 = vmatpush1.bf16.msra.mxu0 %v4069_v11 }
 0x522   :  { %2172 = vmatprep.subr.bf16.mxu0 %v4072_v24 }
 0x524   :  { %2043 = vmatpush1.bf16.msra.mxu1 %v4280_v15 }
 0x525   :  { %2044 = vmatprep.subr.bf16.mxu1 %v4283_v5  ;;  %2173 = vmatpush1.bf16.msra.mxu0 %v4077_v48 }
 0x526   :  { %2174 = vmatprep.subr.bf16.mxu0 %v4080_v33 }
 0x528   :  { %2045 = vmatpush1.bf16.msra.mxu1 %v4288_v61 }
 0x529   :  { %2046 = vmatprep.subr.bf16.mxu1 %v4291_v9  ;;  %2175 = vmatpush1.bf16.msra.mxu0 %v4085_v56 }
 0x52a   :  { %2176 = vmatprep.subr.bf16.mxu0 %v4088_v44 }
 0x52c   :  { %2047 = vmatpush1.bf16.msra.mxu1 %v4296_v7 }
 0x52d   :  { %2048 = vmatprep.subr.bf16.mxu1 %v4299_v14  ;;  %2177 = vmatpush1.bf16.msra.mxu0 %v4093_v29 }
 0x52e   :  { %2178 = vmatprep.subr.bf16.mxu0 %v4096_v37 }
 0x530   :  { %2049 = vmatpush1.bf16.msra.mxu1 %v4304_v28 }
 0x531   :  { %2050 = vmatprep.subr.bf16.mxu1 %v4307_v18  ;;  %2179 = vmatpush1.bf16.msra.mxu0 %v4101_v39 }
 0x532   :  { %2180 = vmatprep.subr.bf16.mxu0 %v4104_v41 }
 0x534   :  { %2051 = vmatpush1.bf16.msra.mxu1 %v4312_v30 }
 0x535   :  { %2052 = vmatprep.subr.bf16.mxu1 %v5268_v26  ;;  %2181 = vmatpush1.bf16.msra.mxu0 %v4109_v43 }
 0x536   :  { %2182 = vmatprep.subr.bf16.mxu0 %v4112_v45 }
 0x538   :  { %2053 = vmatpush2.bf16.msra.mxu1 %v5269_v58 }
 0x539   :  { %2054 = vmatprep.subr.bf16.mxu1 %v5270_v60  ;;  %2183 = vmatpush2.bf16.msra.mxu0 %v4117_v47 }
 0x53a   :  { %2184 = vmatprep.subr.bf16.mxu0 %v4120_v49 }
 0x53c   :  { %2055 = vmatpush2.bf16.msra.mxu1 %v5271_v46 }
 0x53d   :  { %2056 = vmatprep.subr.bf16.mxu1 %v5272_v4  ;;  %2185 = vmatpush2.bf16.msra.mxu0 %v4125_v51 }
 0x53e   :  { %2186 = vmatprep.subr.bf16.mxu0 %v4128_v53 }
 0x540   :  { %2057 = vmatpush2.bf16.msra.mxu1 %v5273_v63  ;;  %v2078_v63 = vld [vmem:[#allocation2 + $0x4] ss:$8 sm:$0xf] }
 0x541   :  { %2058 = vmatprep.subr.bf16.mxu1 %v5274_v12  ;;  %2187 = vmatpush2.bf16.msra.mxu0 %v4133_v55 }
 0x542   :  { %2188 = vmatprep.subr.bf16.mxu0 %v4136_v57 }
 0x544   :  { %2059 = vmatpush2.bf16.msra.mxu1 %v5275_v0 }
 0x545   :  { %2060 = vmatprep.subr.bf16.mxu1 %v5276_v3  ;;  %2189 = vmatpush2.bf16.msra.mxu0 %v5277_v32  ;;  %v5287_v3 = vld [vmem:[#allocation24_spill] sm:$0xff]  ;;  %v5288_v32 = vld [vmem:[#allocation25_spill] sm:$0xff] }
 0x546   :  { %2190 = vmatprep.subr.bf16.mxu0 %v5278_v25  ;;  %v5289_v25 = vld [vmem:[#allocation26_spill] sm:$0xff] }
 0x548   :  { %2061 = vmatpush2.bf16.msra.mxu1 %v5279_v59  ;;  %v5290_v59 = vld [vmem:[#allocation27_spill] sm:$0xff] }
 0x549   :  { %2062 = vmatprep.subr.bf16.mxu1 %v5280_v27  ;;  %2191 = vmatpush2.bf16.msra.mxu0 %v5281_v23  ;;  %v5291_v27 = vld [vmem:[#allocation9_spill] sm:$0xff]  ;;  %v5292_v23 = vld [vmem:[#allocation43_spill] sm:$0xff] }
 0x54a   :  { %2192 = vmatprep.subr.bf16.mxu0 %v5282_v10  ;;  %v5293_v10 = vld [vmem:[#allocation28_spill] sm:$0xff] }
 0x54c   :  { %2063 = vmatpush2.bf16.msra.mxu1 %v5283_v2  ;;  %v5294_v2 = vld [vmem:[#allocation30_spill] sm:$0xff] }
 0x54d   :  { %2064 = vmatprep.subr.bf16.mxu1 %v5284_v36  ;;  %2193 = vmatpush2.bf16.msra.mxu0 %v5285_v40  ;;  %v5295_v40 = vld [vmem:[#allocation45_spill] sm:$0xff] }
 0x54e   :  { %2194 = vmatprep.subr.bf16.mxu0 %v5286_v62  ;;  %v5296_v62 = vld [vmem:[#allocation47_spill] sm:$0xff] }
 0x550   :  { %2065 = vmatpush2.bf16.msra.mxu1 %v5287_v3  ;;  %v5297_v3 = vld [vmem:[#allocation49_spill] sm:$0xff] }
 0x551   :  { %2066 = vmatprep.subr.bf16.mxu1 %v5288_v32  ;;  %2195 = vmatpush2.bf16.msra.mxu0 %v5289_v25  ;;  %v5298_v32 = vld [vmem:[#allocation51_spill] sm:$0xff]  ;;  %v5299_v25 = vld [vmem:[#allocation53_spill] sm:$0xff] }
 0x552   :  { %2196 = vmatprep.subr.bf16.mxu0 %v5290_v59  ;;  %v5300_v59 = vld [vmem:[#allocation55_spill] sm:$0xff] }
 0x554   :  { %2067 = vmatpush2.bf16.msra.mxu1 %v5291_v27  ;;  %v5301_v27 = vld [vmem:[#allocation57_spill] sm:$0xff] }
 0x555   :  { %2207 = vmatprep.subr.bf16.mxu1 %v5292_v23  ;;  %2197 = vmatpush2.bf16.msra.mxu0 %v5293_v10  ;;  %v5302_v23 = vld [vmem:[#allocation58_spill] sm:$0xff]  ;;  %v5303_v10 = vld [vmem:[#allocation59_spill] sm:$0xff] }
 0x556   :  { %2248 = vmatprep.subr.bf16.mxu0 %v5294_v2  ;;  %v5304_v2 = vld [vmem:[#allocation60_spill] sm:$0xff] }
 0x557   :  { %2069 = vmatmul.mubr.bf16.vlgmr.msra.gmra.mxu1 %v4479_v1  ;;  %v5305_v1 = vld [vmem:[#allocation61_spill] sm:$0xff] }
 0x558   :  { %2208 = vmatpush1.bf16.msra.mxu1 %v5295_v40  ;;  %v5306_v40 = vld [vmem:[#allocation62_spill] sm:$0xff] }
 0x559   :  { %2209 = vmatprep.subr.bf16.mxu1 %v5296_v62  ;;  %v5307_v62 = vld [vmem:[#allocation63_spill] sm:$0xff] }
 0x55c   :  { %2210 = vmatpush1.bf16.msra.mxu1 %v5297_v3  ;;  %v5308_v3 = vld [vmem:[#allocation64_spill] sm:$0xff] }
 0x55d   :  { %2211 = vmatprep.subr.bf16.mxu1 %v5298_v32  ;;  %v5309_v32 = vld [vmem:[#allocation32_spill] sm:$0xff] }
 0x560   :  { %2212 = vmatpush1.bf16.msra.mxu1 %v5299_v25  ;;  %v5310_v25 = vld [vmem:[#allocation34_spill] sm:$0xff] }
 0x561   :  { %2213 = vmatprep.subr.bf16.mxu1 %v5300_v59  ;;  %v5311_v59 = vld [vmem:[#allocation36_spill] sm:$0xff] }
 0x564   :  { %2214 = vmatpush1.bf16.msra.mxu1 %v5301_v27  ;;  %v5312_v27 = vld [vmem:[#allocation38_spill] sm:$0xff] }
 0x565   :  { %2215 = vmatprep.subr.bf16.mxu1 %v5302_v23  ;;  %v5313_v23 = vld [vmem:[#allocation40_spill] sm:$0xff] }
 0x568   :  { %2216 = vmatpush1.bf16.msra.mxu1 %v5303_v10  ;;  %v5314_v10 = vld [vmem:[#allocation42_spill] sm:$0xff] }
 0x569   :  { %2217 = vmatprep.subr.bf16.mxu1 %v5304_v2  ;;  %v5315_v2 = vld [vmem:[#allocation44_spill] sm:$0xff] }
 0x56c   :  { %2218 = vmatpush1.bf16.msra.mxu1 %v5305_v1  ;;  %v5316_v1 = vld [vmem:[#allocation46_spill] sm:$0xff] }
 0x56d   :  { %2219 = vmatprep.subr.bf16.mxu1 %v5306_v40  ;;  %v5317_v40 = vld [vmem:[#allocation48_spill] sm:$0xff] }
 0x570   :  { %2220 = vmatpush1.bf16.msra.mxu1 %v5307_v62  ;;  %v5318_v62 = vld [vmem:[#allocation50_spill] sm:$0xff] }
 0x571   :  { %2221 = vmatprep.subr.bf16.mxu1 %v5308_v3  ;;  %v5319_v3 = vld [vmem:[#allocation52_spill] sm:$0xff] }
 0x574   :  { %2222 = vmatpush1.bf16.msra.mxu1 %v5309_v32  ;;  %v5320_v32 = vld [vmem:[#allocation54_spill] sm:$0xff] }
 0x575   :  { %2223 = vmatprep.subr.bf16.mxu1 %v5310_v25  ;;  %v5321_v25 = vld [vmem:[#allocation56_spill] sm:$0xff] }
 0x578   :  { %2224 = vmatpush2.bf16.msra.mxu1 %v5311_v59  ;;  %v5322_v59 = vld [vmem:[#allocation68_spill] sm:$0xff] }
 0x579   :  { %2225 = vmatprep.subr.bf16.mxu1 %v5312_v27  ;;  %v5323_v27 = vld [vmem:[#allocation69_spill] sm:$0xff] }
 0x57c   :  { %2226 = vmatpush2.bf16.msra.mxu1 %v5313_v23  ;;  %v5324_v23 = vld [vmem:[#allocation70_spill] sm:$0xff] }
 0x57d   :  { %2227 = vmatprep.subr.bf16.mxu1 %v5314_v10  ;;  %v5325_v10 = vld [vmem:[#allocation71_spill] sm:$0xff] }
 0x580   :  { %2228 = vmatpush2.bf16.msra.mxu1 %v5315_v2  ;;  %v5326_v2 = vld [vmem:[#allocation23_spill] sm:$0xff] }
 0x581   :  { %2229 = vmatprep.subr.bf16.mxu1 %v5316_v1 }
 0x584   :  { %2230 = vmatpush2.bf16.msra.mxu1 %v5317_v40 }
 0x585   :  { %2231 = vmatprep.subr.bf16.mxu1 %v5318_v62 }
 0x588   :  { %2232 = vmatpush2.bf16.msra.mxu1 %v5319_v3 }
 0x589   :  { %2233 = vmatprep.subr.bf16.mxu1 %v5320_v32 }
 0x58c   :  { %2234 = vmatpush2.bf16.msra.mxu1 %v5321_v25 }
 0x58d   :  { %2235 = vmatprep.subr.bf16.mxu1 %v5322_v59 }
 0x590   :  { %2236 = vmatpush2.bf16.msra.mxu1 %v5323_v27 }
 0x591   :  { %2237 = vmatprep.subr.bf16.mxu1 %v5324_v23  ;;  %v2079_v23 = vld [vmem:[#allocation2 + $0x4] ss:$8 sm:$0x30] }
 0x594   :  { %2238 = vmatpush2.bf16.msra.mxu1 %v5325_v10 }
 0x595   :  { %2378 = vmatprep.subr.bf16.mxu1 %v5326_v2  ;;  %v2080_v2 = vor.u32 %v2079_v23, %v2078_v63 }
 0x5d7   :  { %v1988_v1 = vpop.f32.mrf.mxu1  ;;  %v2029_v40 = vpop.f32.mrf.mxu0 }
 0x5d9   :  { %v1990_v36 = vpop.f32.mrf.mxu1  ;;  %v2031_v62 = vpop.f32.mrf.mxu0 }
 0x5da   :  { %v2085_v55 = vcombine.low %v1988_v1, %v1990_v36  ;;  %v2086_v25 = vcombine.low %v2029_v40, %v2031_v62 }
 0x5db   :  { %v1992_v0 = vpop.f32.mrf.mxu1  ;;  %v2033_v3 = vpop.f32.mrf.mxu0 }
 0x5dc   :  { %v2093_v59 = vrot.slane %v2085_v55, %v3888_v54  ;;  %v2100_v27 = vrot.slane %v2086_v25, %v3888_v54 }
 0x5dd   :  { %v1993_v57 = vpop.f32.mrf.mxu1  ;;  %v2034_v32 = vpop.f32.mrf.mxu0 }
 0x5de   :  { %v2101_v12 = vcombine.low %v2093_v59, %v2100_v27 }
 0x5e0   :  { %v2108_v10 = vrot.slane %v2101_v12, %v3888_v54 }
 0x5e2   :  { %v2110_v53 = vadd.f32 %v2108_v10, %v2080_v2 }
 0x5e4   :  { %v2946_v51 = vmul.f32 -1.442695, %v2110_v53  ;;  %v2139_v53 = vrot.slane %v2080_v2, 4 }
 0x5e6   :  { %3200 = vpow2.f32 %v2946_v51 }
 0x5f3   :  { %v3201_v4 = vpop.eup %3200 }
 0x5f4   :  { %v2114_v0 = vadd.f32 1.0, %v3201_v4 }
 0x5f6   :  { %3202 = vrcp.f32 %v2114_v0 }
 0x603   :  { %v3203_v63 = vpop.eup %3202 }
 0x604   :  { %v2144_v4 = vrot.slane %v3203_v63, 2 }
 0x606   :  { %v2146_v10 = vsub.f32 1.0, %v2144_v4  ;;  %v2148_v1 = vmul.f32 %v2144_v4, %v4467_v52  ;;  %v5345_v52 = vld [vmem:[#allocation22_spill] sm:$0xff]  ;;  %v5356_v4 = vld [vmem:[#allocation49_spill] sm:$0xff] }
 0x617   :  { %v2070_v57 = vpop.f32.mrf.mxu1 }
 0x618   :  { %v2117_v32 = vadd.f32 %v2070_v57, %v5183_v20 }
 0x619   :  { %v2072_v3 = vpop.f32.mrf.mxu1 }
 0x61a   :  { %v2118_v55 = vadd.f32 %v2072_v3, %v3900_v6 }
 0x61b   :  { %v2074_v36 = vpop.f32.mrf.mxu1 }
 0x61c   :  { %v2121_v25 = vcombine.low %v2117_v32, %v2118_v55  ;;  %v5346_v55 = vld [vmem:[#allocation24_spill] sm:$0xff]  ;;  %v5347_v36 = vld [vmem:[#allocation25_spill] sm:$0xff] }
 0x61d   :  { %v2075_v59 = vpop.f32.mrf.mxu1 }
 0x61e   :  { %v2128_v27 = vrot.slane %v2121_v25, %v3888_v54  ;;  %v5348_v25 = vld [vmem:[#allocation26_spill] sm:$0xff]  ;;  %v5349_v59 = vld [vmem:[#allocation27_spill] sm:$0xff] }
 0x620   :  { %v2135_v12 = vrot.slane %v2128_v27, %v3888_v54  ;;  %v5350_v27 = vld [vmem:[#allocation9_spill] sm:$0xff] }
 0x622   :  { %v2137_v23 = vmul.f32 %v3203_v63, %v2135_v12  ;;  %v5351_v12 = vld [vmem:[#allocation43_spill] sm:$0xff]  ;;  %v5352_v63 = vld [vmem:[#allocation28_spill] sm:$0xff] }
 0x624   :  { %v2141_v51 = vadd.f32 %v2139_v53, %v2137_v23  ;;  %v5353_v23 = vld [vmem:[#allocation30_spill] sm:$0xff]  ;;  %v5354_v53 = vld [vmem:[#allocation45_spill] sm:$0xff] }
 0x626   :  { %3204 = vtanh.f32 %v2141_v51  ;;  %v5355_v51 = vld [vmem:[#allocation47_spill] sm:$0xff] }
 0x633   :  { %v3205_v40 = vpop.eup %3204 }
 0x634   :  { %v2147_v62 = vmul.f32 %v3205_v40, %v2146_v10  ;;  %v5357_v10 = vld [vmem:[#allocation51_spill] sm:$0xff]  ;;  %v5358_v40 = vld [vmem:[#allocation53_spill] sm:$0xff] }
 0x636   :  { %v4588_v0 = vadd.f32 %v2148_v1, %v2147_v62  ;;  %v5359_v62 = vld [vmem:[#allocation55_spill] sm:$0xff]  ;;  %v5360_v1 = vld [vmem:[#allocation57_spill] sm:$0xff] }
 0x638   :  { %2947 = vst.msk [vmem:[%s4822_s6 + $0x4] ss:$8 sm:$0x3] %vm3908_vm0, %v4588_v0  ;;  %v2161_v2 = vrot.slane %v4588_v0, %v5121_v35  ;;  %v2157_v57 = vrot.slane %v4588_v0, %v5120_v38 }
 0x63a   :  { %v2165_v3 = vpack.c.bf16 %v2161_v2, %v2161_v2  ;;  %v4600_v32 = vpack.c.bf16 %v2157_v57, %v2157_v57  ;;  %v5361_v2 = vld [vmem:[#allocation58_spill] sm:$0xff]  ;;  %v5362_v57 = vld [vmem:[#allocation59_spill] sm:$0xff] }
 0x63c   :  { %2198 = vmatprep.mubr.bf16.mxu0 %v2165_v3  ;;  %2239 = vmatprep.mubr.bf16.mxu1 %v2165_v3 }
 0x63d   :  { %2199 = vmatmul.mubr.bf16.vlgmr.msra.gmra.mxu0 %v4600_v32  ;;  %2240 = vmatmul.mubr.bf16.vlgmr.msra.gmra.mxu1 %v4600_v32 }
 0x63e   :  { %2249 = vmatpush1.bf16.msra.mxu0 %v4256_v13  ;;  %2280 = vmatprep.mubr.bf16.mxu0 %v2165_v3  ;;  %v5363_v3 = vld [vmem:[#allocation60_spill] sm:$0xff] }
 0x63f   :  { %2250 = vmatprep.subr.bf16.mxu0 %v4259_v31  ;;  %2379 = vmatpush1.bf16.msra.mxu1 %v4053_v50  ;;  %v5327_v50 = vld [vmem:[#allocation13_spill] sm:$0xff] }
 0x640   :  { %2380 = vmatprep.subr.bf16.mxu1 %v4056_v8  ;;  %v5328_v8 = vld [vmem:[#allocation10_spill] sm:$0xff] }
 0x642   :  { %2251 = vmatpush1.bf16.msra.mxu0 %v4264_v17 }
 0x643   :  { %2252 = vmatprep.subr.bf16.mxu0 %v4267_v19  ;;  %2381 = vmatpush1.bf16.msra.mxu1 %v4061_v22  ;;  %v5329_v22 = vld [vmem:[#allocation11_spill] sm:$0xff] }
 0x644   :  { %2382 = vmatprep.subr.bf16.mxu1 %v4064_v34  ;;  %v5330_v34 = vld [vmem:[#allocation14_spill] sm:$0xff] }
 0x646   :  { %2253 = vmatpush1.bf16.msra.mxu0 %v4272_v16 }
 0x647   :  { %2254 = vmatprep.subr.bf16.mxu0 %v4275_v21  ;;  %2383 = vmatpush1.bf16.msra.mxu1 %v4069_v11  ;;  %v5331_v11 = vld [vmem:[#allocation15_spill] sm:$0xff] }
 0x648   :  { %2384 = vmatprep.subr.bf16.mxu1 %v4072_v24  ;;  %v5332_v24 = vld [vmem:[#allocation29_spill] sm:$0xff] }
 0x64a   :  { %2255 = vmatpush1.bf16.msra.mxu0 %v4280_v15 }
 0x64b   :  { %2256 = vmatprep.subr.bf16.mxu0 %v4283_v5  ;;  %2385 = vmatpush1.bf16.msra.mxu1 %v4077_v48  ;;  %v5333_v48 = vld [vmem:[#allocation31_spill] sm:$0xff] }
 0x64c   :  { %2386 = vmatprep.subr.bf16.mxu1 %v4080_v33  ;;  %v5334_v33 = vld [vmem:[#allocation16_spill] sm:$0xff] }
 0x64e   :  { %2257 = vmatpush1.bf16.msra.mxu0 %v4288_v61 }
 0x64f   :  { %2258 = vmatprep.subr.bf16.mxu0 %v4291_v9  ;;  %2387 = vmatpush1.bf16.msra.mxu1 %v4085_v56  ;;  %v5335_v56 = vld [vmem:[#allocation17_spill] sm:$0xff] }
 0x650   :  { %2388 = vmatprep.subr.bf16.mxu1 %v4088_v44  ;;  %v5336_v44 = vld [vmem:[#allocation33_spill] sm:$0xff] }
 0x652   :  { %2259 = vmatpush1.bf16.msra.mxu0 %v4296_v7 }
 0x653   :  { %2260 = vmatprep.subr.bf16.mxu0 %v4299_v14  ;;  %2389 = vmatpush1.bf16.msra.mxu1 %v4093_v29  ;;  %v5337_v29 = vld [vmem:[#allocation35_spill] sm:$0xff] }
 0x654   :  { %2390 = vmatprep.subr.bf16.mxu1 %v4096_v37  ;;  %v5338_v37 = vld [vmem:[#allocation18_spill] sm:$0xff] }
 0x656   :  { %2261 = vmatpush1.bf16.msra.mxu0 %v4304_v28 }
 0x657   :  { %2262 = vmatprep.subr.bf16.mxu0 %v4307_v18  ;;  %2391 = vmatpush1.bf16.msra.mxu1 %v4101_v39  ;;  %v5339_v39 = vld [vmem:[#allocation19_spill] sm:$0xff] }
 0x658   :  { %2392 = vmatprep.subr.bf16.mxu1 %v4104_v41  ;;  %v5340_v41 = vld [vmem:[#allocation37_spill] sm:$0xff] }
 0x65a   :  { %2263 = vmatpush1.bf16.msra.mxu0 %v4312_v30 }
 0x65b   :  { %2264 = vmatprep.subr.bf16.mxu0 %v5268_v26  ;;  %2393 = vmatpush1.bf16.msra.mxu1 %v4109_v43  ;;  %v5341_v43 = vld [vmem:[#allocation39_spill] sm:$0xff] }
 0x65c   :  { %2394 = vmatprep.subr.bf16.mxu1 %v4112_v45  ;;  %v5342_v45 = vld [vmem:[#allocation20_spill] sm:$0xff] }
 0x65e   :  { %2265 = vmatpush2.bf16.msra.mxu0 %v5269_v58 }
 0x65f   :  { %2266 = vmatprep.subr.bf16.mxu0 %v5270_v60  ;;  %2395 = vmatpush2.bf16.msra.mxu1 %v4117_v47  ;;  %v5343_v47 = vld [vmem:[#allocation21_spill] sm:$0xff] }
 0x660   :  { %2396 = vmatprep.subr.bf16.mxu1 %v4120_v49  ;;  %v5344_v49 = vld [vmem:[#allocation41_spill] sm:$0xff] }
 0x662   :  { %2267 = vmatpush2.bf16.msra.mxu0 %v5271_v46 }
 0x663   :  { %2268 = vmatprep.subr.bf16.mxu0 %v5327_v50  ;;  %2397 = vmatpush2.bf16.msra.mxu1 %v5328_v8  ;;  %v5365_v8 = vld [vmem:[#allocation62_spill] sm:$0xff] }
 0x664   :  { %2398 = vmatprep.subr.bf16.mxu1 %v5329_v22  ;;  %v5366_v22 = vld [vmem:[#allocation63_spill] sm:$0xff] }
 0x666   :  { %2269 = vmatpush2.bf16.msra.mxu0 %v5330_v34 }
 0x667   :  { %2270 = vmatprep.subr.bf16.mxu0 %v5331_v11  ;;  %2399 = vmatpush2.bf16.msra.mxu1 %v5332_v24  ;;  %v5367_v24 = vld [vmem:[#allocation64_spill] sm:$0xff] }
 0x668   :  { %2400 = vmatprep.subr.bf16.mxu1 %v5333_v48  ;;  %v5368_v48 = vld [vmem:[#allocation32_spill] sm:$0xff] }
 0x66a   :  { %2271 = vmatpush2.bf16.msra.mxu0 %v5334_v33 }
 0x66b   :  { %2272 = vmatprep.subr.bf16.mxu0 %v5335_v56  ;;  %2401 = vmatpush2.bf16.msra.mxu1 %v5336_v44  ;;  %v5369_v44 = vld [vmem:[#allocation34_spill] sm:$0xff] }
 0x66c   :  { %2402 = vmatprep.subr.bf16.mxu1 %v5337_v29  ;;  %v5370_v29 = vld [vmem:[#allocation36_spill] sm:$0xff] }
 0x66e   :  { %2273 = vmatpush2.bf16.msra.mxu0 %v5338_v37 }
 0x66f   :  { %2274 = vmatprep.subr.bf16.mxu0 %v5339_v39  ;;  %2403 = vmatpush2.bf16.msra.mxu1 %v5340_v41  ;;  %v5371_v41 = vld [vmem:[#allocation38_spill] sm:$0xff] }
 0x670   :  { %2404 = vmatprep.subr.bf16.mxu1 %v5341_v43  ;;  %v5372_v43 = vld [vmem:[#allocation40_spill] sm:$0xff] }
 0x672   :  { %2275 = vmatpush2.bf16.msra.mxu0 %v5342_v45 }
 0x673   :  { %2276 = vmatprep.subr.bf16.mxu0 %v5343_v47  ;;  %2405 = vmatpush2.bf16.msra.mxu1 %v5344_v49  ;;  %v5373_v49 = vld [vmem:[#allocation42_spill] sm:$0xff] }
 0x674   :  { %2406 = vmatprep.subr.bf16.mxu1 %v5345_v52 }
 0x676   :  { %2277 = vmatpush2.bf16.msra.mxu0 %v5346_v55 }
 0x677   :  { %2278 = vmatprep.subr.bf16.mxu0 %v5347_v36  ;;  %2407 = vmatpush2.bf16.msra.mxu1 %v5348_v25 }
 0x678   :  { %2408 = vmatprep.subr.bf16.mxu1 %v5349_v59 }
 0x67a   :  { %2279 = vmatpush2.bf16.msra.mxu0 %v5350_v27 }
 0x67b   :  { %2419 = vmatprep.subr.bf16.mxu0 %v5351_v12  ;;  %2409 = vmatpush2.bf16.msra.mxu1 %v5352_v63  ;;  %v5374_v12 = vld [vmem:[#allocation44_spill] sm:$0xff] }
 0x67c   :  { %2460 = vmatprep.subr.bf16.mxu1 %v5353_v23 }
 0x67d   :  { %2281 = vmatmul.mubr.bf16.vlgmr.msra.gmra.mxu0 %v4600_v32  ;;  %v5364_v32 = vld [vmem:[#allocation61_spill] sm:$0xff] }
 0x67e   :  { %2420 = vmatpush1.bf16.msra.mxu0 %v5354_v53  ;;  %v5375_v53 = vld [vmem:[#allocation46_spill] sm:$0xff] }
 0x67f   :  { %2421 = vmatprep.subr.bf16.mxu0 %v5355_v51  ;;  %v5376_v51 = vld [vmem:[#allocation48_spill] sm:$0xff] }
 0x682   :  { %2422 = vmatpush1.bf16.msra.mxu0 %v5356_v4  ;;  %v5377_v4 = vld [vmem:[#allocation50_spill] sm:$0xff] }
 0x683   :  { %2423 = vmatprep.subr.bf16.mxu0 %v5357_v10  ;;  %v5378_v10 = vld [vmem:[#allocation52_spill] sm:$0xff] }
 0x686   :  { %2424 = vmatpush1.bf16.msra.mxu0 %v5358_v40  ;;  %v5379_v40 = vld [vmem:[#allocation54_spill] sm:$0xff] }
 0x687   :  { %2425 = vmatprep.subr.bf16.mxu0 %v5359_v62  ;;  %v5380_v62 = vld [vmem:[#allocation56_spill] sm:$0xff] }
 0x68a   :  { %2426 = vmatpush1.bf16.msra.mxu0 %v5360_v1  ;;  %v5381_v1 = vld [vmem:[#allocation68_spill] sm:$0xff] }
 0x68b   :  { %2427 = vmatprep.subr.bf16.mxu0 %v5361_v2  ;;  %v5382_v2 = vld [vmem:[#allocation69_spill] sm:$0xff] }
 0x68e   :  { %2428 = vmatpush1.bf16.msra.mxu0 %v5362_v57  ;;  %v5383_v57 = vld [vmem:[#allocation70_spill] sm:$0xff] }
 0x68f   :  { %2429 = vmatprep.subr.bf16.mxu0 %v5363_v3  ;;  %v5384_v3 = vld [vmem:[#allocation71_spill] sm:$0xff] }
 0x692   :  { %2430 = vmatpush1.bf16.msra.mxu0 %v5364_v32  ;;  %v3320_v32 = vld [vmem:[#allocation5 + $0x154] ss:$24 sps:$4 sm:$0xff]  }
 0x693   :  { %2431 = vmatprep.subr.bf16.mxu0 %v5365_v8 }
 0x696   :  { %2432 = vmatpush1.bf16.msra.mxu0 %v5366_v22 }
 0x697   :  { %2433 = vmatprep.subr.bf16.mxu0 %v5367_v24 }
 0x69a   :  { %2434 = vmatpush1.bf16.msra.mxu0 %v5368_v48 }
 0x69b   :  { %2435 = vmatprep.subr.bf16.mxu0 %v5369_v44 }
 0x69e   :  { %2436 = vmatpush2.bf16.msra.mxu0 %v5370_v29 }
 0x69f   :  { %2437 = vmatprep.subr.bf16.mxu0 %v5371_v41 }
 0x6a2   :  { %2438 = vmatpush2.bf16.msra.mxu0 %v5372_v43  ;;  %v2290_v43 = vld [vmem:[#allocation2 + $0x5] ss:$8 sm:$0xf] }
 0x6a3   :  { %2439 = vmatprep.subr.bf16.mxu0 %v5373_v49 }
 0x6a6   :  { %2440 = vmatpush2.bf16.msra.mxu0 %v5374_v12 }
 0x6a7   :  { %2441 = vmatprep.subr.bf16.mxu0 %v5375_v53 }
 0x6aa   :  { %2442 = vmatpush2.bf16.msra.mxu0 %v5376_v51 }
 0x6ab   :  { %2443 = vmatprep.subr.bf16.mxu0 %v5377_v4 }
 0x6ae   :  { %2444 = vmatpush2.bf16.msra.mxu0 %v5378_v10 }
 0x6af   :  { %2445 = vmatprep.subr.bf16.mxu0 %v5379_v40 }
 0x6b2   :  { %2446 = vmatpush2.bf16.msra.mxu0 %v5380_v62 }
 0x6b3   :  { %2447 = vmatprep.subr.bf16.mxu0 %v5381_v1 }
 0x6b6   :  { %2448 = vmatpush2.bf16.msra.mxu0 %v5382_v2 }
 0x6b7   :  { %2449 = vmatprep.subr.bf16.mxu0 %v5383_v57  ;;  %v2291_v57 = vld [vmem:[#allocation2 + $0x5] ss:$8 sm:$0x30] }
 0x6ba   :  { %2450 = vmatpush2.bf16.msra.mxu0 %v5384_v3 }
 0x6bb   :  { %2590 = vmatprep.subr.bf16.mxu0 %v3320_v32  ;;  %v2292_v32 = vor.u32 %v2291_v57, %v2290_v43 }
 0x6fd   :  { %v2200_v8 = vpop.f32.mrf.mxu0  ;;  %v2241_v22 = vpop.f32.mrf.mxu1 }
 0x6ff   :  { %v2202_v24 = vpop.f32.mrf.mxu0  ;;  %v2243_v4 = vpop.f32.mrf.mxu1 }
 0x700   :  { %v2297_v12 = vcombine.low %v2200_v8, %v2202_v24  ;;  %v2298_v62 = vcombine.low %v2241_v22, %v2243_v4 }
 0x701   :  { %v2204_v51 = vpop.f32.mrf.mxu0  ;;  %v2245_v10 = vpop.f32.mrf.mxu1 }
 0x702   :  { %v2305_v1 = vrot.slane %v2297_v12, %v3888_v54  ;;  %v2312_v2 = vrot.slane %v2298_v62, %v3888_v54 }
 0x703   :  { %v2205_v53 = vpop.f32.mrf.mxu0  ;;  %v2246_v40 = vpop.f32.mrf.mxu1 }
 0x704   :  { %v2313_v49 = vcombine.low %v2305_v1, %v2312_v2 }
 0x706   :  { %v2320_v3 = vrot.slane %v2313_v49, %v3888_v54 }
 0x708   :  { %v2322_v41 = vadd.f32 %v2320_v3, %v2292_v32 }
 0x70a   :  { %v2948_v29 = vmul.f32 -1.442695, %v2322_v41  ;;  %v2351_v41 = vrot.slane %v2292_v32, 4 }
 0x70c   :  { %3206 = vpow2.f32 %v2948_v29 }
 0x719   :  { %v3207_v44 = vpop.eup %3206 }
 0x71a   :  { %v2326_v51 = vadd.f32 1.0, %v3207_v44 }
 0x71c   :  { %3208 = vrcp.f32 %v2326_v51 }
 0x729   :  { %v3209_v43 = vpop.eup %3208 }
 0x72a   :  { %v2356_v44 = vrot.slane %v3209_v43, 2 }
 0x72c   :  { %v2358_v3 = vsub.f32 1.0, %v2356_v44  ;;  %v2360_v24 = vmul.f32 %v2356_v44, %v4588_v0  ;;  %v3321_v0 = vld [vmem:[#allocation5 + $0x150] ss:$24 sps:$4 sm:$0xff]   ;;  %v5390_v44 = vld [vmem:[#allocation44_spill] sm:$0xff] }
 0x73d   :  { %v2282_v53 = vpop.f32.mrf.mxu0 }
 0x73e   :  { %v2329_v4 = vadd.f32 %v2282_v53, %v5183_v20 }
 0x73f   :  { %v2284_v10 = vpop.f32.mrf.mxu0 }
 0x740   :  { %v2330_v12 = vadd.f32 %v2284_v10, %v3900_v6 }
 0x741   :  { %v2286_v40 = vpop.f32.mrf.mxu0 }
 0x742   :  { %v2333_v62 = vcombine.low %v2329_v4, %v2330_v12  ;;  %v3322_v12 = vld [vmem:[#allocation5 + $0x124] ss:$24 sps:$4 sm:$0xff]   ;;  %v3323_v40 = vld [vmem:[#allocation5 + $0x120] ss:$24 sps:$4 sm:$0xff]  }
 0x743   :  { %v2287_v1 = vpop.f32.mrf.mxu0 }
 0x744   :  { %v2340_v2 = vrot.slane %v2333_v62, %v3888_v54  ;;  %v3324_v62 = vld [vmem:[#allocation5 + $0xf4] ss:$24 sps:$4 sm:$0xff]   ;;  %v3326_v1 = vld [vmem:[#allocation5 + $0xc4] ss:$24 sps:$4 sm:$0xff]  }
 0x746   :  { %v2347_v49 = vrot.slane %v2340_v2, %v3888_v54  ;;  %v3362_v2 = vld [vmem:[#allocation5 + $0xc] ss:$24 sps:$4 sm:$0xff]  }
 0x748   :  { %v2349_v57 = vmul.f32 %v3209_v43, %v2347_v49  ;;  %v5385_v49 = vld [vmem:[#allocation34_spill] sm:$0xff]  ;;  %v5386_v43 = vld [vmem:[#allocation36_spill] sm:$0xff] }
 0x74a   :  { %v2353_v29 = vadd.f32 %v2351_v41, %v2349_v57  ;;  %v5387_v57 = vld [vmem:[#allocation38_spill] sm:$0xff]  ;;  %v5388_v41 = vld [vmem:[#allocation40_spill] sm:$0xff] }
 0x74c   :  { %3210 = vtanh.f32 %v2353_v29  ;;  %v5389_v29 = vld [vmem:[#allocation42_spill] sm:$0xff] }
 0x759   :  { %v3211_v8 = vpop.eup %3210 }
 0x75a   :  { %v2359_v22 = vmul.f32 %v3211_v8, %v2358_v3  ;;  %v5391_v3 = vld [vmem:[#allocation46_spill] sm:$0xff]  ;;  %v5392_v8 = vld [vmem:[#allocation48_spill] sm:$0xff] }
 0x75c   :  { %v4708_v51 = vadd.f32 %v2360_v24, %v2359_v22  ;;  %v5393_v22 = vld [vmem:[#allocation50_spill] sm:$0xff]  ;;  %v5394_v24 = vld [vmem:[#allocation52_spill] sm:$0xff] }
 0x75e   :  { %2949 = vst.msk [vmem:[%s4822_s6 + $0x5] ss:$8 sm:$0x3] %vm3908_vm0, %v4708_v51  ;;  %v2373_v32 = vrot.slane %v4708_v51, %v5121_v35  ;;  %v2369_v53 = vrot.slane %v4708_v51, %v5120_v38 }
 0x760   :  { %v2377_v10 = vpack.c.bf16 %v2373_v32, %v2373_v32  ;;  %v4720_v4 = vpack.c.bf16 %v2369_v53, %v2369_v53  ;;  %v5396_v32 = vld [vmem:[#allocation56_spill] sm:$0xff] }
 0x761   :  { %v5397_v53 = vld [vmem:[#allocation68_spill] sm:$0xff] }
 0x762   :  { %2410 = vmatprep.mubr.bf16.mxu1 %v2377_v10  ;;  %2451 = vmatprep.mubr.bf16.mxu0 %v2377_v10 }
 0x763   :  { %2411 = vmatmul.mubr.bf16.vlgmr.msra.gmra.mxu1 %v4720_v4  ;;  %2452 = vmatmul.mubr.bf16.vlgmr.msra.gmra.mxu0 %v4720_v4 }
 0x764   :  { %2461 = vmatpush1.bf16.msra.mxu1 %v4256_v13  ;;  %2492 = vmatprep.mubr.bf16.mxu1 %v2377_v10  ;;  %v3325_v13 = vld [vmem:[#allocation5 + $0xf0] ss:$24 sps:$4 sm:$0xff]   ;;  %v5398_v10 = vld [vmem:[#allocation69_spill] sm:$0xff] }
 0x765   :  { %2462 = vmatprep.subr.bf16.mxu1 %v4259_v31  ;;  %2591 = vmatpush1.bf16.msra.mxu0 %v3321_v0  ;;  %v3327_v31 = vld [vmem:[#allocation5 + $0xc0] ss:$24 sps:$4 sm:$0xff]   ;;  %v5400_v0 = vld [vmem:[#allocation71_spill] sm:$0xff] }
 0x766   :  { %2592 = vmatprep.subr.bf16.mxu0 %v3322_v12 }
 0x768   :  { %2463 = vmatpush1.bf16.msra.mxu1 %v4264_v17  ;;  %v3328_v17 = vld [vmem:[#allocation5 + $0x94] ss:$24 sps:$4 sm:$0xff]  }
 0x769   :  { %2464 = vmatprep.subr.bf16.mxu1 %v4267_v19  ;;  %2593 = vmatpush1.bf16.msra.mxu0 %v3323_v40  ;;  %v3329_v19 = vld [vmem:[#allocation5 + $0x90] ss:$24 sps:$4 sm:$0xff]  }
 0x76a   :  { %2594 = vmatprep.subr.bf16.mxu0 %v3324_v62 }
 0x76c   :  { %2465 = vmatpush1.bf16.msra.mxu1 %v4272_v16  ;;  %v3330_v16 = vld [vmem:[#allocation5 + $0x64] ss:$24 sps:$4 sm:$0xff]  }
 0x76d   :  { %2466 = vmatprep.subr.bf16.mxu1 %v4275_v21  ;;  %2595 = vmatpush1.bf16.msra.mxu0 %v3325_v13  ;;  %v3331_v21 = vld [vmem:[#allocation5 + $0x60] ss:$24 sps:$4 sm:$0xff]  }
 0x76e   :  { %2596 = vmatprep.subr.bf16.mxu0 %v3326_v1 }
 0x770   :  { %2467 = vmatpush1.bf16.msra.mxu1 %v4280_v15  ;;  %v3332_v15 = vld [vmem:[#allocation5 + $0x34] ss:$24 sps:$4 sm:$0xff]  }
 0x771   :  { %2468 = vmatprep.subr.bf16.mxu1 %v4283_v5  ;;  %2597 = vmatpush1.bf16.msra.mxu0 %v3327_v31  ;;  %v3333_v5 = vld [vmem:[#allocation5 + $0x30] ss:$24 sps:$4 sm:$0xff]  }
 0x772   :  { %2598 = vmatprep.subr.bf16.mxu0 %v3328_v17 }
 0x774   :  { %2469 = vmatpush1.bf16.msra.mxu1 %v4288_v61  ;;  %v3334_v61 = vld [vmem:[#allocation5 + $0x4] ss:$24 sps:$4 sm:$0xff]  }
 0x775   :  { %2470 = vmatprep.subr.bf16.mxu1 %v4291_v9  ;;  %2599 = vmatpush1.bf16.msra.mxu0 %v3329_v19  ;;  %v3335_v9 = vld [vmem:[#allocation5] ss:$24 sps:$4 sm:$0xff]  }
 0x776   :  { %2600 = vmatprep.subr.bf16.mxu0 %v3330_v16 }
 0x778   :  { %2471 = vmatpush1.bf16.msra.mxu1 %v4296_v7  ;;  %v3336_v7 = vld [vmem:[#allocation5 + $0x2d4] ss:$24 sps:$4 sm:$0xff]  }
 0x779   :  { %2472 = vmatprep.subr.bf16.mxu1 %v4299_v14  ;;  %2601 = vmatpush1.bf16.msra.mxu0 %v3331_v21  ;;  %v3337_v14 = vld [vmem:[#allocation5 + $0x2d0] ss:$24 sps:$4 sm:$0xff]  }
 0x77a   :  { %2602 = vmatprep.subr.bf16.mxu0 %v3332_v15 }
 0x77c   :  { %2473 = vmatpush1.bf16.msra.mxu1 %v4304_v28  ;;  %v3338_v28 = vld [vmem:[#allocation5 + $0x2a4] ss:$24 sps:$4 sm:$0xff]  }
 0x77d   :  { %2474 = vmatprep.subr.bf16.mxu1 %v4307_v18  ;;  %2603 = vmatpush1.bf16.msra.mxu0 %v3333_v5  ;;  %v3339_v18 = vld [vmem:[#allocation5 + $0x2a0] ss:$24 sps:$4 sm:$0xff]  }
 0x77e   :  { %2604 = vmatprep.subr.bf16.mxu0 %v3334_v61 }
 0x780   :  { %2475 = vmatpush1.bf16.msra.mxu1 %v4312_v30  ;;  %v3340_v30 = vld [vmem:[#allocation5 + $0x274] ss:$24 sps:$4 sm:$0xff]  }
 0x781   :  { %2476 = vmatprep.subr.bf16.mxu1 %v5268_v26  ;;  %2605 = vmatpush1.bf16.msra.mxu0 %v3335_v9  ;;  %v3341_v26 = vld [vmem:[#allocation5 + $0x270] ss:$24 sps:$4 sm:$0xff]   ;;  %v2503_v9 = vld [vmem:[#allocation2 + $0x6] ss:$8 sm:$0x30] }
 0x782   :  { %2606 = vmatprep.subr.bf16.mxu0 %v3336_v7 }
 0x784   :  { %2477 = vmatpush2.bf16.msra.mxu1 %v5269_v58  ;;  %v3342_v58 = vld [vmem:[#allocation5 + $0x244] ss:$24 sps:$4 sm:$0xff]  }
 0x785   :  { %2478 = vmatprep.subr.bf16.mxu1 %v5270_v60  ;;  %2607 = vmatpush2.bf16.msra.mxu0 %v3337_v14  ;;  %v3343_v60 = vld [vmem:[#allocation5 + $0x240] ss:$24 sps:$4 sm:$0xff]   ;;  %v2502_v14 = vld [vmem:[#allocation2 + $0x6] ss:$8 sm:$0xf] }
 0x786   :  { %2608 = vmatprep.subr.bf16.mxu0 %v3338_v28  ;;  %v2504_v28 = vor.u32 %v2503_v9, %v2502_v14  ;;  %v3392_v9 = vld [vmem:[#allocation5 + $0x194] ss:$24 sps:$4 sm:$0xff]  }
 0x788   :  { %2479 = vmatpush2.bf16.msra.mxu1 %v5271_v46  ;;  %v3344_v46 = vld [vmem:[#allocation5 + $0x214] ss:$24 sps:$4 sm:$0xff]  }
 0x789   :  { %2480 = vmatprep.subr.bf16.mxu1 %v5327_v50  ;;  %2609 = vmatpush2.bf16.msra.mxu0 %v3339_v18  ;;  %v3345_v50 = vld [vmem:[#allocation5 + $0x210] ss:$24 sps:$4 sm:$0xff]  }
 0x78a   :  { %2610 = vmatprep.subr.bf16.mxu0 %v3340_v30 }
 0x78c   :  { %2481 = vmatpush2.bf16.msra.mxu1 %v5330_v34  ;;  %v3346_v34 = vld [vmem:[#allocation5 + $0x1e4] ss:$24 sps:$4 sm:$0xff]  }
 0x78d   :  { %2482 = vmatprep.subr.bf16.mxu1 %v5331_v11  ;;  %2611 = vmatpush2.bf16.msra.mxu0 %v3341_v26  ;;  %v3347_v11 = vld [vmem:[#allocation5 + $0x1e0] ss:$24 sps:$4 sm:$0xff]  }
 0x78e   :  { %2612 = vmatprep.subr.bf16.mxu0 %v3342_v58 }
 0x790   :  { %2483 = vmatpush2.bf16.msra.mxu1 %v5334_v33  ;;  %v3348_v33 = vld [vmem:[#allocation5 + $0x15c] ss:$24 sps:$4 sm:$0xff]  }
 0x791   :  { %2484 = vmatprep.subr.bf16.mxu1 %v5335_v56  ;;  %2613 = vmatpush2.bf16.msra.mxu0 %v3343_v60  ;;  %v3349_v56 = vld [vmem:[#allocation5 + $0x158] ss:$24 sps:$4 sm:$0xff]  }
 0x792   :  { %2614 = vmatprep.subr.bf16.mxu0 %v3344_v46 }
 0x794   :  { %2485 = vmatpush2.bf16.msra.mxu1 %v5338_v37  ;;  %v3350_v37 = vld [vmem:[#allocation5 + $0x12c] ss:$24 sps:$4 sm:$0xff]  }
 0x795   :  { %2486 = vmatprep.subr.bf16.mxu1 %v5339_v39  ;;  %2615 = vmatpush2.bf16.msra.mxu0 %v3345_v50  ;;  %v3351_v39 = vld [vmem:[#allocation5 + $0x128] ss:$24 sps:$4 sm:$0xff]  }
 0x796   :  { %2616 = vmatprep.subr.bf16.mxu0 %v3346_v34 }
 0x798   :  { %2487 = vmatpush2.bf16.msra.mxu1 %v5342_v45  ;;  %v3352_v45 = vld [vmem:[#allocation5 + $0xfc] ss:$24 sps:$4 sm:$0xff]  }
 0x799   :  { %2488 = vmatprep.subr.bf16.mxu1 %v5343_v47  ;;  %2617 = vmatpush2.bf16.msra.mxu0 %v3347_v11  ;;  %v3353_v47 = vld [vmem:[#allocation5 + $0xf8] ss:$24 sps:$4 sm:$0xff]  }
 0x79a   :  { %2618 = vmatprep.subr.bf16.mxu0 %v5345_v52  ;;  %v3354_v52 = vld [vmem:[#allocation5 + $0xcc] ss:$24 sps:$4 sm:$0xff]  }
 0x79c   :  { %2489 = vmatpush2.bf16.msra.mxu1 %v5346_v55  ;;  %v3355_v55 = vld [vmem:[#allocation5 + $0xc8] ss:$24 sps:$4 sm:$0xff]  }
 0x79d   :  { %2490 = vmatprep.subr.bf16.mxu1 %v5347_v36  ;;  %2619 = vmatpush2.bf16.msra.mxu0 %v5348_v25  ;;  %v3356_v36 = vld [vmem:[#allocation5 + $0x9c] ss:$24 sps:$4 sm:$0xff]   ;;  %v3357_v25 = vld [vmem:[#allocation5 + $0x98] ss:$24 sps:$4 sm:$0xff]  }
 0x79e   :  { %2620 = vmatprep.subr.bf16.mxu0 %v5349_v59  ;;  %v3358_v59 = vld [vmem:[#allocation5 + $0x6c] ss:$24 sps:$4 sm:$0xff]  }
 0x7a0   :  { %2491 = vmatpush2.bf16.msra.mxu1 %v5350_v27  ;;  %v3359_v27 = vld [vmem:[#allocation5 + $0x68] ss:$24 sps:$4 sm:$0xff]  }
 0x7a1   :  { %2631 = vmatprep.subr.bf16.mxu1 %v3348_v33  ;;  %2621 = vmatpush2.bf16.msra.mxu0 %v5352_v63  ;;  %v3360_v63 = vld [vmem:[#allocation5 + $0x3c] ss:$24 sps:$4 sm:$0xff]  }
 0x7a2   :  { %2672 = vmatprep.subr.bf16.mxu0 %v5353_v23  ;;  %v3361_v23 = vld [vmem:[#allocation5 + $0x38] ss:$24 sps:$4 sm:$0xff]  }
 0x7a3   :  { %2493 = vmatmul.mubr.bf16.vlgmr.msra.gmra.mxu1 %v4720_v4  ;;  %v5399_v4 = vld [vmem:[#allocation70_spill] sm:$0xff] }
 0x7a4   :  { %2632 = vmatpush1.bf16.msra.mxu1 %v3349_v56 }
 0x7a5   :  { %2633 = vmatprep.subr.bf16.mxu1 %v3350_v37 }
 0x7a8   :  { %2634 = vmatpush1.bf16.msra.mxu1 %v3351_v39 }
 0x7a9   :  { %2635 = vmatprep.subr.bf16.mxu1 %v3352_v45 }
 0x7ac   :  { %2636 = vmatpush1.bf16.msra.mxu1 %v3353_v47 }
 0x7ad   :  { %2637 = vmatprep.subr.bf16.mxu1 %v3354_v52  ;;  %v2563_v52 = vrot.slane %v2504_v28, 4 }
 0x7b0   :  { %2638 = vmatpush1.bf16.msra.mxu1 %v3355_v55 }
 0x7b1   :  { %2639 = vmatprep.subr.bf16.mxu1 %v3356_v36 }
 0x7b4   :  { %2640 = vmatpush1.bf16.msra.mxu1 %v3357_v25 }
 0x7b5   :  { %2641 = vmatprep.subr.bf16.mxu1 %v3358_v59 }
 0x7b8   :  { %2642 = vmatpush1.bf16.msra.mxu1 %v3359_v27 }
 0x7b9   :  { %2643 = vmatprep.subr.bf16.mxu1 %v3360_v63 }
 0x7bc   :  { %2644 = vmatpush1.bf16.msra.mxu1 %v3361_v23 }
 0x7bd   :  { %2645 = vmatprep.subr.bf16.mxu1 %v3362_v2 }
 0x7c0   :  { %2646 = vmatpush1.bf16.msra.mxu1 %v5368_v48  ;;  %v5395_v48 = vld [vmem:[#allocation54_spill] sm:$0xff] }
 0x7c1   :  { %2647 = vmatprep.subr.bf16.mxu1 %v5385_v49 }
 0x7c4   :  { %2648 = vmatpush2.bf16.msra.mxu1 %v5386_v43 }
 0x7c5   :  { %2649 = vmatprep.subr.bf16.mxu1 %v5387_v57 }
 0x7c8   :  { %2650 = vmatpush2.bf16.msra.mxu1 %v5388_v41  ;;  %v3364_v41 = vld [vmem:[#allocation5 + $0x134] ss:$24 sps:$4 sm:$0xff]  }
 0x7c9   :  { %2651 = vmatprep.subr.bf16.mxu1 %v5389_v29  ;;  %v3365_v29 = vld [vmem:[#allocation5 + $0x130] ss:$24 sps:$4 sm:$0xff]  }
 0x7cc   :  { %2652 = vmatpush2.bf16.msra.mxu1 %v5390_v44  ;;  %v3367_v44 = vld [vmem:[#allocation5 + $0x100] ss:$24 sps:$4 sm:$0xff]  }
 0x7cd   :  { %2653 = vmatprep.subr.bf16.mxu1 %v5391_v3  ;;  %v3369_v3 = vld [vmem:[#allocation5 + $0xd0] ss:$24 sps:$4 sm:$0xff]  }
 0x7d0   :  { %2654 = vmatpush2.bf16.msra.mxu1 %v5392_v8  ;;  %v3370_v8 = vld [vmem:[#allocation5 + $0xa4] ss:$24 sps:$4 sm:$0xff]  }
 0x7d1   :  { %2655 = vmatprep.subr.bf16.mxu1 %v5393_v22  ;;  %v3371_v22 = vld [vmem:[#allocation5 + $0xa0] ss:$24 sps:$4 sm:$0xff]  }
 0x7d4   :  { %2656 = vmatpush2.bf16.msra.mxu1 %v5394_v24  ;;  %v3372_v24 = vld [vmem:[#allocation5 + $0x74] ss:$24 sps:$4 sm:$0xff]  }
 0x7d5   :  { %2657 = vmatprep.subr.bf16.mxu1 %v5395_v48  ;;  %v3373_v48 = vld [vmem:[#allocation5 + $0x70] ss:$24 sps:$4 sm:$0xff]  }
 0x7d8   :  { %2658 = vmatpush2.bf16.msra.mxu1 %v5396_v32  ;;  %v3374_v32 = vld [vmem:[#allocation5 + $0x44] ss:$24 sps:$4 sm:$0xff]  }
 0x7d9   :  { %2659 = vmatprep.subr.bf16.mxu1 %v5397_v53  ;;  %v3375_v53 = vld [vmem:[#allocation5 + $0x40] ss:$24 sps:$4 sm:$0xff]  }
 0x7dc   :  { %2660 = vmatpush2.bf16.msra.mxu1 %v5398_v10  ;;  %v3376_v10 = vld [vmem:[#allocation5 + $0x14] ss:$24 sps:$4 sm:$0xff]  }
 0x7dd   :  { %2661 = vmatprep.subr.bf16.mxu1 %v5399_v4  ;;  %v3377_v4 = vld [vmem:[#allocation5 + $0x10] ss:$24 sps:$4 sm:$0xff]  }
 0x7e0   :  { %2662 = vmatpush2.bf16.msra.mxu1 %v5400_v0  ;;  %v3378_v0 = vld [vmem:[#allocation5 + $0x2e4] ss:$24 sps:$4 sm:$0xff]  }
 0x823   :  { %v2412_v12 = vpop.f32.mrf.mxu1  ;;  %v2453_v40 = vpop.f32.mrf.mxu0 }
 0x825   :  { %v2414_v62 = vpop.f32.mrf.mxu1  ;;  %v2455_v13 = vpop.f32.mrf.mxu0 }
 0x826   :  { %v2509_v16 = vcombine.low %v2412_v12, %v2414_v62  ;;  %v2510_v21 = vcombine.low %v2453_v40, %v2455_v13  ;;  %v3379_v12 = vld [vmem:[#allocation5 + $0x2e0] ss:$24 sps:$4 sm:$0xff]   ;;  %v3380_v40 = vld [vmem:[#allocation5 + $0x2b4] ss:$24 sps:$4 sm:$0xff]   ;;  %v3381_v62 = vld [vmem:[#allocation5 + $0x2b0] ss:$24 sps:$4 sm:$0xff]  }
 0x827   :  { %v2416_v1 = vpop.f32.mrf.mxu1  ;;  %v2457_v31 = vpop.f32.mrf.mxu0  ;;  %v3382_v13 = vld [vmem:[#allocation5 + $0x284] ss:$24 sps:$4 sm:$0xff]  }
 0x828   :  { %v2517_v15 = vrot.slane %v2509_v16, %v3888_v54  ;;  %v2524_v5 = vrot.slane %v2510_v21, %v3888_v54  ;;  %v3383_v1 = vld [vmem:[#allocation5 + $0x280] ss:$24 sps:$4 sm:$0xff]   ;;  %v3384_v31 = vld [vmem:[#allocation5 + $0x254] ss:$24 sps:$4 sm:$0xff]  }
 0x829   :  { %v2417_v17 = vpop.f32.mrf.mxu1  ;;  %v2458_v19 = vpop.f32.mrf.mxu0  ;;  %v3387_v16 = vld [vmem:[#allocation5 + $0x220] ss:$24 sps:$4 sm:$0xff]   ;;  %v3388_v21 = vld [vmem:[#allocation5 + $0x1f4] ss:$24 sps:$4 sm:$0xff]  }
 0x82a   :  { %v2525_v61 = vcombine.low %v2517_v15, %v2524_v5  ;;  %v3385_v17 = vld [vmem:[#allocation5 + $0x250] ss:$24 sps:$4 sm:$0xff]   ;;  %v3386_v19 = vld [vmem:[#allocation5 + $0x224] ss:$24 sps:$4 sm:$0xff]  }
 0x82b   :  { %v3389_v15 = vld [vmem:[#allocation5 + $0x1f0] ss:$24 sps:$4 sm:$0xff]   ;;  %v3390_v5 = vld [vmem:[#allocation5 + $0x1c4] ss:$24 sps:$4 sm:$0xff]  }
 0x82c   :  { %v2532_v7 = vrot.slane %v2525_v61, %v3888_v54  ;;  %v3391_v61 = vld [vmem:[#allocation5 + $0x1c0] ss:$24 sps:$4 sm:$0xff]  }
 0x82e   :  { %v2534_v18 = vadd.f32 %v2532_v7, %v2504_v28  ;;  %v3393_v7 = vld [vmem:[#allocation5 + $0x190] ss:$24 sps:$4 sm:$0xff]  }
 0x830   :  { %v2950_v30 = vmul.f32 -1.442695, %v2534_v18 }
 0x832   :  { %3212 = vpow2.f32 %v2950_v30 }
 0x83f   :  { %v3213_v26 = vpop.eup %3212 }
 0x840   :  { %v2538_v58 = vadd.f32 1.0, %v3213_v26 }
 0x842   :  { %3214 = vrcp.f32 %v2538_v58 }
 0x84f   :  { %v3215_v45 = vpop.eup %3214 }
 0x850   :  { %v2568_v36 = vrot.slane %v3215_v45, 2 }
 0x852   :  { %v2570_v25 = vsub.f32 1.0, %v2568_v36  ;;  %v2572_v63 = vmul.f32 %v2568_v36, %v4708_v51  ;;  %v3363_v51 = vld [vmem:[#allocation5 + $0x160] ss:$24 sps:$4 sm:$0xff]  }
 0x863   :  { %v2494_v60 = vpop.f32.mrf.mxu1 }
 0x864   :  { %v2541_v50 = vadd.f32 %v2494_v60, %v5183_v20 }
 0x865   :  { %v2496_v46 = vpop.f32.mrf.mxu1 }
 0x866   :  { %v2542_v34 = vadd.f32 %v2496_v46, %v3900_v6 }
 0x867   :  { %v2498_v11 = vpop.f32.mrf.mxu1 }
 0x868   :  { %v2545_v33 = vcombine.low %v2541_v50, %v2542_v34 }
 0x869   :  { %v2499_v56 = vpop.f32.mrf.mxu1 }
 0x86a   :  { %v2552_v37 = vrot.slane %v2545_v33, %v3888_v54 }
 0x86c   :  { %v2559_v39 = vrot.slane %v2552_v37, %v3888_v54  ;;  %v2715_v37 = vld [vmem:[#allocation2 + $0x7] ss:$8 sm:$0x30] }
 0x86e   :  { %v2561_v47 = vmul.f32 %v3215_v45, %v2559_v39  ;;  %v2714_v45 = vld [vmem:[#allocation2 + $0x7] ss:$8 sm:$0xf] }
 0x870   :  { %v2565_v55 = vadd.f32 %v2563_v52, %v2561_v47  ;;  %v2716_v47 = vor.u32 %v2715_v37, %v2714_v45 }
 0x872   :  { %3216 = vtanh.f32 %v2565_v55 }
 0x87f   :  { %v3217_v59 = vpop.eup %3216 }
 0x880   :  { %v2571_v27 = vmul.f32 %v3217_v59, %v2570_v25 }
 0x882   :  { %v4786_v23 = vadd.f32 %v2572_v63, %v2571_v27 }
 0x884   :  { %2951 = vst.msk [vmem:[%s4822_s6 + $0x6] ss:$8 sm:$0x3] %vm3908_vm0, %v4786_v23  ;;  %v2585_v2 = vrot.slane %v4786_v23, %v5121_v35  ;;  %v2581_v49 = vrot.slane %v4786_v23, %v5120_v38  ;;  %v3366_v35 = vld [vmem:[#allocation5 + $0x104] ss:$24 sps:$4 sm:$0xff]  }
 0x885   :  { %v3368_v38 = vld [vmem:[#allocation5 + $0xd4] ss:$24 sps:$4 sm:$0xff]  }
 0x886   :  { %v2589_v43 = vpack.c.bf16 %v2585_v2, %v2585_v2  ;;  %v4798_v57 = vpack.c.bf16 %v2581_v49, %v2581_v49 }
 0x888   :  { %2622 = vmatprep.mubr.bf16.mxu0 %v2589_v43  ;;  %2663 = vmatprep.mubr.bf16.mxu1 %v2589_v43 }
 0x889   :  { %2623 = vmatmul.mubr.bf16.vlgmr.msra.gmra.mxu0 %v4798_v57  ;;  %2664 = vmatmul.mubr.bf16.vlgmr.msra.gmra.mxu1 %v4798_v57 }
 0x88a   :  { %2673 = vmatpush1.bf16.msra.mxu0 %v3363_v51  ;;  %2704 = vmatprep.mubr.bf16.mxu0 %v2589_v43 }
 0x88b   :  { %2674 = vmatprep.subr.bf16.mxu0 %v3364_v41 }
 0x88e   :  { %2675 = vmatpush1.bf16.msra.mxu0 %v3365_v29 }
 0x88f   :  { %2676 = vmatprep.subr.bf16.mxu0 %v3366_v35 }
 0x892   :  { %2677 = vmatpush1.bf16.msra.mxu0 %v3367_v44  ;;  %v2775_v44 = vrot.slane %v2716_v47, 4 }
 0x893   :  { %2678 = vmatprep.subr.bf16.mxu0 %v3368_v38 }
 0x896   :  { %2679 = vmatpush1.bf16.msra.mxu0 %v3369_v3 }
 0x897   :  { %2680 = vmatprep.subr.bf16.mxu0 %v3370_v8 }
 0x89a   :  { %2681 = vmatpush1.bf16.msra.mxu0 %v3371_v22 }
 0x89b   :  { %2682 = vmatprep.subr.bf16.mxu0 %v3372_v24 }
 0x89e   :  { %2683 = vmatpush1.bf16.msra.mxu0 %v3373_v48 }
 0x89f   :  { %2684 = vmatprep.subr.bf16.mxu0 %v3374_v32 }
 0x8a2   :  { %2685 = vmatpush1.bf16.msra.mxu0 %v3375_v53 }
 0x8a3   :  { %2686 = vmatprep.subr.bf16.mxu0 %v3376_v10 }
 0x8a6   :  { %2687 = vmatpush1.bf16.msra.mxu0 %v3377_v4 }
 0x8a7   :  { %2688 = vmatprep.subr.bf16.mxu0 %v3378_v0 }
 0x8aa   :  { %2689 = vmatpush2.bf16.msra.mxu0 %v3379_v12 }
 0x8ab   :  { %2690 = vmatprep.subr.bf16.mxu0 %v3380_v40 }
 0x8ae   :  { %2691 = vmatpush2.bf16.msra.mxu0 %v3381_v62 }
 0x8af   :  { %2692 = vmatprep.subr.bf16.mxu0 %v3382_v13 }
 0x8b2   :  { %2693 = vmatpush2.bf16.msra.mxu0 %v3383_v1 }
 0x8b3   :  { %2694 = vmatprep.subr.bf16.mxu0 %v3384_v31 }
 0x8b6   :  { %2695 = vmatpush2.bf16.msra.mxu0 %v3385_v17 }
 0x8b7   :  { %2696 = vmatprep.subr.bf16.mxu0 %v3386_v19 }
 0x8ba   :  { %2697 = vmatpush2.bf16.msra.mxu0 %v3387_v16 }
 0x8bb   :  { %2698 = vmatprep.subr.bf16.mxu0 %v3388_v21 }
 0x8be   :  { %2699 = vmatpush2.bf16.msra.mxu0 %v3389_v15 }
 0x8bf   :  { %2700 = vmatprep.subr.bf16.mxu0 %v3390_v5 }
 0x8c2   :  { %2701 = vmatpush2.bf16.msra.mxu0 %v3391_v61 }
 0x8c3   :  { %2702 = vmatprep.subr.bf16.mxu0 %v3392_v9 }
 0x8c6   :  { %2703 = vmatpush2.bf16.msra.mxu0 %v3393_v7 }
 0x8c9   :  { %2705 = vmatmul.mubr.bf16.vlgmr.msra.gmra.mxu0 %v4798_v57 }
 0x949   :  { %v2624_v14 = vpop.f32.mrf.mxu0  ;;  %v2665_v28 = vpop.f32.mrf.mxu1 }
 0x94b   :  { %v2626_v18 = vpop.f32.mrf.mxu0  ;;  %v2667_v30 = vpop.f32.mrf.mxu1 }
 0x94c   :  { %v2721_v50 = vcombine.low %v2624_v14, %v2626_v18  ;;  %v2722_v34 = vcombine.low %v2665_v28, %v2667_v30 }
 0x94d   :  { %v2628_v26 = vpop.f32.mrf.mxu0  ;;  %v2669_v58 = vpop.f32.mrf.mxu1 }
 0x94e   :  { %v2729_v11 = vrot.slane %v2721_v50, %v3888_v54  ;;  %v2736_v33 = vrot.slane %v2722_v34, %v3888_v54 }
 0x94f   :  { %v2629_v60 = vpop.f32.mrf.mxu0  ;;  %v2670_v46 = vpop.f32.mrf.mxu1 }
 0x950   :  { %v2737_v56 = vcombine.low %v2729_v11, %v2736_v33 }
 0x952   :  { %v2744_v39 = vrot.slane %v2737_v56, %v3888_v54 }
 0x954   :  { %v2746_v52 = vadd.f32 %v2744_v39, %v2716_v47 }
 0x956   :  { %v2952_v55 = vmul.f32 -1.442695, %v2746_v52 }
 0x958   :  { %3218 = vpow2.f32 %v2952_v55 }
 0x965   :  { %v3219_v36 = vpop.eup %3218 }
 0x966   :  { %v2750_v25 = vadd.f32 1.0, %v3219_v36 }
 0x968   :  { %3220 = vrcp.f32 %v2750_v25 }
 0x975   :  { %v3221_v29 = vpop.eup %3220 }
 0x976   :  { %v2780_v3 = vrot.slane %v3221_v29, 2 }
 0x978   :  { %v2782_v8 = vsub.f32 1.0, %v2780_v3 }
 0x989   :  { %v2706_v59 = vpop.f32.mrf.mxu0 }
 0x98a   :  { %v2753_v63 = vadd.f32 %v2706_v59, %v5183_v20  ;;  %v2784_v20 = vmul.f32 %v2780_v3, %v4786_v23 }
 0x98b   :  { %v2708_v27 = vpop.f32.mrf.mxu0 }
 0x98c   :  { %v2754_v2 = vadd.f32 %v2708_v27, %v3900_v6 }
 0x98d   :  { %v2710_v49 = vpop.f32.mrf.mxu0 }
 0x98e   :  { %v2757_v43 = vcombine.low %v2753_v63, %v2754_v2 }
 0x98f   :  { %v2711_v57 = vpop.f32.mrf.mxu0 }
 0x990   :  { %v2764_v51 = vrot.slane %v2757_v43, %v3888_v54 }
 0x992   :  { %v2771_v41 = vrot.slane %v2764_v51, %v3888_v54 }
 0x994   :  { %v2773_v35 = vmul.f32 %v3221_v29, %v2771_v41 }
 0x996   :  { %v2777_v38 = vadd.f32 %v2775_v44, %v2773_v35 }
 0x998   :  { %3222 = vtanh.f32 %v2777_v38 }
 0x9a5   :  { %v3223_v22 = vpop.eup %3222 }
 0x9a6   :  { %v2783_v24 = vmul.f32 %v3223_v22, %v2782_v8 }
 0x9a8   :  { %v2785_v48 = vadd.f32 %v2784_v20, %v2783_v24 }
 0x9aa   :  { %2953 = vst.msk [vmem:[%s4822_s6 + $0x7] ss:$8 sm:$0x3] %vm3908_vm0, %v2785_v48 }
 0x9ab   :  { %2793 = vsyncpa [#allocation4], 1 }
 0x9ac   :  { %2794 = vsyncpa [#allocation6], 1 }

</bundles_post_ra>
